<compile_context>
chip_gen: v7x
topology: tpu7x:2x2x1
jax: 0.10.0
libtpu: 0.0.40
codegen_flags: <defaults>
</compile_context>

<pallas_src>
import functools
import math

import jax
import jax.numpy as jnp
from jax import lax
from jax.experimental import pallas as pl
from jax.experimental.pallas import tpu as pltpu


# ----------------------------- in-kernel helpers -----------------------------

def _erf_approx(x):
    # Abramowitz & Stegun 7.1.26 polynomial erf (max abs err ~1.5e-7).
    a1, a2, a3, a4, a5 = 0.254829592, -0.284496736, 1.421413741, -1.453152027, 1.061405429
    p = 0.3275911
    ax = jnp.abs(x)
    t = 1.0 / (1.0 + p * ax)
    poly = ((((a5 * t + a4) * t + a3) * t + a2) * t + a1) * t
    y = 1.0 - poly * jnp.exp(-ax * ax)
    return jnp.where(x >= 0.0, y, -y)


def _gelu_exact(x):
    # torch 'gelu' (approximate='none'): 0.5 * x * (1 + erf(x / sqrt(2)))
    return 0.5 * x * (1.0 + _erf_approx(x * (1.0 / math.sqrt(2.0))))


def _layer_norm(x, g, b, eps=1e-5):
    mu = jnp.mean(x, axis=-1, keepdims=True)
    d = x - mu
    var = jnp.mean(d * d, axis=-1, keepdims=True)
    return d * lax.rsqrt(var + eps) * g + b


# ----------------------------- fused model kernel -----------------------------

def _model_kernel(x_ref, pe_ref, emb_w_ref, emb_b_ref,
                  wq_ref, bq_ref, wk_ref, bk_ref, wv_ref, bv_ref,
                  wo_ref, bo_ref,
                  l1_w_ref, l1_b_ref, l2_w_ref, l2_b_ref,
                  ln1_g_ref, ln1_b_ref, ln2_g_ref, ln2_b_ref,
                  out_w_ref, out_b_ref, o_ref, *, n_layer, n_head):
    # One grid step == one batch element.  x_ref: (S, i_dim), o_ref: (S, o_dim).
    S = x_ref.shape[0]
    D = emb_w_ref.shape[1]
    Dh = D // n_head
    scale = 1.0 / math.sqrt(Dh)

    # embedding + positional encoding
    h = jnp.dot(x_ref[...], emb_w_ref[...],
                preferred_element_type=jnp.float32) + emb_b_ref[...]
    h = h + pe_ref[...]

    # post-LN torch TransformerEncoderLayer stack (eval mode, dropout = id)
    for l in range(n_layer):                 # static unroll (n_layer is small)
        attn = jnp.zeros((S, D), jnp.float32)
        for hd in range(n_head):             # heads sliced via weight layout, all in VMEM
            q_h = jnp.dot(h, wq_ref[l, hd],
                          preferred_element_type=jnp.float32) + bq_ref[l, hd]
            k_h = jnp.dot(h, wk_ref[l, hd],
                          preferred_element_type=jnp.float32) + bk_ref[l, hd]
            v_h = jnp.dot(h, wv_ref[l, hd],
                          preferred_element_type=jnp.float32) + bv_ref[l, hd]
            s = lax.dot_general(q_h, k_h, (((1,), (1,)), ((), ())),
                                preferred_element_type=jnp.float32) * scale
            s = s - jnp.max(s, axis=-1, keepdims=True)
            p = jnp.exp(s)
            denom = jnp.sum(p, axis=-1, keepdims=True)
            inv = pl.reciprocal(denom, approx=True)      # EUP vrcp (free slot)
            inv = inv * (2.0 - denom * inv)              # one Newton step -> ~f32 exact
            p = p * inv
            o_h = jnp.dot(p, v_h, preferred_element_type=jnp.float32)     # (S, Dh)
            # fold head-concat into the output projection: sum_h o_h @ Wo[h]
            attn = attn + jnp.dot(o_h, wo_ref[l, hd],
                                  preferred_element_type=jnp.float32)
        attn = attn + bo_ref[l]
        h = _layer_norm(h + attn, ln1_g_ref[l], ln1_b_ref[l])

        # feed-forward (D -> 4D -> D) with exact GELU, f32 elementwise math
        ff = jnp.dot(h, l1_w_ref[l],
                     preferred_element_type=jnp.float32) + l1_b_ref[l]
        ff = _gelu_exact(ff)
        ff = jnp.dot(ff, l2_w_ref[l],
                     preferred_element_type=jnp.float32) + l2_b_ref[l]
        h = _layer_norm(h + ff, ln2_g_ref[l], ln2_b_ref[l])

    # output head
    o_ref[...] = (jnp.dot(h, out_w_ref[...], preferred_element_type=jnp.float32)
                  + out_b_ref[...]).astype(o_ref.dtype)


# ------------------------------- kernel wrapper --------------------------------

def disprot_transformer(x, kp, n_head):
    """x: [B, S, i_dim] -> [B, S, o_dim].  kp = prepare_kernel_params(params)."""
    B, S, i_dim = x.shape
    D = kp["emb_w"].shape[1]
    o_dim = kp["out_w"].shape[1]
    L = kp["wq"].shape[0]
    pe = kp["pe"][:S]                        # (S, D), static slice at trace time

    def fullspec(a):
        zeros = (0,) * a.ndim
        return pl.BlockSpec(a.shape, lambda b, z=zeros: z)

    weight_args = [kp["emb_w"], kp["emb_b"],
                   kp["wq"], kp["bq"], kp["wk"], kp["bk"], kp["wv"], kp["bv"],
                   kp["wo"], kp["op_b"],
                   kp["l1_w"], kp["l1_b"], kp["l2_w"], kp["l2_b"],
                   kp["ln1_g"], kp["ln1_b"], kp["ln2_g"], kp["ln2_b"],
                   kp["out_w"], kp["out_b"]]

    in_specs = ([pl.BlockSpec((None, S, i_dim), lambda b: (b, 0, 0)),  # x: one batch/step
                 fullspec(pe)] +
                [fullspec(a) for a in weight_args])

    return pl.pallas_call(
        functools.partial(_model_kernel, n_layer=L, n_head=n_head),
        out_shape=jax.ShapeDtypeStruct((B, S, o_dim), x.dtype),
        grid=(B,),
        in_specs=in_specs,
        out_specs=pl.BlockSpec((None, S, o_dim), lambda b: (b, 0, 0)),
        compiler_params=pltpu.CompilerParams(dimension_semantics=("parallel",)),
    )(x, pe, *weight_args)


# ------------------------------ params / PE setup ------------------------------

def make_positional_encoding(max_len, d_model):
    position = jnp.arange(max_len, dtype=jnp.float32)[:, None]
    div_term = jnp.exp(jnp.arange(0, d_model, 2, dtype=jnp.float32)
                       * (-math.log(10000.0) / d_model))
    pe = jnp.zeros((max_len, d_model), dtype=jnp.float32)
    pe = pe.at[:, 0::2].set(jnp.sin(position * div_term))
    pe = pe.at[:, 1::2].set(jnp.cos(position * div_term))
    return pe


def init_params(key, i_dim, d_model, n_layer, o_dim, max_len):
    """Weights stored pre-transposed as [Din, Dout] (== torch W^T), stacked per layer."""
    D = d_model

    def dense(k, din, dout, scale=0.05):
        kw, kb = jax.random.split(k)
        w = jax.random.normal(kw, (din, dout), jnp.float32) * scale
        b = jax.random.normal(kb, (1, dout), jnp.float32) * scale
        return w, b

    keys = jax.random.split(key, 2 + n_layer)
    emb_w, emb_b = dense(keys[0], i_dim, D)
    out_w, out_b = dense(keys[1], D, o_dim)

    in_w, in_b, op_w, op_b = [], [], [], []
    l1_w, l1_b, l2_w, l2_b = [], [], [], []
    for l in range(n_layer):
        lk = jax.random.split(keys[2 + l], 4)
        w, b = dense(lk[0], D, 3 * D); in_w.append(w); in_b.append(b)
        w, b = dense(lk[1], D, D);     op_w.append(w); op_b.append(b)
        w, b = dense(lk[2], D, 4 * D); l1_w.append(w); l1_b.append(b)
        w, b = dense(lk[3], 4 * D, D); l2_w.append(w); l2_b.append(b)

    stack = lambda xs: jnp.stack(xs, axis=0)
    return dict(
        emb_w=emb_w, emb_b=emb_b, out_w=out_w, out_b=out_b,
        in_w=stack(in_w), in_b=stack(in_b),
        op_w=stack(op_w), op_b=stack(op_b),
        l1_w=stack(l1_w), l1_b=stack(l1_b),
        l2_w=stack(l2_w), l2_b=stack(l2_b),
        ln1_g=jnp.ones((n_layer, 1, D), jnp.float32),
        ln1_b=jnp.zeros((n_layer, 1, D), jnp.float32),
        ln2_g=jnp.ones((n_layer, 1, D), jnp.float32),
        ln2_b=jnp.zeros((n_layer, 1, D), jnp.float32),
        pe=make_positional_encoding(max_len, d_model),
    )


def prepare_kernel_params(params, n_head):
    """One-time (outside jit) rearrangement: split attention weights per head so
    the fused kernel never slices the lane axis or relayouts in XLA."""
    L, D, _ = params["in_w"].shape
    Dh = D // n_head

    def split_w(w):   # (L, D, D) -> (L, H, D, Dh)
        return w.reshape(L, D, n_head, Dh).transpose(0, 2, 1, 3)

    def split_b(b):   # (L, 1, D) -> (L, H, 1, Dh)
        return b.reshape(L, 1, n_head, Dh).transpose(0, 2, 1, 3)

    in_w, in_b = params["in_w"], params["in_b"]
    kp = dict(params)
    kp.update(
        wq=split_w(in_w[:, :, 0:D]),       bq=split_b(in_b[:, :, 0:D]),
        wk=split_w(in_w[:, :, D:2 * D]),   bk=split_b(in_b[:, :, D:2 * D]),
        wv=split_w(in_w[:, :, 2 * D:]),    bv=split_b(in_b[:, :, 2 * D:]),
        wo=params["op_w"].reshape(L, n_head, Dh, D),   # rows h*Dh:(h+1)*Dh -> head h
    )
    for name in ("in_w", "in_b", "op_w"):
        kp.pop(name)
    return jax.tree_util.tree_map(jnp.asarray, kp)


# ------------------------------- pure-JAX reference ----------------------------

def reference_forward(x, params, n_head):
    def ln(t, g, b, eps=1e-5):
        mu = t.mean(-1, keepdims=True)
        var = ((t - mu) ** 2).mean(-1, keepdims=True)
        return (t - mu) / jnp.sqrt(var + eps) * g + b

    B, S, _ = x.shape
    h = x @ params["emb_w"] + params["emb_b"]
    h = h + params["pe"][None, :S]
    D = h.shape[-1]
    Dh = D // n_head
    L = params["in_w"].shape[0]
    for l in range(L):
        qkv = h @ params["in_w"][l] + params["in_b"][l]
        q, k, v = jnp.split(qkv, 3, axis=-1)
        q = q.reshape(B, S, n_head, Dh).transpose(0, 2, 1, 3)
        k = k.reshape(B, S, n_head, Dh).transpose(0, 2, 1, 3)
        v = v.reshape(B, S, n_head, Dh).transpose(0, 2, 1, 3)
        s = jnp.einsum("bhqd,bhkd->bhqk", q, k) / math.sqrt(Dh)
        a = jax.nn.softmax(s, axis=-1)
        o = jnp.einsum("bhqk,bhkd->bhqd", a, v).transpose(0, 2, 1, 3).reshape(B, S, D)
        o = o @ params["op_w"][l] + params["op_b"][l]
        h = ln(h + o, params["ln1_g"][l], params["ln1_b"][l])
        f = jax.nn.gelu(h @ params["l1_w"][l] + params["l1_b"][l], approximate=False)
        f = f @ params["l2_w"][l] + params["l2_b"][l]
        h = ln(h + f, params["ln2_g"][l], params["ln2_b"][l])
    return h @ params["out_w"] + params["out_b"]


# ------------------------------------ main -------------------------------------

if __name__ == "__main__":
    # small config consistent with the module: [batch, seq, i_dim] input
    B, S = 2, 8
    i_dim, d_model, n_head, n_layer, o_dim = 16, 32, 4, 2, 2

    params = init_params(jax.random.PRNGKey(42), i_dim, d_model, n_layer, o_dim,
                         max_len=64)
    kparams = prepare_kernel_params(params, n_head)       # one-time setup, outside jit
    x = jax.random.normal(jax.random.PRNGKey(0), (B, S, i_dim), jnp.float32)

    fwd = jax.jit(functools.partial(disprot_transformer, n_head=n_head))
    out = jax.block_until_ready(fwd(x, kparams))

    assert out.shape == (B, S, o_dim), out.shape
    ref = reference_forward(x, params, n_head)
    err = float(jnp.max(jnp.abs(out - ref)))
    assert jnp.allclose(out, ref, atol=1e-4, rtol=1e-4), err
    print("KERNEL_OK")
</pallas_src>

<mosaic_0001>
module attributes {stable_mosaic.version = 11 : i64} {
  func.func @_model_kernel(%arg0: i32, %arg1: memref<1x8x16xf32, #tpu.memory_space<vmem>>, %arg2: memref<8x32xf32, #tpu.memory_space<vmem>>, %arg3: memref<16x32xf32, #tpu.memory_space<vmem>>, %arg4: memref<1x32xf32, #tpu.memory_space<vmem>>, %arg5: memref<2x4x32x8xf32, #tpu.memory_space<vmem>>, %arg6: memref<2x4x1x8xf32, #tpu.memory_space<vmem>>, %arg7: memref<2x4x32x8xf32, #tpu.memory_space<vmem>>, %arg8: memref<2x4x1x8xf32, #tpu.memory_space<vmem>>, %arg9: memref<2x4x32x8xf32, #tpu.memory_space<vmem>>, %arg10: memref<2x4x1x8xf32, #tpu.memory_space<vmem>>, %arg11: memref<2x4x8x32xf32, #tpu.memory_space<vmem>>, %arg12: memref<2x1x32xf32, #tpu.memory_space<vmem>>, %arg13: memref<2x32x128xf32, #tpu.memory_space<vmem>>, %arg14: memref<2x1x128xf32, #tpu.memory_space<vmem>>, %arg15: memref<2x128x32xf32, #tpu.memory_space<vmem>>, %arg16: memref<2x1x32xf32, #tpu.memory_space<vmem>>, %arg17: memref<2x1x32xf32, #tpu.memory_space<vmem>>, %arg18: memref<2x1x32xf32, #tpu.memory_space<vmem>>, %arg19: memref<2x1x32xf32, #tpu.memory_space<vmem>>, %arg20: memref<2x1x32xf32, #tpu.memory_space<vmem>>, %arg21: memref<32x2xf32, #tpu.memory_space<vmem>>, %arg22: memref<1x2xf32, #tpu.memory_space<vmem>>, %arg23: memref<1x8x2xf32, #tpu.memory_space<vmem>>) attributes {dimension_semantics = [#tpu.dimension_semantics<parallel>], iteration_bounds = array<i64: 2>, scalar_prefetch = 0 : i64, scratch_operands = 0 : i64, tpu.core_type = #tpu.core_type<tc>, window_params = [{transform_indices = @transform_0, window_bounds = array<i64: 1, 8, 16>}, {pipeline_mode = #tpu.pipeline_mode<synchronous>, transform_indices = @transform_1, window_bounds = array<i64: 8, 32>}, {pipeline_mode = #tpu.pipeline_mode<synchronous>, transform_indices = @transform_2, window_bounds = array<i64: 16, 32>}, {pipeline_mode = #tpu.pipeline_mode<synchronous>, transform_indices = @transform_3, window_bounds = array<i64: 1, 32>}, {pipeline_mode = #tpu.pipeline_mode<synchronous>, transform_indices = @transform_4, window_bounds = array<i64: 2, 4, 32, 8>}, {pipeline_mode = #tpu.pipeline_mode<synchronous>, transform_indices = @transform_5, window_bounds = array<i64: 2, 4, 1, 8>}, {pipeline_mode = #tpu.pipeline_mode<synchronous>, transform_indices = @transform_6, window_bounds = array<i64: 2, 4, 32, 8>}, {pipeline_mode = #tpu.pipeline_mode<synchronous>, transform_indices = @transform_7, window_bounds = array<i64: 2, 4, 1, 8>}, {pipeline_mode = #tpu.pipeline_mode<synchronous>, transform_indices = @transform_8, window_bounds = array<i64: 2, 4, 32, 8>}, {pipeline_mode = #tpu.pipeline_mode<synchronous>, transform_indices = @transform_9, window_bounds = array<i64: 2, 4, 1, 8>}, {pipeline_mode = #tpu.pipeline_mode<synchronous>, transform_indices = @transform_10, window_bounds = array<i64: 2, 4, 8, 32>}, {pipeline_mode = #tpu.pipeline_mode<synchronous>, transform_indices = @transform_11, window_bounds = array<i64: 2, 1, 32>}, {pipeline_mode = #tpu.pipeline_mode<synchronous>, transform_indices = @transform_12, window_bounds = array<i64: 2, 32, 128>}, {pipeline_mode = #tpu.pipeline_mode<synchronous>, transform_indices = @transform_13, window_bounds = array<i64: 2, 1, 128>}, {pipeline_mode = #tpu.pipeline_mode<synchronous>, transform_indices = @transform_14, window_bounds = array<i64: 2, 128, 32>}, {pipeline_mode = #tpu.pipeline_mode<synchronous>, transform_indices = @transform_15, window_bounds = array<i64: 2, 1, 32>}, {pipeline_mode = #tpu.pipeline_mode<synchronous>, transform_indices = @transform_16, window_bounds = array<i64: 2, 1, 32>}, {pipeline_mode = #tpu.pipeline_mode<synchronous>, transform_indices = @transform_17, window_bounds = array<i64: 2, 1, 32>}, {pipeline_mode = #tpu.pipeline_mode<synchronous>, transform_indices = @transform_18, window_bounds = array<i64: 2, 1, 32>}, {pipeline_mode = #tpu.pipeline_mode<synchronous>, transform_indices = @transform_19, window_bounds = array<i64: 2, 1, 32>}, {pipeline_mode = #tpu.pipeline_mode<synchronous>, transform_indices = @transform_20, window_bounds = array<i64: 32, 2>}, {pipeline_mode = #tpu.pipeline_mode<synchronous>, transform_indices = @transform_21, window_bounds = array<i64: 1, 2>}, {transform_indices = @transform_22, window_bounds = array<i64: 1, 8, 2>}]} {
    %c0 = arith.constant 0 : index
    %c0_0 = arith.constant 0 : index
    %c0_1 = arith.constant 0 : index
    %0 = vector.load %arg1[%c0, %c0_0, %c0_1] : memref<1x8x16xf32, #tpu.memory_space<vmem>>, vector<1x8x16xf32>
    %1 = vector.shape_cast %0 : vector<1x8x16xf32> to vector<8x16xf32>
    %c0_2 = arith.constant 0 : index
    %c0_3 = arith.constant 0 : index
    %2 = vector.load %arg3[%c0_2, %c0_3] : memref<16x32xf32, #tpu.memory_space<vmem>>, vector<16x32xf32>
    %cst = arith.constant dense<0.000000e+00> : vector<8x32xf32>
    %3 = tpu.matmul %1, %2, %cst {dimension_numbers = #tpu.dot_dimension_numbers<[1], [0], [0], [1], [0, 0, 1, 1], [], []>} : vector<8x16xf32>, vector<16x32xf32>, vector<8x32xf32> -> vector<8x32xf32>
    %c0_4 = arith.constant 0 : index
    %c0_5 = arith.constant 0 : index
    %4 = vector.load %arg4[%c0_4, %c0_5] : memref<1x32xf32, #tpu.memory_space<vmem>>, vector<1x32xf32>
    %5 = vector.broadcast %4 : vector<1x32xf32> to vector<8x32xf32>
    %6 = arith.addf %3, %5 : vector<8x32xf32>
    %c0_6 = arith.constant 0 : index
    %c0_7 = arith.constant 0 : index
    %7 = vector.load %arg2[%c0_6, %c0_7] : memref<8x32xf32, #tpu.memory_space<vmem>>, vector<8x32xf32>
    %8 = arith.addf %6, %7 : vector<8x32xf32>
    %cst_8 = arith.constant 0.000000e+00 : f32
    %9 = vector.broadcast %cst_8 : f32 to vector<8x32xf32>
    %c0_9 = arith.constant 0 : index
    %c0_10 = arith.constant 0 : index
    %c0_11 = arith.constant 0 : index
    %c0_12 = arith.constant 0 : index
    %10 = vector.load %arg5[%c0_9, %c0_10, %c0_11, %c0_12] : memref<2x4x32x8xf32, #tpu.memory_space<vmem>>, vector<1x1x32x8xf32>
    %11 = vector.shape_cast %10 : vector<1x1x32x8xf32> to vector<32x8xf32>
    %cst_13 = arith.constant dense<0.000000e+00> : vector<8x8xf32>
    %12 = tpu.matmul %8, %11, %cst_13 {dimension_numbers = #tpu.dot_dimension_numbers<[1], [0], [0], [1], [0, 0, 1, 1], [], []>} : vector<8x32xf32>, vector<32x8xf32>, vector<8x8xf32> -> vector<8x8xf32>
    %c0_14 = arith.constant 0 : index
    %c0_15 = arith.constant 0 : index
    %c0_16 = arith.constant 0 : index
    %c0_17 = arith.constant 0 : index
    %13 = vector.load %arg6[%c0_14, %c0_15, %c0_16, %c0_17] : memref<2x4x1x8xf32, #tpu.memory_space<vmem>>, vector<1x1x1x8xf32>
    %14 = vector.shape_cast %13 : vector<1x1x1x8xf32> to vector<1x8xf32>
    %15 = vector.broadcast %14 : vector<1x8xf32> to vector<8x8xf32>
    %16 = arith.addf %12, %15 : vector<8x8xf32>
    %c0_18 = arith.constant 0 : index
    %c0_19 = arith.constant 0 : index
    %c0_20 = arith.constant 0 : index
    %c0_21 = arith.constant 0 : index
    %17 = vector.load %arg7[%c0_18, %c0_19, %c0_20, %c0_21] : memref<2x4x32x8xf32, #tpu.memory_space<vmem>>, vector<1x1x32x8xf32>
    %18 = vector.shape_cast %17 : vector<1x1x32x8xf32> to vector<32x8xf32>
    %cst_22 = arith.constant dense<0.000000e+00> : vector<8x8xf32>
    %19 = tpu.matmul %8, %18, %cst_22 {dimension_numbers = #tpu.dot_dimension_numbers<[1], [0], [0], [1], [0, 0, 1, 1], [], []>} : vector<8x32xf32>, vector<32x8xf32>, vector<8x8xf32> -> vector<8x8xf32>
    %c0_23 = arith.constant 0 : index
    %c0_24 = arith.constant 0 : index
    %c0_25 = arith.constant 0 : index
    %c0_26 = arith.constant 0 : index
    %20 = vector.load %arg8[%c0_23, %c0_24, %c0_25, %c0_26] : memref<2x4x1x8xf32, #tpu.memory_space<vmem>>, vector<1x1x1x8xf32>
    %21 = vector.shape_cast %20 : vector<1x1x1x8xf32> to vector<1x8xf32>
    %22 = vector.broadcast %21 : vector<1x8xf32> to vector<8x8xf32>
    %23 = arith.addf %19, %22 : vector<8x8xf32>
    %c0_27 = arith.constant 0 : index
    %c0_28 = arith.constant 0 : index
    %c0_29 = arith.constant 0 : index
    %c0_30 = arith.constant 0 : index
    %24 = vector.load %arg9[%c0_27, %c0_28, %c0_29, %c0_30] : memref<2x4x32x8xf32, #tpu.memory_space<vmem>>, vector<1x1x32x8xf32>
    %25 = vector.shape_cast %24 : vector<1x1x32x8xf32> to vector<32x8xf32>
    %cst_31 = arith.constant dense<0.000000e+00> : vector<8x8xf32>
    %26 = tpu.matmul %8, %25, %cst_31 {dimension_numbers = #tpu.dot_dimension_numbers<[1], [0], [0], [1], [0, 0, 1, 1], [], []>} : vector<8x32xf32>, vector<32x8xf32>, vector<8x8xf32> -> vector<8x8xf32>
    %c0_32 = arith.constant 0 : index
    %c0_33 = arith.constant 0 : index
    %c0_34 = arith.constant 0 : index
    %c0_35 = arith.constant 0 : index
    %27 = vector.load %arg10[%c0_32, %c0_33, %c0_34, %c0_35] : memref<2x4x1x8xf32, #tpu.memory_space<vmem>>, vector<1x1x1x8xf32>
    %28 = vector.shape_cast %27 : vector<1x1x1x8xf32> to vector<1x8xf32>
    %29 = vector.broadcast %28 : vector<1x8xf32> to vector<8x8xf32>
    %30 = arith.addf %26, %29 : vector<8x8xf32>
    %cst_36 = arith.constant dense<0.000000e+00> : vector<8x8xf32>
    %31 = tpu.matmul %16, %23, %cst_36 {dimension_numbers = #tpu.dot_dimension_numbers<[1], [1], [0], [0], [0, 0, 1, 0], [], []>} : vector<8x8xf32>, vector<8x8xf32>, vector<8x8xf32> -> vector<8x8xf32>
    %cst_37 = arith.constant 0.353553385 : f32
    %32 = vector.broadcast %cst_37 : f32 to vector<8x8xf32>
    %33 = arith.mulf %31, %32 : vector<8x8xf32>
    %cst_38 = arith.constant dense<0xFF800000> : vector<8xf32>
    %34 = vector.multi_reduction <maximumf>, %33, %cst_38 [1] : vector<8x8xf32> to vector<8xf32>
    %35 = vector.shape_cast %34 : vector<8xf32> to vector<8x1xf32>
    %36 = vector.broadcast %35 : vector<8x1xf32> to vector<8x8xf32>
    %37 = arith.subf %33, %36 : vector<8x8xf32>
    %38 = math.exp %37 : vector<8x8xf32>
    %cst_39 = arith.constant dense<0.000000e+00> : vector<8xf32>
    %39 = vector.multi_reduction <add>, %38, %cst_39 [1] : vector<8x8xf32> to vector<8xf32>
    %40 = vector.shape_cast %39 : vector<8xf32> to vector<8x1xf32>
    %41 = tpu.reciprocal %40 {approx = true} : vector<8x1xf32> -> vector<8x1xf32>
    %42 = arith.mulf %40, %41 : vector<8x1xf32>
    %cst_40 = arith.constant 2.000000e+00 : f32
    %43 = vector.broadcast %cst_40 : f32 to vector<8x1xf32>
    %44 = arith.subf %43, %42 : vector<8x1xf32>
    %45 = arith.mulf %41, %44 : vector<8x1xf32>
    %46 = vector.broadcast %45 : vector<8x1xf32> to vector<8x8xf32>
    %47 = arith.mulf %38, %46 : vector<8x8xf32>
    %cst_41 = arith.constant dense<0.000000e+00> : vector<8x8xf32>
    %48 = tpu.matmul %47, %30, %cst_41 {dimension_numbers = #tpu.dot_dimension_numbers<[1], [0], [0], [1], [0, 0, 1, 1], [], []>} : vector<8x8xf32>, vector<8x8xf32>, vector<8x8xf32> -> vector<8x8xf32>
    %c0_42 = arith.constant 0 : index
    %c0_43 = arith.constant 0 : index
    %c0_44 = arith.constant 0 : index
    %c0_45 = arith.constant 0 : index
    %49 = vector.load %arg11[%c0_42, %c0_43, %c0_44, %c0_45] : memref<2x4x8x32xf32, #tpu.memory_space<vmem>>, vector<1x1x8x32xf32>
    %50 = vector.shape_cast %49 : vector<1x1x8x32xf32> to vector<8x32xf32>
    %cst_46 = arith.constant dense<0.000000e+00> : vector<8x32xf32>
    %51 = tpu.matmul %48, %50, %cst_46 {dimension_numbers = #tpu.dot_dimension_numbers<[1], [0], [0], [1], [0, 0, 1, 1], [], []>} : vector<8x8xf32>, vector<8x32xf32>, vector<8x32xf32> -> vector<8x32xf32>
    %52 = arith.addf %9, %51 : vector<8x32xf32>
    %c0_47 = arith.constant 0 : index
    %c1 = arith.constant 1 : index
    %c0_48 = arith.constant 0 : index
    %c0_49 = arith.constant 0 : index
    %53 = vector.load %arg5[%c0_47, %c1, %c0_48, %c0_49] : memref<2x4x32x8xf32, #tpu.memory_space<vmem>>, vector<1x1x32x8xf32>
    %54 = vector.shape_cast %53 : vector<1x1x32x8xf32> to vector<32x8xf32>
    %cst_50 = arith.constant dense<0.000000e+00> : vector<8x8xf32>
    %55 = tpu.matmul %8, %54, %cst_50 {dimension_numbers = #tpu.dot_dimension_numbers<[1], [0], [0], [1], [0, 0, 1, 1], [], []>} : vector<8x32xf32>, vector<32x8xf32>, vector<8x8xf32> -> vector<8x8xf32>
    %c0_51 = arith.constant 0 : index
    %c1_52 = arith.constant 1 : index
    %c0_53 = arith.constant 0 : index
    %c0_54 = arith.constant 0 : index
    %56 = vector.load %arg6[%c0_51, %c1_52, %c0_53, %c0_54] : memref<2x4x1x8xf32, #tpu.memory_space<vmem>>, vector<1x1x1x8xf32>
    %57 = vector.shape_cast %56 : vector<1x1x1x8xf32> to vector<1x8xf32>
    %58 = vector.broadcast %57 : vector<1x8xf32> to vector<8x8xf32>
    %59 = arith.addf %55, %58 : vector<8x8xf32>
    %c0_55 = arith.constant 0 : index
    %c1_56 = arith.constant 1 : index
    %c0_57 = arith.constant 0 : index
    %c0_58 = arith.constant 0 : index
    %60 = vector.load %arg7[%c0_55, %c1_56, %c0_57, %c0_58] : memref<2x4x32x8xf32, #tpu.memory_space<vmem>>, vector<1x1x32x8xf32>
    %61 = vector.shape_cast %60 : vector<1x1x32x8xf32> to vector<32x8xf32>
    %cst_59 = arith.constant dense<0.000000e+00> : vector<8x8xf32>
    %62 = tpu.matmul %8, %61, %cst_59 {dimension_numbers = #tpu.dot_dimension_numbers<[1], [0], [0], [1], [0, 0, 1, 1], [], []>} : vector<8x32xf32>, vector<32x8xf32>, vector<8x8xf32> -> vector<8x8xf32>
    %c0_60 = arith.constant 0 : index
    %c1_61 = arith.constant 1 : index
    %c0_62 = arith.constant 0 : index
    %c0_63 = arith.constant 0 : index
    %63 = vector.load %arg8[%c0_60, %c1_61, %c0_62, %c0_63] : memref<2x4x1x8xf32, #tpu.memory_space<vmem>>, vector<1x1x1x8xf32>
    %64 = vector.shape_cast %63 : vector<1x1x1x8xf32> to vector<1x8xf32>
    %65 = vector.broadcast %64 : vector<1x8xf32> to vector<8x8xf32>
    %66 = arith.addf %62, %65 : vector<8x8xf32>
    %c0_64 = arith.constant 0 : index
    %c1_65 = arith.constant 1 : index
    %c0_66 = arith.constant 0 : index
    %c0_67 = arith.constant 0 : index
    %67 = vector.load %arg9[%c0_64, %c1_65, %c0_66, %c0_67] : memref<2x4x32x8xf32, #tpu.memory_space<vmem>>, vector<1x1x32x8xf32>
    %68 = vector.shape_cast %67 : vector<1x1x32x8xf32> to vector<32x8xf32>
    %cst_68 = arith.constant dense<0.000000e+00> : vector<8x8xf32>
    %69 = tpu.matmul %8, %68, %cst_68 {dimension_numbers = #tpu.dot_dimension_numbers<[1], [0], [0], [1], [0, 0, 1, 1], [], []>} : vector<8x32xf32>, vector<32x8xf32>, vector<8x8xf32> -> vector<8x8xf32>
    %c0_69 = arith.constant 0 : index
    %c1_70 = arith.constant 1 : index
    %c0_71 = arith.constant 0 : index
    %c0_72 = arith.constant 0 : index
    %70 = vector.load %arg10[%c0_69, %c1_70, %c0_71, %c0_72] : memref<2x4x1x8xf32, #tpu.memory_space<vmem>>, vector<1x1x1x8xf32>
    %71 = vector.shape_cast %70 : vector<1x1x1x8xf32> to vector<1x8xf32>
    %72 = vector.broadcast %71 : vector<1x8xf32> to vector<8x8xf32>
    %73 = arith.addf %69, %72 : vector<8x8xf32>
    %cst_73 = arith.constant dense<0.000000e+00> : vector<8x8xf32>
    %74 = tpu.matmul %59, %66, %cst_73 {dimension_numbers = #tpu.dot_dimension_numbers<[1], [1], [0], [0], [0, 0, 1, 0], [], []>} : vector<8x8xf32>, vector<8x8xf32>, vector<8x8xf32> -> vector<8x8xf32>
    %cst_74 = arith.constant 0.353553385 : f32
    %75 = vector.broadcast %cst_74 : f32 to vector<8x8xf32>
    %76 = arith.mulf %74, %75 : vector<8x8xf32>
    %cst_75 = arith.constant dense<0xFF800000> : vector<8xf32>
    %77 = vector.multi_reduction <maximumf>, %76, %cst_75 [1] : vector<8x8xf32> to vector<8xf32>
    %78 = vector.shape_cast %77 : vector<8xf32> to vector<8x1xf32>
    %79 = vector.broadcast %78 : vector<8x1xf32> to vector<8x8xf32>
    %80 = arith.subf %76, %79 : vector<8x8xf32>
    %81 = math.exp %80 : vector<8x8xf32>
    %cst_76 = arith.constant dense<0.000000e+00> : vector<8xf32>
    %82 = vector.multi_reduction <add>, %81, %cst_76 [1] : vector<8x8xf32> to vector<8xf32>
    %83 = vector.shape_cast %82 : vector<8xf32> to vector<8x1xf32>
    %84 = tpu.reciprocal %83 {approx = true} : vector<8x1xf32> -> vector<8x1xf32>
    %85 = arith.mulf %83, %84 : vector<8x1xf32>
    %cst_77 = arith.constant 2.000000e+00 : f32
    %86 = vector.broadcast %cst_77 : f32 to vector<8x1xf32>
    %87 = arith.subf %86, %85 : vector<8x1xf32>
    %88 = arith.mulf %84, %87 : vector<8x1xf32>
    %89 = vector.broadcast %88 : vector<8x1xf32> to vector<8x8xf32>
    %90 = arith.mulf %81, %89 : vector<8x8xf32>
    %cst_78 = arith.constant dense<0.000000e+00> : vector<8x8xf32>
    %91 = tpu.matmul %90, %73, %cst_78 {dimension_numbers = #tpu.dot_dimension_numbers<[1], [0], [0], [1], [0, 0, 1, 1], [], []>} : vector<8x8xf32>, vector<8x8xf32>, vector<8x8xf32> -> vector<8x8xf32>
    %c0_79 = arith.constant 0 : index
    %c1_80 = arith.constant 1 : index
    %c0_81 = arith.constant 0 : index
    %c0_82 = arith.constant 0 : index
    %92 = vector.load %arg11[%c0_79, %c1_80, %c0_81, %c0_82] : memref<2x4x8x32xf32, #tpu.memory_space<vmem>>, vector<1x1x8x32xf32>
    %93 = vector.shape_cast %92 : vector<1x1x8x32xf32> to vector<8x32xf32>
    %cst_83 = arith.constant dense<0.000000e+00> : vector<8x32xf32>
    %94 = tpu.matmul %91, %93, %cst_83 {dimension_numbers = #tpu.dot_dimension_numbers<[1], [0], [0], [1], [0, 0, 1, 1], [], []>} : vector<8x8xf32>, vector<8x32xf32>, vector<8x32xf32> -> vector<8x32xf32>
    %95 = arith.addf %52, %94 : vector<8x32xf32>
    %c0_84 = arith.constant 0 : index
    %c2 = arith.constant 2 : index
    %c0_85 = arith.constant 0 : index
    %c0_86 = arith.constant 0 : index
    %96 = vector.load %arg5[%c0_84, %c2, %c0_85, %c0_86] : memref<2x4x32x8xf32, #tpu.memory_space<vmem>>, vector<1x1x32x8xf32>
    %97 = vector.shape_cast %96 : vector<1x1x32x8xf32> to vector<32x8xf32>
    %cst_87 = arith.constant dense<0.000000e+00> : vector<8x8xf32>
    %98 = tpu.matmul %8, %97, %cst_87 {dimension_numbers = #tpu.dot_dimension_numbers<[1], [0], [0], [1], [0, 0, 1, 1], [], []>} : vector<8x32xf32>, vector<32x8xf32>, vector<8x8xf32> -> vector<8x8xf32>
    %c0_88 = arith.constant 0 : index
    %c2_89 = arith.constant 2 : index
    %c0_90 = arith.constant 0 : index
    %c0_91 = arith.constant 0 : index
    %99 = vector.load %arg6[%c0_88, %c2_89, %c0_90, %c0_91] : memref<2x4x1x8xf32, #tpu.memory_space<vmem>>, vector<1x1x1x8xf32>
    %100 = vector.shape_cast %99 : vector<1x1x1x8xf32> to vector<1x8xf32>
    %101 = vector.broadcast %100 : vector<1x8xf32> to vector<8x8xf32>
    %102 = arith.addf %98, %101 : vector<8x8xf32>
    %c0_92 = arith.constant 0 : index
    %c2_93 = arith.constant 2 : index
    %c0_94 = arith.constant 0 : index
    %c0_95 = arith.constant 0 : index
    %103 = vector.load %arg7[%c0_92, %c2_93, %c0_94, %c0_95] : memref<2x4x32x8xf32, #tpu.memory_space<vmem>>, vector<1x1x32x8xf32>
    %104 = vector.shape_cast %103 : vector<1x1x32x8xf32> to vector<32x8xf32>
    %cst_96 = arith.constant dense<0.000000e+00> : vector<8x8xf32>
    %105 = tpu.matmul %8, %104, %cst_96 {dimension_numbers = #tpu.dot_dimension_numbers<[1], [0], [0], [1], [0, 0, 1, 1], [], []>} : vector<8x32xf32>, vector<32x8xf32>, vector<8x8xf32> -> vector<8x8xf32>
    %c0_97 = arith.constant 0 : index
    %c2_98 = arith.constant 2 : index
    %c0_99 = arith.constant 0 : index
    %c0_100 = arith.constant 0 : index
    %106 = vector.load %arg8[%c0_97, %c2_98, %c0_99, %c0_100] : memref<2x4x1x8xf32, #tpu.memory_space<vmem>>, vector<1x1x1x8xf32>
    %107 = vector.shape_cast %106 : vector<1x1x1x8xf32> to vector<1x8xf32>
    %108 = vector.broadcast %107 : vector<1x8xf32> to vector<8x8xf32>
    %109 = arith.addf %105, %108 : vector<8x8xf32>
    %c0_101 = arith.constant 0 : index
    %c2_102 = arith.constant 2 : index
    %c0_103 = arith.constant 0 : index
    %c0_104 = arith.constant 0 : index
    %110 = vector.load %arg9[%c0_101, %c2_102, %c0_103, %c0_104] : memref<2x4x32x8xf32, #tpu.memory_space<vmem>>, vector<1x1x32x8xf32>
    %111 = vector.shape_cast %110 : vector<1x1x32x8xf32> to vector<32x8xf32>
    %cst_105 = arith.constant dense<0.000000e+00> : vector<8x8xf32>
    %112 = tpu.matmul %8, %111, %cst_105 {dimension_numbers = #tpu.dot_dimension_numbers<[1], [0], [0], [1], [0, 0, 1, 1], [], []>} : vector<8x32xf32>, vector<32x8xf32>, vector<8x8xf32> -> vector<8x8xf32>
    %c0_106 = arith.constant 0 : index
    %c2_107 = arith.constant 2 : index
    %c0_108 = arith.constant 0 : index
    %c0_109 = arith.constant 0 : index
    %113 = vector.load %arg10[%c0_106, %c2_107, %c0_108, %c0_109] : memref<2x4x1x8xf32, #tpu.memory_space<vmem>>, vector<1x1x1x8xf32>
    %114 = vector.shape_cast %113 : vector<1x1x1x8xf32> to vector<1x8xf32>
    %115 = vector.broadcast %114 : vector<1x8xf32> to vector<8x8xf32>
    %116 = arith.addf %112, %115 : vector<8x8xf32>
    %cst_110 = arith.constant dense<0.000000e+00> : vector<8x8xf32>
    %117 = tpu.matmul %102, %109, %cst_110 {dimension_numbers = #tpu.dot_dimension_numbers<[1], [1], [0], [0], [0, 0, 1, 0], [], []>} : vector<8x8xf32>, vector<8x8xf32>, vector<8x8xf32> -> vector<8x8xf32>
    %cst_111 = arith.constant 0.353553385 : f32
    %118 = vector.broadcast %cst_111 : f32 to vector<8x8xf32>
    %119 = arith.mulf %117, %118 : vector<8x8xf32>
    %cst_112 = arith.constant dense<0xFF800000> : vector<8xf32>
    %120 = vector.multi_reduction <maximumf>, %119, %cst_112 [1] : vector<8x8xf32> to vector<8xf32>
    %121 = vector.shape_cast %120 : vector<8xf32> to vector<8x1xf32>
    %122 = vector.broadcast %121 : vector<8x1xf32> to vector<8x8xf32>
    %123 = arith.subf %119, %122 : vector<8x8xf32>
    %124 = math.exp %123 : vector<8x8xf32>
    %cst_113 = arith.constant dense<0.000000e+00> : vector<8xf32>
    %125 = vector.multi_reduction <add>, %124, %cst_113 [1] : vector<8x8xf32> to vector<8xf32>
    %126 = vector.shape_cast %125 : vector<8xf32> to vector<8x1xf32>
    %127 = tpu.reciprocal %126 {approx = true} : vector<8x1xf32> -> vector<8x1xf32>
    %128 = arith.mulf %126, %127 : vector<8x1xf32>
    %cst_114 = arith.constant 2.000000e+00 : f32
    %129 = vector.broadcast %cst_114 : f32 to vector<8x1xf32>
    %130 = arith.subf %129, %128 : vector<8x1xf32>
    %131 = arith.mulf %127, %130 : vector<8x1xf32>
    %132 = vector.broadcast %131 : vector<8x1xf32> to vector<8x8xf32>
    %133 = arith.mulf %124, %132 : vector<8x8xf32>
    %cst_115 = arith.constant dense<0.000000e+00> : vector<8x8xf32>
    %134 = tpu.matmul %133, %116, %cst_115 {dimension_numbers = #tpu.dot_dimension_numbers<[1], [0], [0], [1], [0, 0, 1, 1], [], []>} : vector<8x8xf32>, vector<8x8xf32>, vector<8x8xf32> -> vector<8x8xf32>
    %c0_116 = arith.constant 0 : index
    %c2_117 = arith.constant 2 : index
    %c0_118 = arith.constant 0 : index
    %c0_119 = arith.constant 0 : index
    %135 = vector.load %arg11[%c0_116, %c2_117, %c0_118, %c0_119] : memref<2x4x8x32xf32, #tpu.memory_space<vmem>>, vector<1x1x8x32xf32>
    %136 = vector.shape_cast %135 : vector<1x1x8x32xf32> to vector<8x32xf32>
    %cst_120 = arith.constant dense<0.000000e+00> : vector<8x32xf32>
    %137 = tpu.matmul %134, %136, %cst_120 {dimension_numbers = #tpu.dot_dimension_numbers<[1], [0], [0], [1], [0, 0, 1, 1], [], []>} : vector<8x8xf32>, vector<8x32xf32>, vector<8x32xf32> -> vector<8x32xf32>
    %138 = arith.addf %95, %137 : vector<8x32xf32>
    %c0_121 = arith.constant 0 : index
    %c3 = arith.constant 3 : index
    %c0_122 = arith.constant 0 : index
    %c0_123 = arith.constant 0 : index
    %139 = vector.load %arg5[%c0_121, %c3, %c0_122, %c0_123] : memref<2x4x32x8xf32, #tpu.memory_space<vmem>>, vector<1x1x32x8xf32>
    %140 = vector.shape_cast %139 : vector<1x1x32x8xf32> to vector<32x8xf32>
    %cst_124 = arith.constant dense<0.000000e+00> : vector<8x8xf32>
    %141 = tpu.matmul %8, %140, %cst_124 {dimension_numbers = #tpu.dot_dimension_numbers<[1], [0], [0], [1], [0, 0, 1, 1], [], []>} : vector<8x32xf32>, vector<32x8xf32>, vector<8x8xf32> -> vector<8x8xf32>
    %c0_125 = arith.constant 0 : index
    %c3_126 = arith.constant 3 : index
    %c0_127 = arith.constant 0 : index
    %c0_128 = arith.constant 0 : index
    %142 = vector.load %arg6[%c0_125, %c3_126, %c0_127, %c0_128] : memref<2x4x1x8xf32, #tpu.memory_space<vmem>>, vector<1x1x1x8xf32>
    %143 = vector.shape_cast %142 : vector<1x1x1x8xf32> to vector<1x8xf32>
    %144 = vector.broadcast %143 : vector<1x8xf32> to vector<8x8xf32>
    %145 = arith.addf %141, %144 : vector<8x8xf32>
    %c0_129 = arith.constant 0 : index
    %c3_130 = arith.constant 3 : index
    %c0_131 = arith.constant 0 : index
    %c0_132 = arith.constant 0 : index
    %146 = vector.load %arg7[%c0_129, %c3_130, %c0_131, %c0_132] : memref<2x4x32x8xf32, #tpu.memory_space<vmem>>, vector<1x1x32x8xf32>
    %147 = vector.shape_cast %146 : vector<1x1x32x8xf32> to vector<32x8xf32>
    %cst_133 = arith.constant dense<0.000000e+00> : vector<8x8xf32>
    %148 = tpu.matmul %8, %147, %cst_133 {dimension_numbers = #tpu.dot_dimension_numbers<[1], [0], [0], [1], [0, 0, 1, 1], [], []>} : vector<8x32xf32>, vector<32x8xf32>, vector<8x8xf32> -> vector<8x8xf32>
    %c0_134 = arith.constant 0 : index
    %c3_135 = arith.constant 3 : index
    %c0_136 = arith.constant 0 : index
    %c0_137 = arith.constant 0 : index
    %149 = vector.load %arg8[%c0_134, %c3_135, %c0_136, %c0_137] : memref<2x4x1x8xf32, #tpu.memory_space<vmem>>, vector<1x1x1x8xf32>
    %150 = vector.shape_cast %149 : vector<1x1x1x8xf32> to vector<1x8xf32>
    %151 = vector.broadcast %150 : vector<1x8xf32> to vector<8x8xf32>
    %152 = arith.addf %148, %151 : vector<8x8xf32>
    %c0_138 = arith.constant 0 : index
    %c3_139 = arith.constant 3 : index
    %c0_140 = arith.constant 0 : index
    %c0_141 = arith.constant 0 : index
    %153 = vector.load %arg9[%c0_138, %c3_139, %c0_140, %c0_141] : memref<2x4x32x8xf32, #tpu.memory_space<vmem>>, vector<1x1x32x8xf32>
    %154 = vector.shape_cast %153 : vector<1x1x32x8xf32> to vector<32x8xf32>
    %cst_142 = arith.constant dense<0.000000e+00> : vector<8x8xf32>
    %155 = tpu.matmul %8, %154, %cst_142 {dimension_numbers = #tpu.dot_dimension_numbers<[1], [0], [0], [1], [0, 0, 1, 1], [], []>} : vector<8x32xf32>, vector<32x8xf32>, vector<8x8xf32> -> vector<8x8xf32>
    %c0_143 = arith.constant 0 : index
    %c3_144 = arith.constant 3 : index
    %c0_145 = arith.constant 0 : index
    %c0_146 = arith.constant 0 : index
    %156 = vector.load %arg10[%c0_143, %c3_144, %c0_145, %c0_146] : memref<2x4x1x8xf32, #tpu.memory_space<vmem>>, vector<1x1x1x8xf32>
    %157 = vector.shape_cast %156 : vector<1x1x1x8xf32> to vector<1x8xf32>
    %158 = vector.broadcast %157 : vector<1x8xf32> to vector<8x8xf32>
    %159 = arith.addf %155, %158 : vector<8x8xf32>
    %cst_147 = arith.constant dense<0.000000e+00> : vector<8x8xf32>
    %160 = tpu.matmul %145, %152, %cst_147 {dimension_numbers = #tpu.dot_dimension_numbers<[1], [1], [0], [0], [0, 0, 1, 0], [], []>} : vector<8x8xf32>, vector<8x8xf32>, vector<8x8xf32> -> vector<8x8xf32>
    %cst_148 = arith.constant 0.353553385 : f32
    %161 = vector.broadcast %cst_148 : f32 to vector<8x8xf32>
    %162 = arith.mulf %160, %161 : vector<8x8xf32>
    %cst_149 = arith.constant dense<0xFF800000> : vector<8xf32>
    %163 = vector.multi_reduction <maximumf>, %162, %cst_149 [1] : vector<8x8xf32> to vector<8xf32>
    %164 = vector.shape_cast %163 : vector<8xf32> to vector<8x1xf32>
    %165 = vector.broadcast %164 : vector<8x1xf32> to vector<8x8xf32>
    %166 = arith.subf %162, %165 : vector<8x8xf32>
    %167 = math.exp %166 : vector<8x8xf32>
    %cst_150 = arith.constant dense<0.000000e+00> : vector<8xf32>
    %168 = vector.multi_reduction <add>, %167, %cst_150 [1] : vector<8x8xf32> to vector<8xf32>
    %169 = vector.shape_cast %168 : vector<8xf32> to vector<8x1xf32>
    %170 = tpu.reciprocal %169 {approx = true} : vector<8x1xf32> -> vector<8x1xf32>
    %171 = arith.mulf %169, %170 : vector<8x1xf32>
    %cst_151 = arith.constant 2.000000e+00 : f32
    %172 = vector.broadcast %cst_151 : f32 to vector<8x1xf32>
    %173 = arith.subf %172, %171 : vector<8x1xf32>
    %174 = arith.mulf %170, %173 : vector<8x1xf32>
    %175 = vector.broadcast %174 : vector<8x1xf32> to vector<8x8xf32>
    %176 = arith.mulf %167, %175 : vector<8x8xf32>
    %cst_152 = arith.constant dense<0.000000e+00> : vector<8x8xf32>
    %177 = tpu.matmul %176, %159, %cst_152 {dimension_numbers = #tpu.dot_dimension_numbers<[1], [0], [0], [1], [0, 0, 1, 1], [], []>} : vector<8x8xf32>, vector<8x8xf32>, vector<8x8xf32> -> vector<8x8xf32>
    %c0_153 = arith.constant 0 : index
    %c3_154 = arith.constant 3 : index
    %c0_155 = arith.constant 0 : index
    %c0_156 = arith.constant 0 : index
    %178 = vector.load %arg11[%c0_153, %c3_154, %c0_155, %c0_156] : memref<2x4x8x32xf32, #tpu.memory_space<vmem>>, vector<1x1x8x32xf32>
    %179 = vector.shape_cast %178 : vector<1x1x8x32xf32> to vector<8x32xf32>
    %cst_157 = arith.constant dense<0.000000e+00> : vector<8x32xf32>
    %180 = tpu.matmul %177, %179, %cst_157 {dimension_numbers = #tpu.dot_dimension_numbers<[1], [0], [0], [1], [0, 0, 1, 1], [], []>} : vector<8x8xf32>, vector<8x32xf32>, vector<8x32xf32> -> vector<8x32xf32>
    %181 = arith.addf %138, %180 : vector<8x32xf32>
    %c0_158 = arith.constant 0 : index
    %c0_159 = arith.constant 0 : index
    %c0_160 = arith.constant 0 : index
    %182 = vector.load %arg12[%c0_158, %c0_159, %c0_160] : memref<2x1x32xf32, #tpu.memory_space<vmem>>, vector<1x1x32xf32>
    %183 = vector.shape_cast %182 : vector<1x1x32xf32> to vector<1x32xf32>
    %184 = vector.broadcast %183 : vector<1x32xf32> to vector<8x32xf32>
    %185 = arith.addf %181, %184 : vector<8x32xf32>
    %186 = arith.addf %8, %185 : vector<8x32xf32>
    %c0_161 = arith.constant 0 : index
    %c0_162 = arith.constant 0 : index
    %c0_163 = arith.constant 0 : index
    %187 = vector.load %arg17[%c0_161, %c0_162, %c0_163] : memref<2x1x32xf32, #tpu.memory_space<vmem>>, vector<1x1x32xf32>
    %188 = vector.shape_cast %187 : vector<1x1x32xf32> to vector<1x32xf32>
    %c0_164 = arith.constant 0 : index
    %c0_165 = arith.constant 0 : index
    %c0_166 = arith.constant 0 : index
    %189 = vector.load %arg18[%c0_164, %c0_165, %c0_166] : memref<2x1x32xf32, #tpu.memory_space<vmem>>, vector<1x1x32xf32>
    %190 = vector.shape_cast %189 : vector<1x1x32xf32> to vector<1x32xf32>
    %cst_167 = arith.constant dense<0.000000e+00> : vector<8xf32>
    %191 = vector.multi_reduction <add>, %186, %cst_167 [1] : vector<8x32xf32> to vector<8xf32>
    %192 = vector.shape_cast %191 : vector<8xf32> to vector<8x1xf32>
    %cst_168 = arith.constant 3.200000e+01 : f32
    %193 = vector.broadcast %cst_168 : f32 to vector<8x1xf32>
    %194 = arith.divf %192, %193 : vector<8x1xf32>
    %195 = vector.broadcast %194 : vector<8x1xf32> to vector<8x32xf32>
    %196 = arith.subf %186, %195 : vector<8x32xf32>
    %197 = arith.mulf %196, %196 : vector<8x32xf32>
    %cst_169 = arith.constant dense<0.000000e+00> : vector<8xf32>
    %198 = vector.multi_reduction <add>, %197, %cst_169 [1] : vector<8x32xf32> to vector<8xf32>
    %199 = vector.shape_cast %198 : vector<8xf32> to vector<8x1xf32>
    %cst_170 = arith.constant 3.200000e+01 : f32
    %200 = vector.broadcast %cst_170 : f32 to vector<8x1xf32>
    %201 = arith.divf %199, %200 : vector<8x1xf32>
    %cst_171 = arith.constant 9.99999974E-6 : f32
    %202 = vector.broadcast %cst_171 : f32 to vector<8x1xf32>
    %203 = arith.addf %201, %202 : vector<8x1xf32>
    %204 = math.rsqrt %203 : vector<8x1xf32>
    %205 = vector.broadcast %204 : vector<8x1xf32> to vector<8x32xf32>
    %206 = arith.mulf %196, %205 : vector<8x32xf32>
    %207 = vector.broadcast %188 : vector<1x32xf32> to vector<8x32xf32>
    %208 = arith.mulf %206, %207 : vector<8x32xf32>
    %209 = vector.broadcast %190 : vector<1x32xf32> to vector<8x32xf32>
    %210 = arith.addf %208, %209 : vector<8x32xf32>
    %c0_172 = arith.constant 0 : index
    %c0_173 = arith.constant 0 : index
    %c0_174 = arith.constant 0 : index
    %211 = vector.load %arg13[%c0_172, %c0_173, %c0_174] : memref<2x32x128xf32, #tpu.memory_space<vmem>>, vector<1x32x128xf32>
    %212 = vector.shape_cast %211 : vector<1x32x128xf32> to vector<32x128xf32>
    %cst_175 = arith.constant dense<0.000000e+00> : vector<8x128xf32>
    %213 = tpu.matmul %210, %212, %cst_175 {dimension_numbers = #tpu.dot_dimension_numbers<[1], [0], [0], [1], [0, 0, 1, 1], [], []>} : vector<8x32xf32>, vector<32x128xf32>, vector<8x128xf32> -> vector<8x128xf32>
    %c0_176 = arith.constant 0 : index
    %c0_177 = arith.constant 0 : index
    %c0_178 = arith.constant 0 : index
    %214 = vector.load %arg14[%c0_176, %c0_177, %c0_178] : memref<2x1x128xf32, #tpu.memory_space<vmem>>, vector<1x1x128xf32>
    %215 = vector.shape_cast %214 : vector<1x1x128xf32> to vector<1x128xf32>
    %216 = vector.broadcast %215 : vector<1x128xf32> to vector<8x128xf32>
    %217 = arith.addf %213, %216 : vector<8x128xf32>
    %cst_179 = arith.constant 5.000000e-01 : f32
    %218 = vector.broadcast %cst_179 : f32 to vector<8x128xf32>
    %219 = arith.mulf %218, %217 : vector<8x128xf32>
    %cst_180 = arith.constant 0.707106769 : f32
    %220 = vector.broadcast %cst_180 : f32 to vector<8x128xf32>
    %221 = arith.mulf %217, %220 : vector<8x128xf32>
    %222 = math.absf %221 : vector<8x128xf32>
    %cst_181 = arith.constant 0.327591091 : f32
    %223 = vector.broadcast %cst_181 : f32 to vector<8x128xf32>
    %224 = arith.mulf %223, %222 : vector<8x128xf32>
    %cst_182 = arith.constant 1.000000e+00 : f32
    %225 = vector.broadcast %cst_182 : f32 to vector<8x128xf32>
    %226 = arith.addf %225, %224 : vector<8x128xf32>
    %cst_183 = arith.constant 1.000000e+00 : f32
    %227 = vector.broadcast %cst_183 : f32 to vector<8x128xf32>
    %228 = arith.divf %227, %226 : vector<8x128xf32>
    %cst_184 = arith.constant 1.06140542 : f32
    %229 = vector.broadcast %cst_184 : f32 to vector<8x128xf32>
    %230 = arith.mulf %229, %228 : vector<8x128xf32>
    %cst_185 = arith.constant -1.45315206 : f32
    %231 = vector.broadcast %cst_185 : f32 to vector<8x128xf32>
    %232 = arith.addf %230, %231 : vector<8x128xf32>
    %233 = arith.mulf %232, %228 : vector<8x128xf32>
    %cst_186 = arith.constant 1.42141378 : f32
    %234 = vector.broadcast %cst_186 : f32 to vector<8x128xf32>
    %235 = arith.addf %233, %234 : vector<8x128xf32>
    %236 = arith.mulf %235, %228 : vector<8x128xf32>
    %cst_187 = arith.constant -0.284496725 : f32
    %237 = vector.broadcast %cst_187 : f32 to vector<8x128xf32>
    %238 = arith.addf %236, %237 : vector<8x128xf32>
    %239 = arith.mulf %238, %228 : vector<8x128xf32>
    %cst_188 = arith.constant 0.254829586 : f32
    %240 = vector.broadcast %cst_188 : f32 to vector<8x128xf32>
    %241 = arith.addf %239, %240 : vector<8x128xf32>
    %242 = arith.mulf %241, %228 : vector<8x128xf32>
    %cst_189 = arith.constant 0.000000e+00 : f32
    %243 = vector.broadcast %cst_189 : f32 to vector<8x128xf32>
    %244 = arith.subf %243, %222 : vector<8x128xf32>
    %245 = arith.mulf %244, %222 : vector<8x128xf32>
    %246 = math.exp %245 : vector<8x128xf32>
    %247 = arith.mulf %242, %246 : vector<8x128xf32>
    %cst_190 = arith.constant 1.000000e+00 : f32
    %248 = vector.broadcast %cst_190 : f32 to vector<8x128xf32>
    %249 = arith.subf %248, %247 : vector<8x128xf32>
    %cst_191 = arith.constant 0.000000e+00 : f32
    %250 = vector.broadcast %cst_191 : f32 to vector<8x128xf32>
    %251 = arith.cmpf oge, %221, %250 : vector<8x128xf32>
    %cst_192 = arith.constant 0.000000e+00 : f32
    %252 = vector.broadcast %cst_192 : f32 to vector<8x128xf32>
    %253 = arith.subf %252, %249 : vector<8x128xf32>
    %254 = arith.select %251, %249, %253 : vector<8x128xi1>, vector<8x128xf32>
    %cst_193 = arith.constant 1.000000e+00 : f32
    %255 = vector.broadcast %cst_193 : f32 to vector<8x128xf32>
    %256 = arith.addf %255, %254 : vector<8x128xf32>
    %257 = arith.mulf %219, %256 : vector<8x128xf32>
    %c0_194 = arith.constant 0 : index
    %c0_195 = arith.constant 0 : index
    %c0_196 = arith.constant 0 : index
    %258 = vector.load %arg15[%c0_194, %c0_195, %c0_196] : memref<2x128x32xf32, #tpu.memory_space<vmem>>, vector<1x128x32xf32>
    %259 = vector.shape_cast %258 : vector<1x128x32xf32> to vector<128x32xf32>
    %cst_197 = arith.constant dense<0.000000e+00> : vector<8x32xf32>
    %260 = tpu.matmul %257, %259, %cst_197 {dimension_numbers = #tpu.dot_dimension_numbers<[1], [0], [0], [1], [0, 0, 1, 1], [], []>} : vector<8x128xf32>, vector<128x32xf32>, vector<8x32xf32> -> vector<8x32xf32>
    %c0_198 = arith.constant 0 : index
    %c0_199 = arith.constant 0 : index
    %c0_200 = arith.constant 0 : index
    %261 = vector.load %arg16[%c0_198, %c0_199, %c0_200] : memref<2x1x32xf32, #tpu.memory_space<vmem>>, vector<1x1x32xf32>
    %262 = vector.shape_cast %261 : vector<1x1x32xf32> to vector<1x32xf32>
    %263 = vector.broadcast %262 : vector<1x32xf32> to vector<8x32xf32>
    %264 = arith.addf %260, %263 : vector<8x32xf32>
    %265 = arith.addf %210, %264 : vector<8x32xf32>
    %c0_201 = arith.constant 0 : index
    %c0_202 = arith.constant 0 : index
    %c0_203 = arith.constant 0 : index
    %266 = vector.load %arg19[%c0_201, %c0_202, %c0_203] : memref<2x1x32xf32, #tpu.memory_space<vmem>>, vector<1x1x32xf32>
    %267 = vector.shape_cast %266 : vector<1x1x32xf32> to vector<1x32xf32>
    %c0_204 = arith.constant 0 : index
    %c0_205 = arith.constant 0 : index
    %c0_206 = arith.constant 0 : index
    %268 = vector.load %arg20[%c0_204, %c0_205, %c0_206] : memref<2x1x32xf32, #tpu.memory_space<vmem>>, vector<1x1x32xf32>
    %269 = vector.shape_cast %268 : vector<1x1x32xf32> to vector<1x32xf32>
    %cst_207 = arith.constant dense<0.000000e+00> : vector<8xf32>
    %270 = vector.multi_reduction <add>, %265, %cst_207 [1] : vector<8x32xf32> to vector<8xf32>
    %271 = vector.shape_cast %270 : vector<8xf32> to vector<8x1xf32>
    %cst_208 = arith.constant 3.200000e+01 : f32
    %272 = vector.broadcast %cst_208 : f32 to vector<8x1xf32>
    %273 = arith.divf %271, %272 : vector<8x1xf32>
    %274 = vector.broadcast %273 : vector<8x1xf32> to vector<8x32xf32>
    %275 = arith.subf %265, %274 : vector<8x32xf32>
    %276 = arith.mulf %275, %275 : vector<8x32xf32>
    %cst_209 = arith.constant dense<0.000000e+00> : vector<8xf32>
    %277 = vector.multi_reduction <add>, %276, %cst_209 [1] : vector<8x32xf32> to vector<8xf32>
    %278 = vector.shape_cast %277 : vector<8xf32> to vector<8x1xf32>
    %cst_210 = arith.constant 3.200000e+01 : f32
    %279 = vector.broadcast %cst_210 : f32 to vector<8x1xf32>
    %280 = arith.divf %278, %279 : vector<8x1xf32>
    %cst_211 = arith.constant 9.99999974E-6 : f32
    %281 = vector.broadcast %cst_211 : f32 to vector<8x1xf32>
    %282 = arith.addf %280, %281 : vector<8x1xf32>
    %283 = math.rsqrt %282 : vector<8x1xf32>
    %284 = vector.broadcast %283 : vector<8x1xf32> to vector<8x32xf32>
    %285 = arith.mulf %275, %284 : vector<8x32xf32>
    %286 = vector.broadcast %267 : vector<1x32xf32> to vector<8x32xf32>
    %287 = arith.mulf %285, %286 : vector<8x32xf32>
    %288 = vector.broadcast %269 : vector<1x32xf32> to vector<8x32xf32>
    %289 = arith.addf %287, %288 : vector<8x32xf32>
    %cst_212 = arith.constant 0.000000e+00 : f32
    %290 = vector.broadcast %cst_212 : f32 to vector<8x32xf32>
    %c1_213 = arith.constant 1 : index
    %c0_214 = arith.constant 0 : index
    %c0_215 = arith.constant 0 : index
    %c0_216 = arith.constant 0 : index
    %291 = vector.load %arg5[%c1_213, %c0_214, %c0_215, %c0_216] : memref<2x4x32x8xf32, #tpu.memory_space<vmem>>, vector<1x1x32x8xf32>
    %292 = vector.shape_cast %291 : vector<1x1x32x8xf32> to vector<32x8xf32>
    %cst_217 = arith.constant dense<0.000000e+00> : vector<8x8xf32>
    %293 = tpu.matmul %289, %292, %cst_217 {dimension_numbers = #tpu.dot_dimension_numbers<[1], [0], [0], [1], [0, 0, 1, 1], [], []>} : vector<8x32xf32>, vector<32x8xf32>, vector<8x8xf32> -> vector<8x8xf32>
    %c1_218 = arith.constant 1 : index
    %c0_219 = arith.constant 0 : index
    %c0_220 = arith.constant 0 : index
    %c0_221 = arith.constant 0 : index
    %294 = vector.load %arg6[%c1_218, %c0_219, %c0_220, %c0_221] : memref<2x4x1x8xf32, #tpu.memory_space<vmem>>, vector<1x1x1x8xf32>
    %295 = vector.shape_cast %294 : vector<1x1x1x8xf32> to vector<1x8xf32>
    %296 = vector.broadcast %295 : vector<1x8xf32> to vector<8x8xf32>
    %297 = arith.addf %293, %296 : vector<8x8xf32>
    %c1_222 = arith.constant 1 : index
    %c0_223 = arith.constant 0 : index
    %c0_224 = arith.constant 0 : index
    %c0_225 = arith.constant 0 : index
    %298 = vector.load %arg7[%c1_222, %c0_223, %c0_224, %c0_225] : memref<2x4x32x8xf32, #tpu.memory_space<vmem>>, vector<1x1x32x8xf32>
    %299 = vector.shape_cast %298 : vector<1x1x32x8xf32> to vector<32x8xf32>
    %cst_226 = arith.constant dense<0.000000e+00> : vector<8x8xf32>
    %300 = tpu.matmul %289, %299, %cst_226 {dimension_numbers = #tpu.dot_dimension_numbers<[1], [0], [0], [1], [0, 0, 1, 1], [], []>} : vector<8x32xf32>, vector<32x8xf32>, vector<8x8xf32> -> vector<8x8xf32>
    %c1_227 = arith.constant 1 : index
    %c0_228 = arith.constant 0 : index
    %c0_229 = arith.constant 0 : index
    %c0_230 = arith.constant 0 : index
    %301 = vector.load %arg8[%c1_227, %c0_228, %c0_229, %c0_230] : memref<2x4x1x8xf32, #tpu.memory_space<vmem>>, vector<1x1x1x8xf32>
    %302 = vector.shape_cast %301 : vector<1x1x1x8xf32> to vector<1x8xf32>
    %303 = vector.broadcast %302 : vector<1x8xf32> to vector<8x8xf32>
    %304 = arith.addf %300, %303 : vector<8x8xf32>
    %c1_231 = arith.constant 1 : index
    %c0_232 = arith.constant 0 : index
    %c0_233 = arith.constant 0 : index
    %c0_234 = arith.constant 0 : index
    %305 = vector.load %arg9[%c1_231, %c0_232, %c0_233, %c0_234] : memref<2x4x32x8xf32, #tpu.memory_space<vmem>>, vector<1x1x32x8xf32>
    %306 = vector.shape_cast %305 : vector<1x1x32x8xf32> to vector<32x8xf32>
    %cst_235 = arith.constant dense<0.000000e+00> : vector<8x8xf32>
    %307 = tpu.matmul %289, %306, %cst_235 {dimension_numbers = #tpu.dot_dimension_numbers<[1], [0], [0], [1], [0, 0, 1, 1], [], []>} : vector<8x32xf32>, vector<32x8xf32>, vector<8x8xf32> -> vector<8x8xf32>
    %c1_236 = arith.constant 1 : index
    %c0_237 = arith.constant 0 : index
    %c0_238 = arith.constant 0 : index
    %c0_239 = arith.constant 0 : index
    %308 = vector.load %arg10[%c1_236, %c0_237, %c0_238, %c0_239] : memref<2x4x1x8xf32, #tpu.memory_space<vmem>>, vector<1x1x1x8xf32>
    %309 = vector.shape_cast %308 : vector<1x1x1x8xf32> to vector<1x8xf32>
    %310 = vector.broadcast %309 : vector<1x8xf32> to vector<8x8xf32>
    %311 = arith.addf %307, %310 : vector<8x8xf32>
    %cst_240 = arith.constant dense<0.000000e+00> : vector<8x8xf32>
    %312 = tpu.matmul %297, %304, %cst_240 {dimension_numbers = #tpu.dot_dimension_numbers<[1], [1], [0], [0], [0, 0, 1, 0], [], []>} : vector<8x8xf32>, vector<8x8xf32>, vector<8x8xf32> -> vector<8x8xf32>
    %cst_241 = arith.constant 0.353553385 : f32
    %313 = vector.broadcast %cst_241 : f32 to vector<8x8xf32>
    %314 = arith.mulf %312, %313 : vector<8x8xf32>
    %cst_242 = arith.constant dense<0xFF800000> : vector<8xf32>
    %315 = vector.multi_reduction <maximumf>, %314, %cst_242 [1] : vector<8x8xf32> to vector<8xf32>
    %316 = vector.shape_cast %315 : vector<8xf32> to vector<8x1xf32>
    %317 = vector.broadcast %316 : vector<8x1xf32> to vector<8x8xf32>
    %318 = arith.subf %314, %317 : vector<8x8xf32>
    %319 = math.exp %318 : vector<8x8xf32>
    %cst_243 = arith.constant dense<0.000000e+00> : vector<8xf32>
    %320 = vector.multi_reduction <add>, %319, %cst_243 [1] : vector<8x8xf32> to vector<8xf32>
    %321 = vector.shape_cast %320 : vector<8xf32> to vector<8x1xf32>
    %322 = tpu.reciprocal %321 {approx = true} : vector<8x1xf32> -> vector<8x1xf32>
    %323 = arith.mulf %321, %322 : vector<8x1xf32>
    %cst_244 = arith.constant 2.000000e+00 : f32
    %324 = vector.broadcast %cst_244 : f32 to vector<8x1xf32>
    %325 = arith.subf %324, %323 : vector<8x1xf32>
    %326 = arith.mulf %322, %325 : vector<8x1xf32>
    %327 = vector.broadcast %326 : vector<8x1xf32> to vector<8x8xf32>
    %328 = arith.mulf %319, %327 : vector<8x8xf32>
    %cst_245 = arith.constant dense<0.000000e+00> : vector<8x8xf32>
    %329 = tpu.matmul %328, %311, %cst_245 {dimension_numbers = #tpu.dot_dimension_numbers<[1], [0], [0], [1], [0, 0, 1, 1], [], []>} : vector<8x8xf32>, vector<8x8xf32>, vector<8x8xf32> -> vector<8x8xf32>
    %c1_246 = arith.constant 1 : index
    %c0_247 = arith.constant 0 : index
    %c0_248 = arith.constant 0 : index
    %c0_249 = arith.constant 0 : index
    %330 = vector.load %arg11[%c1_246, %c0_247, %c0_248, %c0_249] : memref<2x4x8x32xf32, #tpu.memory_space<vmem>>, vector<1x1x8x32xf32>
    %331 = vector.shape_cast %330 : vector<1x1x8x32xf32> to vector<8x32xf32>
    %cst_250 = arith.constant dense<0.000000e+00> : vector<8x32xf32>
    %332 = tpu.matmul %329, %331, %cst_250 {dimension_numbers = #tpu.dot_dimension_numbers<[1], [0], [0], [1], [0, 0, 1, 1], [], []>} : vector<8x8xf32>, vector<8x32xf32>, vector<8x32xf32> -> vector<8x32xf32>
    %333 = arith.addf %290, %332 : vector<8x32xf32>
    %c1_251 = arith.constant 1 : index
    %c1_252 = arith.constant 1 : index
    %c0_253 = arith.constant 0 : index
    %c0_254 = arith.constant 0 : index
    %334 = vector.load %arg5[%c1_251, %c1_252, %c0_253, %c0_254] : memref<2x4x32x8xf32, #tpu.memory_space<vmem>>, vector<1x1x32x8xf32>
    %335 = vector.shape_cast %334 : vector<1x1x32x8xf32> to vector<32x8xf32>
    %cst_255 = arith.constant dense<0.000000e+00> : vector<8x8xf32>
    %336 = tpu.matmul %289, %335, %cst_255 {dimension_numbers = #tpu.dot_dimension_numbers<[1], [0], [0], [1], [0, 0, 1, 1], [], []>} : vector<8x32xf32>, vector<32x8xf32>, vector<8x8xf32> -> vector<8x8xf32>
    %c1_256 = arith.constant 1 : index
    %c1_257 = arith.constant 1 : index
    %c0_258 = arith.constant 0 : index
    %c0_259 = arith.constant 0 : index
    %337 = vector.load %arg6[%c1_256, %c1_257, %c0_258, %c0_259] : memref<2x4x1x8xf32, #tpu.memory_space<vmem>>, vector<1x1x1x8xf32>
    %338 = vector.shape_cast %337 : vector<1x1x1x8xf32> to vector<1x8xf32>
    %339 = vector.broadcast %338 : vector<1x8xf32> to vector<8x8xf32>
    %340 = arith.addf %336, %339 : vector<8x8xf32>
    %c1_260 = arith.constant 1 : index
    %c1_261 = arith.constant 1 : index
    %c0_262 = arith.constant 0 : index
    %c0_263 = arith.constant 0 : index
    %341 = vector.load %arg7[%c1_260, %c1_261, %c0_262, %c0_263] : memref<2x4x32x8xf32, #tpu.memory_space<vmem>>, vector<1x1x32x8xf32>
    %342 = vector.shape_cast %341 : vector<1x1x32x8xf32> to vector<32x8xf32>
    %cst_264 = arith.constant dense<0.000000e+00> : vector<8x8xf32>
    %343 = tpu.matmul %289, %342, %cst_264 {dimension_numbers = #tpu.dot_dimension_numbers<[1], [0], [0], [1], [0, 0, 1, 1], [], []>} : vector<8x32xf32>, vector<32x8xf32>, vector<8x8xf32> -> vector<8x8xf32>
    %c1_265 = arith.constant 1 : index
    %c1_266 = arith.constant 1 : index
    %c0_267 = arith.constant 0 : index
    %c0_268 = arith.constant 0 : index
    %344 = vector.load %arg8[%c1_265, %c1_266, %c0_267, %c0_268] : memref<2x4x1x8xf32, #tpu.memory_space<vmem>>, vector<1x1x1x8xf32>
    %345 = vector.shape_cast %344 : vector<1x1x1x8xf32> to vector<1x8xf32>
    %346 = vector.broadcast %345 : vector<1x8xf32> to vector<8x8xf32>
    %347 = arith.addf %343, %346 : vector<8x8xf32>
    %c1_269 = arith.constant 1 : index
    %c1_270 = arith.constant 1 : index
    %c0_271 = arith.constant 0 : index
    %c0_272 = arith.constant 0 : index
    %348 = vector.load %arg9[%c1_269, %c1_270, %c0_271, %c0_272] : memref<2x4x32x8xf32, #tpu.memory_space<vmem>>, vector<1x1x32x8xf32>
    %349 = vector.shape_cast %348 : vector<1x1x32x8xf32> to vector<32x8xf32>
    %cst_273 = arith.constant dense<0.000000e+00> : vector<8x8xf32>
    %350 = tpu.matmul %289, %349, %cst_273 {dimension_numbers = #tpu.dot_dimension_numbers<[1], [0], [0], [1], [0, 0, 1, 1], [], []>} : vector<8x32xf32>, vector<32x8xf32>, vector<8x8xf32> -> vector<8x8xf32>
    %c1_274 = arith.constant 1 : index
    %c1_275 = arith.constant 1 : index
    %c0_276 = arith.constant 0 : index
    %c0_277 = arith.constant 0 : index
    %351 = vector.load %arg10[%c1_274, %c1_275, %c0_276, %c0_277] : memref<2x4x1x8xf32, #tpu.memory_space<vmem>>, vector<1x1x1x8xf32>
    %352 = vector.shape_cast %351 : vector<1x1x1x8xf32> to vector<1x8xf32>
    %353 = vector.broadcast %352 : vector<1x8xf32> to vector<8x8xf32>
    %354 = arith.addf %350, %353 : vector<8x8xf32>
    %cst_278 = arith.constant dense<0.000000e+00> : vector<8x8xf32>
    %355 = tpu.matmul %340, %347, %cst_278 {dimension_numbers = #tpu.dot_dimension_numbers<[1], [1], [0], [0], [0, 0, 1, 0], [], []>} : vector<8x8xf32>, vector<8x8xf32>, vector<8x8xf32> -> vector<8x8xf32>
    %cst_279 = arith.constant 0.353553385 : f32
    %356 = vector.broadcast %cst_279 : f32 to vector<8x8xf32>
    %357 = arith.mulf %355, %356 : vector<8x8xf32>
    %cst_280 = arith.constant dense<0xFF800000> : vector<8xf32>
    %358 = vector.multi_reduction <maximumf>, %357, %cst_280 [1] : vector<8x8xf32> to vector<8xf32>
    %359 = vector.shape_cast %358 : vector<8xf32> to vector<8x1xf32>
    %360 = vector.broadcast %359 : vector<8x1xf32> to vector<8x8xf32>
    %361 = arith.subf %357, %360 : vector<8x8xf32>
    %362 = math.exp %361 : vector<8x8xf32>
    %cst_281 = arith.constant dense<0.000000e+00> : vector<8xf32>
    %363 = vector.multi_reduction <add>, %362, %cst_281 [1] : vector<8x8xf32> to vector<8xf32>
    %364 = vector.shape_cast %363 : vector<8xf32> to vector<8x1xf32>
    %365 = tpu.reciprocal %364 {approx = true} : vector<8x1xf32> -> vector<8x1xf32>
    %366 = arith.mulf %364, %365 : vector<8x1xf32>
    %cst_282 = arith.constant 2.000000e+00 : f32
    %367 = vector.broadcast %cst_282 : f32 to vector<8x1xf32>
    %368 = arith.subf %367, %366 : vector<8x1xf32>
    %369 = arith.mulf %365, %368 : vector<8x1xf32>
    %370 = vector.broadcast %369 : vector<8x1xf32> to vector<8x8xf32>
    %371 = arith.mulf %362, %370 : vector<8x8xf32>
    %cst_283 = arith.constant dense<0.000000e+00> : vector<8x8xf32>
    %372 = tpu.matmul %371, %354, %cst_283 {dimension_numbers = #tpu.dot_dimension_numbers<[1], [0], [0], [1], [0, 0, 1, 1], [], []>} : vector<8x8xf32>, vector<8x8xf32>, vector<8x8xf32> -> vector<8x8xf32>
    %c1_284 = arith.constant 1 : index
    %c1_285 = arith.constant 1 : index
    %c0_286 = arith.constant 0 : index
    %c0_287 = arith.constant 0 : index
    %373 = vector.load %arg11[%c1_284, %c1_285, %c0_286, %c0_287] : memref<2x4x8x32xf32, #tpu.memory_space<vmem>>, vector<1x1x8x32xf32>
    %374 = vector.shape_cast %373 : vector<1x1x8x32xf32> to vector<8x32xf32>
    %cst_288 = arith.constant dense<0.000000e+00> : vector<8x32xf32>
    %375 = tpu.matmul %372, %374, %cst_288 {dimension_numbers = #tpu.dot_dimension_numbers<[1], [0], [0], [1], [0, 0, 1, 1], [], []>} : vector<8x8xf32>, vector<8x32xf32>, vector<8x32xf32> -> vector<8x32xf32>
    %376 = arith.addf %333, %375 : vector<8x32xf32>
    %c1_289 = arith.constant 1 : index
    %c2_290 = arith.constant 2 : index
    %c0_291 = arith.constant 0 : index
    %c0_292 = arith.constant 0 : index
    %377 = vector.load %arg5[%c1_289, %c2_290, %c0_291, %c0_292] : memref<2x4x32x8xf32, #tpu.memory_space<vmem>>, vector<1x1x32x8xf32>
    %378 = vector.shape_cast %377 : vector<1x1x32x8xf32> to vector<32x8xf32>
    %cst_293 = arith.constant dense<0.000000e+00> : vector<8x8xf32>
    %379 = tpu.matmul %289, %378, %cst_293 {dimension_numbers = #tpu.dot_dimension_numbers<[1], [0], [0], [1], [0, 0, 1, 1], [], []>} : vector<8x32xf32>, vector<32x8xf32>, vector<8x8xf32> -> vector<8x8xf32>
    %c1_294 = arith.constant 1 : index
    %c2_295 = arith.constant 2 : index
    %c0_296 = arith.constant 0 : index
    %c0_297 = arith.constant 0 : index
    %380 = vector.load %arg6[%c1_294, %c2_295, %c0_296, %c0_297] : memref<2x4x1x8xf32, #tpu.memory_space<vmem>>, vector<1x1x1x8xf32>
    %381 = vector.shape_cast %380 : vector<1x1x1x8xf32> to vector<1x8xf32>
    %382 = vector.broadcast %381 : vector<1x8xf32> to vector<8x8xf32>
    %383 = arith.addf %379, %382 : vector<8x8xf32>
    %c1_298 = arith.constant 1 : index
    %c2_299 = arith.constant 2 : index
    %c0_300 = arith.constant 0 : index
    %c0_301 = arith.constant 0 : index
    %384 = vector.load %arg7[%c1_298, %c2_299, %c0_300, %c0_301] : memref<2x4x32x8xf32, #tpu.memory_space<vmem>>, vector<1x1x32x8xf32>
    %385 = vector.shape_cast %384 : vector<1x1x32x8xf32> to vector<32x8xf32>
    %cst_302 = arith.constant dense<0.000000e+00> : vector<8x8xf32>
    %386 = tpu.matmul %289, %385, %cst_302 {dimension_numbers = #tpu.dot_dimension_numbers<[1], [0], [0], [1], [0, 0, 1, 1], [], []>} : vector<8x32xf32>, vector<32x8xf32>, vector<8x8xf32> -> vector<8x8xf32>
    %c1_303 = arith.constant 1 : index
    %c2_304 = arith.constant 2 : index
    %c0_305 = arith.constant 0 : index
    %c0_306 = arith.constant 0 : index
    %387 = vector.load %arg8[%c1_303, %c2_304, %c0_305, %c0_306] : memref<2x4x1x8xf32, #tpu.memory_space<vmem>>, vector<1x1x1x8xf32>
    %388 = vector.shape_cast %387 : vector<1x1x1x8xf32> to vector<1x8xf32>
    %389 = vector.broadcast %388 : vector<1x8xf32> to vector<8x8xf32>
    %390 = arith.addf %386, %389 : vector<8x8xf32>
    %c1_307 = arith.constant 1 : index
    %c2_308 = arith.constant 2 : index
    %c0_309 = arith.constant 0 : index
    %c0_310 = arith.constant 0 : index
    %391 = vector.load %arg9[%c1_307, %c2_308, %c0_309, %c0_310] : memref<2x4x32x8xf32, #tpu.memory_space<vmem>>, vector<1x1x32x8xf32>
    %392 = vector.shape_cast %391 : vector<1x1x32x8xf32> to vector<32x8xf32>
    %cst_311 = arith.constant dense<0.000000e+00> : vector<8x8xf32>
    %393 = tpu.matmul %289, %392, %cst_311 {dimension_numbers = #tpu.dot_dimension_numbers<[1], [0], [0], [1], [0, 0, 1, 1], [], []>} : vector<8x32xf32>, vector<32x8xf32>, vector<8x8xf32> -> vector<8x8xf32>
    %c1_312 = arith.constant 1 : index
    %c2_313 = arith.constant 2 : index
    %c0_314 = arith.constant 0 : index
    %c0_315 = arith.constant 0 : index
    %394 = vector.load %arg10[%c1_312, %c2_313, %c0_314, %c0_315] : memref<2x4x1x8xf32, #tpu.memory_space<vmem>>, vector<1x1x1x8xf32>
    %395 = vector.shape_cast %394 : vector<1x1x1x8xf32> to vector<1x8xf32>
    %396 = vector.broadcast %395 : vector<1x8xf32> to vector<8x8xf32>
    %397 = arith.addf %393, %396 : vector<8x8xf32>
    %cst_316 = arith.constant dense<0.000000e+00> : vector<8x8xf32>
    %398 = tpu.matmul %383, %390, %cst_316 {dimension_numbers = #tpu.dot_dimension_numbers<[1], [1], [0], [0], [0, 0, 1, 0], [], []>} : vector<8x8xf32>, vector<8x8xf32>, vector<8x8xf32> -> vector<8x8xf32>
    %cst_317 = arith.constant 0.353553385 : f32
    %399 = vector.broadcast %cst_317 : f32 to vector<8x8xf32>
    %400 = arith.mulf %398, %399 : vector<8x8xf32>
    %cst_318 = arith.constant dense<0xFF800000> : vector<8xf32>
    %401 = vector.multi_reduction <maximumf>, %400, %cst_318 [1] : vector<8x8xf32> to vector<8xf32>
    %402 = vector.shape_cast %401 : vector<8xf32> to vector<8x1xf32>
    %403 = vector.broadcast %402 : vector<8x1xf32> to vector<8x8xf32>
    %404 = arith.subf %400, %403 : vector<8x8xf32>
    %405 = math.exp %404 : vector<8x8xf32>
    %cst_319 = arith.constant dense<0.000000e+00> : vector<8xf32>
    %406 = vector.multi_reduction <add>, %405, %cst_319 [1] : vector<8x8xf32> to vector<8xf32>
    %407 = vector.shape_cast %406 : vector<8xf32> to vector<8x1xf32>
    %408 = tpu.reciprocal %407 {approx = true} : vector<8x1xf32> -> vector<8x1xf32>
    %409 = arith.mulf %407, %408 : vector<8x1xf32>
    %cst_320 = arith.constant 2.000000e+00 : f32
    %410 = vector.broadcast %cst_320 : f32 to vector<8x1xf32>
    %411 = arith.subf %410, %409 : vector<8x1xf32>
    %412 = arith.mulf %408, %411 : vector<8x1xf32>
    %413 = vector.broadcast %412 : vector<8x1xf32> to vector<8x8xf32>
    %414 = arith.mulf %405, %413 : vector<8x8xf32>
    %cst_321 = arith.constant dense<0.000000e+00> : vector<8x8xf32>
    %415 = tpu.matmul %414, %397, %cst_321 {dimension_numbers = #tpu.dot_dimension_numbers<[1], [0], [0], [1], [0, 0, 1, 1], [], []>} : vector<8x8xf32>, vector<8x8xf32>, vector<8x8xf32> -> vector<8x8xf32>
    %c1_322 = arith.constant 1 : index
    %c2_323 = arith.constant 2 : index
    %c0_324 = arith.constant 0 : index
    %c0_325 = arith.constant 0 : index
    %416 = vector.load %arg11[%c1_322, %c2_323, %c0_324, %c0_325] : memref<2x4x8x32xf32, #tpu.memory_space<vmem>>, vector<1x1x8x32xf32>
    %417 = vector.shape_cast %416 : vector<1x1x8x32xf32> to vector<8x32xf32>
    %cst_326 = arith.constant dense<0.000000e+00> : vector<8x32xf32>
    %418 = tpu.matmul %415, %417, %cst_326 {dimension_numbers = #tpu.dot_dimension_numbers<[1], [0], [0], [1], [0, 0, 1, 1], [], []>} : vector<8x8xf32>, vector<8x32xf32>, vector<8x32xf32> -> vector<8x32xf32>
    %419 = arith.addf %376, %418 : vector<8x32xf32>
    %c1_327 = arith.constant 1 : index
    %c3_328 = arith.constant 3 : index
    %c0_329 = arith.constant 0 : index
    %c0_330 = arith.constant 0 : index
    %420 = vector.load %arg5[%c1_327, %c3_328, %c0_329, %c0_330] : memref<2x4x32x8xf32, #tpu.memory_space<vmem>>, vector<1x1x32x8xf32>
    %421 = vector.shape_cast %420 : vector<1x1x32x8xf32> to vector<32x8xf32>
    %cst_331 = arith.constant dense<0.000000e+00> : vector<8x8xf32>
    %422 = tpu.matmul %289, %421, %cst_331 {dimension_numbers = #tpu.dot_dimension_numbers<[1], [0], [0], [1], [0, 0, 1, 1], [], []>} : vector<8x32xf32>, vector<32x8xf32>, vector<8x8xf32> -> vector<8x8xf32>
    %c1_332 = arith.constant 1 : index
    %c3_333 = arith.constant 3 : index
    %c0_334 = arith.constant 0 : index
    %c0_335 = arith.constant 0 : index
    %423 = vector.load %arg6[%c1_332, %c3_333, %c0_334, %c0_335] : memref<2x4x1x8xf32, #tpu.memory_space<vmem>>, vector<1x1x1x8xf32>
    %424 = vector.shape_cast %423 : vector<1x1x1x8xf32> to vector<1x8xf32>
    %425 = vector.broadcast %424 : vector<1x8xf32> to vector<8x8xf32>
    %426 = arith.addf %422, %425 : vector<8x8xf32>
    %c1_336 = arith.constant 1 : index
    %c3_337 = arith.constant 3 : index
    %c0_338 = arith.constant 0 : index
    %c0_339 = arith.constant 0 : index
    %427 = vector.load %arg7[%c1_336, %c3_337, %c0_338, %c0_339] : memref<2x4x32x8xf32, #tpu.memory_space<vmem>>, vector<1x1x32x8xf32>
    %428 = vector.shape_cast %427 : vector<1x1x32x8xf32> to vector<32x8xf32>
    %cst_340 = arith.constant dense<0.000000e+00> : vector<8x8xf32>
    %429 = tpu.matmul %289, %428, %cst_340 {dimension_numbers = #tpu.dot_dimension_numbers<[1], [0], [0], [1], [0, 0, 1, 1], [], []>} : vector<8x32xf32>, vector<32x8xf32>, vector<8x8xf32> -> vector<8x8xf32>
    %c1_341 = arith.constant 1 : index
    %c3_342 = arith.constant 3 : index
    %c0_343 = arith.constant 0 : index
    %c0_344 = arith.constant 0 : index
    %430 = vector.load %arg8[%c1_341, %c3_342, %c0_343, %c0_344] : memref<2x4x1x8xf32, #tpu.memory_space<vmem>>, vector<1x1x1x8xf32>
    %431 = vector.shape_cast %430 : vector<1x1x1x8xf32> to vector<1x8xf32>
    %432 = vector.broadcast %431 : vector<1x8xf32> to vector<8x8xf32>
    %433 = arith.addf %429, %432 : vector<8x8xf32>
    %c1_345 = arith.constant 1 : index
    %c3_346 = arith.constant 3 : index
    %c0_347 = arith.constant 0 : index
    %c0_348 = arith.constant 0 : index
    %434 = vector.load %arg9[%c1_345, %c3_346, %c0_347, %c0_348] : memref<2x4x32x8xf32, #tpu.memory_space<vmem>>, vector<1x1x32x8xf32>
    %435 = vector.shape_cast %434 : vector<1x1x32x8xf32> to vector<32x8xf32>
    %cst_349 = arith.constant dense<0.000000e+00> : vector<8x8xf32>
    %436 = tpu.matmul %289, %435, %cst_349 {dimension_numbers = #tpu.dot_dimension_numbers<[1], [0], [0], [1], [0, 0, 1, 1], [], []>} : vector<8x32xf32>, vector<32x8xf32>, vector<8x8xf32> -> vector<8x8xf32>
    %c1_350 = arith.constant 1 : index
    %c3_351 = arith.constant 3 : index
    %c0_352 = arith.constant 0 : index
    %c0_353 = arith.constant 0 : index
    %437 = vector.load %arg10[%c1_350, %c3_351, %c0_352, %c0_353] : memref<2x4x1x8xf32, #tpu.memory_space<vmem>>, vector<1x1x1x8xf32>
    %438 = vector.shape_cast %437 : vector<1x1x1x8xf32> to vector<1x8xf32>
    %439 = vector.broadcast %438 : vector<1x8xf32> to vector<8x8xf32>
    %440 = arith.addf %436, %439 : vector<8x8xf32>
    %cst_354 = arith.constant dense<0.000000e+00> : vector<8x8xf32>
    %441 = tpu.matmul %426, %433, %cst_354 {dimension_numbers = #tpu.dot_dimension_numbers<[1], [1], [0], [0], [0, 0, 1, 0], [], []>} : vector<8x8xf32>, vector<8x8xf32>, vector<8x8xf32> -> vector<8x8xf32>
    %cst_355 = arith.constant 0.353553385 : f32
    %442 = vector.broadcast %cst_355 : f32 to vector<8x8xf32>
    %443 = arith.mulf %441, %442 : vector<8x8xf32>
    %cst_356 = arith.constant dense<0xFF800000> : vector<8xf32>
    %444 = vector.multi_reduction <maximumf>, %443, %cst_356 [1] : vector<8x8xf32> to vector<8xf32>
    %445 = vector.shape_cast %444 : vector<8xf32> to vector<8x1xf32>
    %446 = vector.broadcast %445 : vector<8x1xf32> to vector<8x8xf32>
    %447 = arith.subf %443, %446 : vector<8x8xf32>
    %448 = math.exp %447 : vector<8x8xf32>
    %cst_357 = arith.constant dense<0.000000e+00> : vector<8xf32>
    %449 = vector.multi_reduction <add>, %448, %cst_357 [1] : vector<8x8xf32> to vector<8xf32>
    %450 = vector.shape_cast %449 : vector<8xf32> to vector<8x1xf32>
    %451 = tpu.reciprocal %450 {approx = true} : vector<8x1xf32> -> vector<8x1xf32>
    %452 = arith.mulf %450, %451 : vector<8x1xf32>
    %cst_358 = arith.constant 2.000000e+00 : f32
    %453 = vector.broadcast %cst_358 : f32 to vector<8x1xf32>
    %454 = arith.subf %453, %452 : vector<8x1xf32>
    %455 = arith.mulf %451, %454 : vector<8x1xf32>
    %456 = vector.broadcast %455 : vector<8x1xf32> to vector<8x8xf32>
    %457 = arith.mulf %448, %456 : vector<8x8xf32>
    %cst_359 = arith.constant dense<0.000000e+00> : vector<8x8xf32>
    %458 = tpu.matmul %457, %440, %cst_359 {dimension_numbers = #tpu.dot_dimension_numbers<[1], [0], [0], [1], [0, 0, 1, 1], [], []>} : vector<8x8xf32>, vector<8x8xf32>, vector<8x8xf32> -> vector<8x8xf32>
    %c1_360 = arith.constant 1 : index
    %c3_361 = arith.constant 3 : index
    %c0_362 = arith.constant 0 : index
    %c0_363 = arith.constant 0 : index
    %459 = vector.load %arg11[%c1_360, %c3_361, %c0_362, %c0_363] : memref<2x4x8x32xf32, #tpu.memory_space<vmem>>, vector<1x1x8x32xf32>
    %460 = vector.shape_cast %459 : vector<1x1x8x32xf32> to vector<8x32xf32>
    %cst_364 = arith.constant dense<0.000000e+00> : vector<8x32xf32>
    %461 = tpu.matmul %458, %460, %cst_364 {dimension_numbers = #tpu.dot_dimension_numbers<[1], [0], [0], [1], [0, 0, 1, 1], [], []>} : vector<8x8xf32>, vector<8x32xf32>, vector<8x32xf32> -> vector<8x32xf32>
    %462 = arith.addf %419, %461 : vector<8x32xf32>
    %c1_365 = arith.constant 1 : index
    %c0_366 = arith.constant 0 : index
    %c0_367 = arith.constant 0 : index
    %463 = vector.load %arg12[%c1_365, %c0_366, %c0_367] : memref<2x1x32xf32, #tpu.memory_space<vmem>>, vector<1x1x32xf32>
    %464 = vector.shape_cast %463 : vector<1x1x32xf32> to vector<1x32xf32>
    %465 = vector.broadcast %464 : vector<1x32xf32> to vector<8x32xf32>
    %466 = arith.addf %462, %465 : vector<8x32xf32>
    %467 = arith.addf %289, %466 : vector<8x32xf32>
    %c1_368 = arith.constant 1 : index
    %c0_369 = arith.constant 0 : index
    %c0_370 = arith.constant 0 : index
    %468 = vector.load %arg17[%c1_368, %c0_369, %c0_370] : memref<2x1x32xf32, #tpu.memory_space<vmem>>, vector<1x1x32xf32>
    %469 = vector.shape_cast %468 : vector<1x1x32xf32> to vector<1x32xf32>
    %c1_371 = arith.constant 1 : index
    %c0_372 = arith.constant 0 : index
    %c0_373 = arith.constant 0 : index
    %470 = vector.load %arg18[%c1_371, %c0_372, %c0_373] : memref<2x1x32xf32, #tpu.memory_space<vmem>>, vector<1x1x32xf32>
    %471 = vector.shape_cast %470 : vector<1x1x32xf32> to vector<1x32xf32>
    %cst_374 = arith.constant dense<0.000000e+00> : vector<8xf32>
    %472 = vector.multi_reduction <add>, %467, %cst_374 [1] : vector<8x32xf32> to vector<8xf32>
    %473 = vector.shape_cast %472 : vector<8xf32> to vector<8x1xf32>
    %cst_375 = arith.constant 3.200000e+01 : f32
    %474 = vector.broadcast %cst_375 : f32 to vector<8x1xf32>
    %475 = arith.divf %473, %474 : vector<8x1xf32>
    %476 = vector.broadcast %475 : vector<8x1xf32> to vector<8x32xf32>
    %477 = arith.subf %467, %476 : vector<8x32xf32>
    %478 = arith.mulf %477, %477 : vector<8x32xf32>
    %cst_376 = arith.constant dense<0.000000e+00> : vector<8xf32>
    %479 = vector.multi_reduction <add>, %478, %cst_376 [1] : vector<8x32xf32> to vector<8xf32>
    %480 = vector.shape_cast %479 : vector<8xf32> to vector<8x1xf32>
    %cst_377 = arith.constant 3.200000e+01 : f32
    %481 = vector.broadcast %cst_377 : f32 to vector<8x1xf32>
    %482 = arith.divf %480, %481 : vector<8x1xf32>
    %cst_378 = arith.constant 9.99999974E-6 : f32
    %483 = vector.broadcast %cst_378 : f32 to vector<8x1xf32>
    %484 = arith.addf %482, %483 : vector<8x1xf32>
    %485 = math.rsqrt %484 : vector<8x1xf32>
    %486 = vector.broadcast %485 : vector<8x1xf32> to vector<8x32xf32>
    %487 = arith.mulf %477, %486 : vector<8x32xf32>
    %488 = vector.broadcast %469 : vector<1x32xf32> to vector<8x32xf32>
    %489 = arith.mulf %487, %488 : vector<8x32xf32>
    %490 = vector.broadcast %471 : vector<1x32xf32> to vector<8x32xf32>
    %491 = arith.addf %489, %490 : vector<8x32xf32>
    %c1_379 = arith.constant 1 : index
    %c0_380 = arith.constant 0 : index
    %c0_381 = arith.constant 0 : index
    %492 = vector.load %arg13[%c1_379, %c0_380, %c0_381] : memref<2x32x128xf32, #tpu.memory_space<vmem>>, vector<1x32x128xf32>
    %493 = vector.shape_cast %492 : vector<1x32x128xf32> to vector<32x128xf32>
    %cst_382 = arith.constant dense<0.000000e+00> : vector<8x128xf32>
    %494 = tpu.matmul %491, %493, %cst_382 {dimension_numbers = #tpu.dot_dimension_numbers<[1], [0], [0], [1], [0, 0, 1, 1], [], []>} : vector<8x32xf32>, vector<32x128xf32>, vector<8x128xf32> -> vector<8x128xf32>
    %c1_383 = arith.constant 1 : index
    %c0_384 = arith.constant 0 : index
    %c0_385 = arith.constant 0 : index
    %495 = vector.load %arg14[%c1_383, %c0_384, %c0_385] : memref<2x1x128xf32, #tpu.memory_space<vmem>>, vector<1x1x128xf32>
    %496 = vector.shape_cast %495 : vector<1x1x128xf32> to vector<1x128xf32>
    %497 = vector.broadcast %496 : vector<1x128xf32> to vector<8x128xf32>
    %498 = arith.addf %494, %497 : vector<8x128xf32>
    %cst_386 = arith.constant 5.000000e-01 : f32
    %499 = vector.broadcast %cst_386 : f32 to vector<8x128xf32>
    %500 = arith.mulf %499, %498 : vector<8x128xf32>
    %cst_387 = arith.constant 0.707106769 : f32
    %501 = vector.broadcast %cst_387 : f32 to vector<8x128xf32>
    %502 = arith.mulf %498, %501 : vector<8x128xf32>
    %503 = math.absf %502 : vector<8x128xf32>
    %cst_388 = arith.constant 0.327591091 : f32
    %504 = vector.broadcast %cst_388 : f32 to vector<8x128xf32>
    %505 = arith.mulf %504, %503 : vector<8x128xf32>
    %cst_389 = arith.constant 1.000000e+00 : f32
    %506 = vector.broadcast %cst_389 : f32 to vector<8x128xf32>
    %507 = arith.addf %506, %505 : vector<8x128xf32>
    %cst_390 = arith.constant 1.000000e+00 : f32
    %508 = vector.broadcast %cst_390 : f32 to vector<8x128xf32>
    %509 = arith.divf %508, %507 : vector<8x128xf32>
    %cst_391 = arith.constant 1.06140542 : f32
    %510 = vector.broadcast %cst_391 : f32 to vector<8x128xf32>
    %511 = arith.mulf %510, %509 : vector<8x128xf32>
    %cst_392 = arith.constant -1.45315206 : f32
    %512 = vector.broadcast %cst_392 : f32 to vector<8x128xf32>
    %513 = arith.addf %511, %512 : vector<8x128xf32>
    %514 = arith.mulf %513, %509 : vector<8x128xf32>
    %cst_393 = arith.constant 1.42141378 : f32
    %515 = vector.broadcast %cst_393 : f32 to vector<8x128xf32>
    %516 = arith.addf %514, %515 : vector<8x128xf32>
    %517 = arith.mulf %516, %509 : vector<8x128xf32>
    %cst_394 = arith.constant -0.284496725 : f32
    %518 = vector.broadcast %cst_394 : f32 to vector<8x128xf32>
    %519 = arith.addf %517, %518 : vector<8x128xf32>
    %520 = arith.mulf %519, %509 : vector<8x128xf32>
    %cst_395 = arith.constant 0.254829586 : f32
    %521 = vector.broadcast %cst_395 : f32 to vector<8x128xf32>
    %522 = arith.addf %520, %521 : vector<8x128xf32>
    %523 = arith.mulf %522, %509 : vector<8x128xf32>
    %cst_396 = arith.constant 0.000000e+00 : f32
    %524 = vector.broadcast %cst_396 : f32 to vector<8x128xf32>
    %525 = arith.subf %524, %503 : vector<8x128xf32>
    %526 = arith.mulf %525, %503 : vector<8x128xf32>
    %527 = math.exp %526 : vector<8x128xf32>
    %528 = arith.mulf %523, %527 : vector<8x128xf32>
    %cst_397 = arith.constant 1.000000e+00 : f32
    %529 = vector.broadcast %cst_397 : f32 to vector<8x128xf32>
    %530 = arith.subf %529, %528 : vector<8x128xf32>
    %cst_398 = arith.constant 0.000000e+00 : f32
    %531 = vector.broadcast %cst_398 : f32 to vector<8x128xf32>
    %532 = arith.cmpf oge, %502, %531 : vector<8x128xf32>
    %cst_399 = arith.constant 0.000000e+00 : f32
    %533 = vector.broadcast %cst_399 : f32 to vector<8x128xf32>
    %534 = arith.subf %533, %530 : vector<8x128xf32>
    %535 = arith.select %532, %530, %534 : vector<8x128xi1>, vector<8x128xf32>
    %cst_400 = arith.constant 1.000000e+00 : f32
    %536 = vector.broadcast %cst_400 : f32 to vector<8x128xf32>
    %537 = arith.addf %536, %535 : vector<8x128xf32>
    %538 = arith.mulf %500, %537 : vector<8x128xf32>
    %c1_401 = arith.constant 1 : index
    %c0_402 = arith.constant 0 : index
    %c0_403 = arith.constant 0 : index
    %539 = vector.load %arg15[%c1_401, %c0_402, %c0_403] : memref<2x128x32xf32, #tpu.memory_space<vmem>>, vector<1x128x32xf32>
    %540 = vector.shape_cast %539 : vector<1x128x32xf32> to vector<128x32xf32>
    %cst_404 = arith.constant dense<0.000000e+00> : vector<8x32xf32>
    %541 = tpu.matmul %538, %540, %cst_404 {dimension_numbers = #tpu.dot_dimension_numbers<[1], [0], [0], [1], [0, 0, 1, 1], [], []>} : vector<8x128xf32>, vector<128x32xf32>, vector<8x32xf32> -> vector<8x32xf32>
    %c1_405 = arith.constant 1 : index
    %c0_406 = arith.constant 0 : index
    %c0_407 = arith.constant 0 : index
    %542 = vector.load %arg16[%c1_405, %c0_406, %c0_407] : memref<2x1x32xf32, #tpu.memory_space<vmem>>, vector<1x1x32xf32>
    %543 = vector.shape_cast %542 : vector<1x1x32xf32> to vector<1x32xf32>
    %544 = vector.broadcast %543 : vector<1x32xf32> to vector<8x32xf32>
    %545 = arith.addf %541, %544 : vector<8x32xf32>
    %546 = arith.addf %491, %545 : vector<8x32xf32>
    %c1_408 = arith.constant 1 : index
    %c0_409 = arith.constant 0 : index
    %c0_410 = arith.constant 0 : index
    %547 = vector.load %arg19[%c1_408, %c0_409, %c0_410] : memref<2x1x32xf32, #tpu.memory_space<vmem>>, vector<1x1x32xf32>
    %548 = vector.shape_cast %547 : vector<1x1x32xf32> to vector<1x32xf32>
    %c1_411 = arith.constant 1 : index
    %c0_412 = arith.constant 0 : index
    %c0_413 = arith.constant 0 : index
    %549 = vector.load %arg20[%c1_411, %c0_412, %c0_413] : memref<2x1x32xf32, #tpu.memory_space<vmem>>, vector<1x1x32xf32>
    %550 = vector.shape_cast %549 : vector<1x1x32xf32> to vector<1x32xf32>
    %cst_414 = arith.constant dense<0.000000e+00> : vector<8xf32>
    %551 = vector.multi_reduction <add>, %546, %cst_414 [1] : vector<8x32xf32> to vector<8xf32>
    %552 = vector.shape_cast %551 : vector<8xf32> to vector<8x1xf32>
    %cst_415 = arith.constant 3.200000e+01 : f32
    %553 = vector.broadcast %cst_415 : f32 to vector<8x1xf32>
    %554 = arith.divf %552, %553 : vector<8x1xf32>
    %555 = vector.broadcast %554 : vector<8x1xf32> to vector<8x32xf32>
    %556 = arith.subf %546, %555 : vector<8x32xf32>
    %557 = arith.mulf %556, %556 : vector<8x32xf32>
    %cst_416 = arith.constant dense<0.000000e+00> : vector<8xf32>
    %558 = vector.multi_reduction <add>, %557, %cst_416 [1] : vector<8x32xf32> to vector<8xf32>
    %559 = vector.shape_cast %558 : vector<8xf32> to vector<8x1xf32>
    %cst_417 = arith.constant 3.200000e+01 : f32
    %560 = vector.broadcast %cst_417 : f32 to vector<8x1xf32>
    %561 = arith.divf %559, %560 : vector<8x1xf32>
    %cst_418 = arith.constant 9.99999974E-6 : f32
    %562 = vector.broadcast %cst_418 : f32 to vector<8x1xf32>
    %563 = arith.addf %561, %562 : vector<8x1xf32>
    %564 = math.rsqrt %563 : vector<8x1xf32>
    %565 = vector.broadcast %564 : vector<8x1xf32> to vector<8x32xf32>
    %566 = arith.mulf %556, %565 : vector<8x32xf32>
    %567 = vector.broadcast %548 : vector<1x32xf32> to vector<8x32xf32>
    %568 = arith.mulf %566, %567 : vector<8x32xf32>
    %569 = vector.broadcast %550 : vector<1x32xf32> to vector<8x32xf32>
    %570 = arith.addf %568, %569 : vector<8x32xf32>
    %c0_419 = arith.constant 0 : index
    %c0_420 = arith.constant 0 : index
    %571 = vector.load %arg21[%c0_419, %c0_420] : memref<32x2xf32, #tpu.memory_space<vmem>>, vector<32x2xf32>
    %cst_421 = arith.constant dense<0.000000e+00> : vector<8x2xf32>
    %572 = tpu.matmul %570, %571, %cst_421 {dimension_numbers = #tpu.dot_dimension_numbers<[1], [0], [0], [1], [0, 0, 1, 1], [], []>} : vector<8x32xf32>, vector<32x2xf32>, vector<8x2xf32> -> vector<8x2xf32>
    %c0_422 = arith.constant 0 : index
    %c0_423 = arith.constant 0 : index
    %573 = vector.load %arg22[%c0_422, %c0_423] : memref<1x2xf32, #tpu.memory_space<vmem>>, vector<1x2xf32>
    %574 = vector.broadcast %573 : vector<1x2xf32> to vector<8x2xf32>
    %575 = arith.addf %572, %574 : vector<8x2xf32>
    %c0_424 = arith.constant 0 : index
    %c0_425 = arith.constant 0 : index
    %c0_426 = arith.constant 0 : index
    %576 = vector.load %arg23[%c0_424, %c0_425, %c0_426] : memref<1x8x2xf32, #tpu.memory_space<vmem>>, vector<1x8x2xf32>
    %577 = vector.shape_cast %576 : vector<1x8x2xf32> to vector<8x2xf32>
    %578 = vector.shape_cast %575 : vector<8x2xf32> to vector<1x8x2xf32>
    tpu.vector_store %arg23[%c0_424, %c0_425, %c0_426], %578 {strides = array<i32>} : memref<1x8x2xf32, #tpu.memory_space<vmem>>, vector<1x8x2xf32>,
    return
  }
  func.func @transform_0(%arg0: i32) -> (i32, i32, i32) {
    %c0_i32 = arith.constant 0 : i32
    %c0_i32_0 = arith.constant 0 : i32
    %c0_i32_1 = arith.constant 0 : i32
    return %arg0, %c0_i32, %c0_i32_0 : i32, i32, i32
  }
  func.func @transform_1(%arg0: i32) -> (i32, i32) {
    %c0_i32 = arith.constant 0 : i32
    %c0_i32_0 = arith.constant 0 : i32
    %c0_i32_1 = arith.constant 0 : i32
    return %c0_i32, %c0_i32_0 : i32, i32
  }
  func.func @transform_2(%arg0: i32) -> (i32, i32) {
    %c0_i32 = arith.constant 0 : i32
    %c0_i32_0 = arith.constant 0 : i32
    %c0_i32_1 = arith.constant 0 : i32
    return %c0_i32, %c0_i32_0 : i32, i32
  }
  func.func @transform_3(%arg0: i32) -> (i32, i32) {
    %c0_i32 = arith.constant 0 : i32
    %c0_i32_0 = arith.constant 0 : i32
    %c0_i32_1 = arith.constant 0 : i32
    return %c0_i32, %c0_i32_0 : i32, i32
  }
  func.func @transform_4(%arg0: i32) -> (i32, i32, i32, i32) {
    %c0_i32 = arith.constant 0 : i32
    %c0_i32_0 = arith.constant 0 : i32
    %c0_i32_1 = arith.constant 0 : i32
    %c0_i32_2 = arith.constant 0 : i32
    %c0_i32_3 = arith.constant 0 : i32
    return %c0_i32, %c0_i32_0, %c0_i32_1, %c0_i32_2 : i32, i32, i32, i32
  }
  func.func @transform_5(%arg0: i32) -> (i32, i32, i32, i32) {
    %c0_i32 = arith.constant 0 : i32
    %c0_i32_0 = arith.constant 0 : i32
    %c0_i32_1 = arith.constant 0 : i32
    %c0_i32_2 = arith.constant 0 : i32
    %c0_i32_3 = arith.constant 0 : i32
    return %c0_i32, %c0_i32_0, %c0_i32_1, %c0_i32_2 : i32, i32, i32, i32
  }
  func.func @transform_6(%arg0: i32) -> (i32, i32, i32, i32) {
    %c0_i32 = arith.constant 0 : i32
    %c0_i32_0 = arith.constant 0 : i32
    %c0_i32_1 = arith.constant 0 : i32
    %c0_i32_2 = arith.constant 0 : i32
    %c0_i32_3 = arith.constant 0 : i32
    return %c0_i32, %c0_i32_0, %c0_i32_1, %c0_i32_2 : i32, i32, i32, i32
  }
  func.func @transform_7(%arg0: i32) -> (i32, i32, i32, i32) {
    %c0_i32 = arith.constant 0 : i32
    %c0_i32_0 = arith.constant 0 : i32
    %c0_i32_1 = arith.constant 0 : i32
    %c0_i32_2 = arith.constant 0 : i32
    %c0_i32_3 = arith.constant 0 : i32
    return %c0_i32, %c0_i32_0, %c0_i32_1, %c0_i32_2 : i32, i32, i32, i32
  }
  func.func @transform_8(%arg0: i32) -> (i32, i32, i32, i32) {
    %c0_i32 = arith.constant 0 : i32
    %c0_i32_0 = arith.constant 0 : i32
    %c0_i32_1 = arith.constant 0 : i32
    %c0_i32_2 = arith.constant 0 : i32
    %c0_i32_3 = arith.constant 0 : i32
    return %c0_i32, %c0_i32_0, %c0_i32_1, %c0_i32_2 : i32, i32, i32, i32
  }
  func.func @transform_9(%arg0: i32) -> (i32, i32, i32, i32) {
    %c0_i32 = arith.constant 0 : i32
    %c0_i32_0 = arith.constant 0 : i32
    %c0_i32_1 = arith.constant 0 : i32
    %c0_i32_2 = arith.constant 0 : i32
    %c0_i32_3 = arith.constant 0 : i32
    return %c0_i32, %c0_i32_0, %c0_i32_1, %c0_i32_2 : i32, i32, i32, i32
  }
  func.func @transform_10(%arg0: i32) -> (i32, i32, i32, i32) {
    %c0_i32 = arith.constant 0 : i32
    %c0_i32_0 = arith.constant 0 : i32
    %c0_i32_1 = arith.constant 0 : i32
    %c0_i32_2 = arith.constant 0 : i32
    %c0_i32_3 = arith.constant 0 : i32
    return %c0_i32, %c0_i32_0, %c0_i32_1, %c0_i32_2 : i32, i32, i32, i32
  }
  func.func @transform_11(%arg0: i32) -> (i32, i32, i32) {
    %c0_i32 = arith.constant 0 : i32
    %c0_i32_0 = arith.constant 0 : i32
    %c0_i32_1 = arith.constant 0 : i32
    %c0_i32_2 = arith.constant 0 : i32
    return %c0_i32, %c0_i32_0, %c0_i32_1 : i32, i32, i32
  }
  func.func @transform_12(%arg0: i32) -> (i32, i32, i32) {
    %c0_i32 = arith.constant 0 : i32
    %c0_i32_0 = arith.constant 0 : i32
    %c0_i32_1 = arith.constant 0 : i32
    %c0_i32_2 = arith.constant 0 : i32
    return %c0_i32, %c0_i32_0, %c0_i32_1 : i32, i32, i32
  }
  func.func @transform_13(%arg0: i32) -> (i32, i32, i32) {
    %c0_i32 = arith.constant 0 : i32
    %c0_i32_0 = arith.constant 0 : i32
    %c0_i32_1 = arith.constant 0 : i32
    %c0_i32_2 = arith.constant 0 : i32
    return %c0_i32, %c0_i32_0, %c0_i32_1 : i32, i32, i32
  }
  func.func @transform_14(%arg0: i32) -> (i32, i32, i32) {
    %c0_i32 = arith.constant 0 : i32
    %c0_i32_0 = arith.constant 0 : i32
    %c0_i32_1 = arith.constant 0 : i32
    %c0_i32_2 = arith.constant 0 : i32
    return %c0_i32, %c0_i32_0, %c0_i32_1 : i32, i32, i32
  }
  func.func @transform_15(%arg0: i32) -> (i32, i32, i32) {
    %c0_i32 = arith.constant 0 : i32
    %c0_i32_0 = arith.constant 0 : i32
    %c0_i32_1 = arith.constant 0 : i32
    %c0_i32_2 = arith.constant 0 : i32
    return %c0_i32, %c0_i32_0, %c0_i32_1 : i32, i32, i32
  }
  func.func @transform_16(%arg0: i32) -> (i32, i32, i32) {
    %c0_i32 = arith.constant 0 : i32
    %c0_i32_0 = arith.constant 0 : i32
    %c0_i32_1 = arith.constant 0 : i32
    %c0_i32_2 = arith.constant 0 : i32
    return %c0_i32, %c0_i32_0, %c0_i32_1 : i32, i32, i32
  }
  func.func @transform_17(%arg0: i32) -> (i32, i32, i32) {
    %c0_i32 = arith.constant 0 : i32
    %c0_i32_0 = arith.constant 0 : i32
    %c0_i32_1 = arith.constant 0 : i32
    %c0_i32_2 = arith.constant 0 : i32
    return %c0_i32, %c0_i32_0, %c0_i32_1 : i32, i32, i32
  }
  func.func @transform_18(%arg0: i32) -> (i32, i32, i32) {
    %c0_i32 = arith.constant 0 : i32
    %c0_i32_0 = arith.constant 0 : i32
    %c0_i32_1 = arith.constant 0 : i32
    %c0_i32_2 = arith.constant 0 : i32
    return %c0_i32, %c0_i32_0, %c0_i32_1 : i32, i32, i32
  }
  func.func @transform_19(%arg0: i32) -> (i32, i32, i32) {
    %c0_i32 = arith.constant 0 : i32
    %c0_i32_0 = arith.constant 0 : i32
    %c0_i32_1 = arith.constant 0 : i32
    %c0_i32_2 = arith.constant 0 : i32
    return %c0_i32, %c0_i32_0, %c0_i32_1 : i32, i32, i32
  }
  func.func @transform_20(%arg0: i32) -> (i32, i32) {
    %c0_i32 = arith.constant 0 : i32
    %c0_i32_0 = arith.constant 0 : i32
    %c0_i32_1 = arith.constant 0 : i32
    return %c0_i32, %c0_i32_0 : i32, i32
  }
  func.func @transform_21(%arg0: i32) -> (i32, i32) {
    %c0_i32 = arith.constant 0 : i32
    %c0_i32_0 = arith.constant 0 : i32
    %c0_i32_1 = arith.constant 0 : i32
    return %c0_i32, %c0_i32_0 : i32, i32
  }
  func.func @transform_22(%arg0: i32) -> (i32, i32, i32) {
    %c0_i32 = arith.constant 0 : i32
    %c0_i32_0 = arith.constant 0 : i32
    %c0_i32_1 = arith.constant 0 : i32
    return %arg0, %c0_i32, %c0_i32_0 : i32, i32, i32
  }
}

</mosaic_0001>

<bundles_post_ra>
// kernel: disprot_transformer.1
= control target key start
LH: loop header
LB: loop body
LE: loop exit
PB: predicated region body
PF: predicated region fallthrough
CT: control target
= control target key end

     0   :  { %s7654_s0 = inlined_call_operand.vmem [shape: f32[2,8,16], index: 0, kind: input, shape index: {}]   ;;  %s7655_s1 = inlined_call_operand.vmem [shape: f32[8,32], index: 1, kind: input, shape index: {}]   ;;  %s7656_s2 = inlined_call_operand.vmem [shape: f32[16,32], index: 2, kind: input, shape index: {}]   ;;  %s7657_s3 = inlined_call_operand.vmem [shape: f32[1,32], index: 3, kind: input, shape index: {}]   ;;  %s7658_s4 = inlined_call_operand.vmem [shape: f32[2,4,32,8], index: 4, kind: input, shape index: {}]   ;;  %s7659_s5 = inlined_call_operand.vmem [shape: f32[2,4,1,8], index: 5, kind: input, shape index: {}]   ;;  %s7660_s6 = inlined_call_operand.vmem [shape: f32[2,4,32,8], index: 6, kind: input, shape index: {}]   ;;  %s7661_s7 = inlined_call_operand.vmem [shape: f32[2,4,1,8], index: 7, kind: input, shape index: {}]   ;;  %s7662_s8 = inlined_call_operand.vmem [shape: f32[2,4,32,8], index: 8, kind: input, shape index: {}]   ;;  %s7663_s9 = inlined_call_operand.vmem [shape: f32[2,4,1,8], index: 9, kind: input, shape index: {}]   ;;  %s7664_s10 = inlined_call_operand.vmem [shape: f32[2,4,8,32], index: 10, kind: input, shape index: {}]   ;;  %s7665_s11 = inlined_call_operand.vmem [shape: f32[2,1,32], index: 11, kind: input, shape index: {}]   ;;  %s7666_s12 = inlined_call_operand.vmem [shape: f32[2,32,128], index: 12, kind: input, shape index: {}]   ;;  %s7667_s13 = inlined_call_operand.vmem [shape: f32[2,1,128], index: 13, kind: input, shape index: {}]   ;;  %s7668_s14 = inlined_call_operand.vmem [shape: f32[2,128,32], index: 14, kind: input, shape index: {}]   ;;  %s7669_s15 = inlined_call_operand.vmem [shape: f32[2,1,32], index: 15, kind: input, shape index: {}]   ;;  %s7670_s16 = inlined_call_operand.vmem [shape: f32[2,1,32], index: 16, kind: input, shape index: {}]   ;;  %s7671_s17 = inlined_call_operand.vmem [shape: f32[2,1,32], index: 17, kind: input, shape index: {}]   ;;  %s7672_s18 = inlined_call_operand.vmem [shape: f32[2,1,32], index: 18, kind: input, shape index: {}]   ;;  %s7673_s19 = inlined_call_operand.vmem [shape: f32[2,1,32], index: 19, kind: input, shape index: {}]   ;;  %s7674_s20 = inlined_call_operand.vmem [shape: f32[32,2], index: 20, kind: input, shape index: {}]   ;;  %s7675_s21 = inlined_call_operand.vmem [shape: f32[1,2], index: 21, kind: input, shape index: {}]   ;;  %s7676_s22 = inlined_call_operand.vmem [shape: f32[2,8,2], index: 22, kind: output, shape index: {}]  }
   0x1   :  { %7683 = sst [smem:[#allocation2_spill]] %s7654_s0 }
   0x2   :  { %7684 = sst [smem:[#allocation3_spill]] %s7655_s1 }
   0x3   :  { %7685 = sst [smem:[#allocation4_spill]] %s7656_s2 }
   0x4   :  { %7686 = sst [smem:[#allocation5_spill]] %s7657_s3  ;;  %s6727_s3 = smov 0  }
   0x5   :  { %7687 = sst [smem:[#allocation6_spill]] %s7658_s4 }
   0x6   :  { %7688 = sst [smem:[#allocation7_spill]] %s7659_s5 }
   0x7   :  { %7689 = sst [smem:[#allocation8_spill]] %s7660_s6 }
   0x8 LB: > { %s5367_s28 = sadd.s32 4294967295, %s6607_s3   ;;  %p5371_p0 = scmp.ge.s32.totalorder %s6607_s3, 1  ;;  %s6607_s3 = sphi %s6727_s3, %s32_s3  }
   0x9   : > { %p611_p1 = scmp.lt.s32.totalorder %s6607_s3, 3 }
   0xb   : > { %p612_p2 = pnand %p5371_p0, %p611_p1 }
   0xc   : > { %s7690_s4 = sld [smem:[#allocation4_spill]] (!%p612_p2)  ;;  %p671_p3 = scmp.lt.s32.totalorder (!%p612_p2), %s5367_s28, 1  ;;  %v6609_v2 = vmov (!%p612_p2), 0.0|0.0   ;;  %vm6610_vm0 = vmmov (!%p612_p2), 0   ;;  %v6611_v4 = vmov (!%p612_p2), 0.0   ;;  %vm689_vm1 = vcmask (!%p612_p2), 130048  }
   0xd   : > { %615 = sbr.rel (%p612_p2) target bundleno = 10437 (0x28c5), region = 108  ;;  %6329 = vmatprep.subr.bf16.mxu0 (!%p612_p2), %v6609_v2  ;;  %5839 = vmatprep.mubr.msk.f32.mxu0 (!%p612_p2), %vm6610_vm0, %v6611_v4  ;;  %s7691_s24 = sld [smem:[#allocation6_spill]] (!%p612_p2)  ;;  %vm776_vm2 = vcmask (!%p612_p2), 261120   ;;  %v931_v24 = vld [vmem:[%s7662_s8] sm:$0xff] (!%p612_p2)  ;;  %v932_v25 = vld [vmem:[%s7662_s8 + $0x8] sm:$0xff] (!%p612_p2)  ;;  %v933_v27 = vld [vmem:[%s7662_s8 + $0x10] sm:$0xff] (!%p612_p2) }
   0xe   : > { %6332 = vmatprep.subr.bf16.mxu1 (!%p612_p2), %v6609_v2  ;;  %5850 = vmatprep.mubr.msk.f32.mxu1 (!%p612_p2), %vm6610_vm0, %v6611_v4  ;;  %s7692_s29 = sld [smem:[#allocation2_spill]] (!%p612_p2)  ;;  %s7693_s2 = sld [smem:[#allocation5_spill]] (!%p612_p2)  ;;  %v6345_v26 = vpack.c.bf16 (!%p612_p2), %v932_v25, %v931_v24  ;;  %v934_v28 = vld [vmem:[%s7662_s8 + $0x18] sm:$0xff] (!%p612_p2)  ;;  %v5399_v36 = vld [vmem:[%s7662_s8 + $0x20] sm:$0xff] (!%p612_p2)  ;;  %v5400_v37 = vld [vmem:[%s7662_s8 + $0x28] sm:$0xff] (!%p612_p2)  ;;  %vm1012_vm3 = vcmask (!%p612_p2), 64512  }
   0xf   : > { %s7695_s1 = sld [smem:[#allocation3_spill]] (!%p612_p2)  ;;  %v6348_v29 = vpack.c.bf16 (!%p612_p2), %v934_v28, %v933_v27  ;;  %v6363_v38 = vpack.c.bf16 (!%p612_p2), %v5400_v37, %v5399_v36  ;;  %v5401_v39 = vld [vmem:[%s7662_s8 + $0x30] sm:$0xff] (!%p612_p2)  ;;  %v5402_v40 = vld [vmem:[%s7662_s8 + $0x38] sm:$0xff] (!%p612_p2)  ;;  %v5378_v44 = vld [vmem:[%s7661_s7] ss:$0 sm:$0xff] (!%p612_p2)  ;;  %vm5312_vm6 = vcmask (!%p612_p2), 15360  }
  0x10   : > { %v6366_v41 = vpack.c.bf16 (!%p612_p2), %v5402_v40, %v5401_v39  ;;  %v5380_v50 = vld [vmem:[%s7663_s9] ss:$0 sm:$0xff] (!%p612_p2)  ;;  %v5404_v25 = vld [vmem:[%s7663_s9 + $0x1] ss:$0 sm:$0xff] (!%p612_p2)  ;;  %v5409_v37 = vld [vmem:[%s7664_s10 + $0x8] sm:$0xff] (!%p612_p2) }
  0x12   : > { %v680_v0 = vld [vmem:[%s7690_s4] sm:$0xff] (!%p612_p2)  ;;  %v681_v1 = vld [vmem:[%s7690_s4 + $0x8] sm:$0xff] (!%p612_p2) }
  0x13   : > { %v6330_v3 = vpack.c.bf16 (!%p612_p2), %v681_v1, %v680_v0  ;;  %v765_v5 = vld [vmem:[%s7691_s24] sm:$0xff] (!%p612_p2)  ;;  %v766_v6 = vld [vmem:[%s7691_s24 + $0x8] sm:$0xff] (!%p612_p2)  ;;  %v767_v9 = vld [vmem:[%s7691_s24 + $0x10] sm:$0xff] (!%p612_p2) }
  0x14   : > { %s7699_s28 = smov (!%p671_p3, %s5367_s28), 1  ;;  %v6333_v7 = vpack.c.bf16 %v766_v6, %v765_v5  ;;  %v768_v10 = vld [vmem:[%s7691_s24 + $0x18] sm:$0xff]  ;;  %v5374_v12 = vld [vmem:[%s7693_s2] ss:$0 sm:$0xff]  ;;  %v5386_v31 = vld [vmem:[%s7691_s24 + $0x28] sm:$0xff] }
  0x15   : > { %6331 = vmatpush3.bf16.msra.mxu0 %v6330_v3  ;;  %s7681_s26 = sshll.u32 %s7699_s28, 3  ;;  %v6336_v11 = vpack.c.bf16 %v768_v10, %v767_v9  ;;  %v763_v16 = vld [vmem:[%s7695_s1] sm:$0xff]  ;;  %v5387_v33 = vld [vmem:[%s7691_s24 + $0x30] sm:$0xff]  ;;  %v5388_v34 = vld [vmem:[%s7691_s24 + $0x38] sm:$0xff]  ;;  %s7696_s1 = sld [smem:[#allocation7_spill]] }
  0x16   : > { %6334 = vmatpush3.bf16.msra.mxu1 %v6333_v7  ;;  %5875 = vmatprep.subr.mxu0 %v6611_v4  ;;  %s674_s30 = scalar_lea.vmem %s7692_s29, %s7681_s26  ;;  %v5385_v30 = vld [vmem:[%s7691_s24 + $0x20] sm:$0xff]  ;;  %v6354_v35 = vpack.c.bf16 %v5388_v34, %v5387_v33  ;;  %s7697_s5 = sshll.u32 %s7699_s28, 3 }
  0x17   : > { %6335 = vmatprep.subr.bf16.mxu1 %v6609_v2  ;;  %v679_v8 = vld [vmem:[%s674_s30] sm:$0xff]  ;;  %s7694_s30 = sld [smem:[#allocation8_spill]]  ;;  %v6351_v32 = vpack.c.bf16 %v5386_v31, %v5385_v30  ;;  %s678_s2 = scalar_lea.vmem %s7676_s22, %s7697_s5 }
  0x18   : > { %5840 = vmatmul.mubr.msk.f32.vlgmr.msra.gmra.mrb[0].mxu0 %vm689_vm1, %v679_v8 }
  0x19   : > { %5877 = vmatprep.mubr.msk.f32.mxu0 %vm6610_vm0, %v6611_v4 }
  0x1a   : > { %6337 = vmatpush3.bf16.msra.mxu1 %v6336_v11 }
  0x1b   : > { %6338 = vmatprep.subr.bf16.mxu1 %v6609_v2  ;;  %v5376_v46 = vld [vmem:[%s7696_s1] ss:$0 sm:$0xff] }
  0x1d   : > { %v850_v13 = vld [vmem:[%s7694_s30] sm:$0xff]  ;;  %v851_v14 = vld [vmem:[%s7694_s30 + $0x8] sm:$0xff]  ;;  %v852_v21 = vld [vmem:[%s7694_s30 + $0x10] sm:$0xff] }
  0x1e   : > { %v6339_v19 = vpack.c.bf16 %v851_v14, %v850_v13  ;;  %v853_v22 = vld [vmem:[%s7694_s30 + $0x18] sm:$0xff]  ;;  %v5392_v9 = vld [vmem:[%s7694_s30 + $0x20] sm:$0xff]  ;;  %v5393_v10 = vld [vmem:[%s7694_s30 + $0x28] sm:$0xff] }
  0x1f   : > { %v6342_v23 = vpack.c.bf16 %v853_v22, %v852_v21  ;;  %v5394_v14 = vld [vmem:[%s7694_s30 + $0x30] sm:$0xff]  ;;  %v5390_v22 = vld [vmem:[%s7696_s1 + $0x1] ss:$0 sm:$0xff] }
  0xeb   : > { %v759_v15 = vpop.f32.mrb[0].mxu0 }
  0xec   : > { %v760_v17 = vadd.f32 %v5374_v12, %v759_v15  ;;  %v5841_v18 = vpop.f32.mrb[1].mxu0  ;;  %v6357_v12 = vpack.c.bf16 %v5393_v10, %v5392_v9  ;;  %v5395_v15 = vld [vmem:[%s7694_s30 + $0x38] sm:$0xff] }
  0xee   : > { %v6784_v20 = vadd.f32 %v763_v16, %v760_v17  ;;  %v6360_v16 = vpack.c.bf16 %v5395_v15, %v5394_v14 }
  0xf0   : > { %5851 = vmatmul.mubr.msk.f32.vlgmr.msra.gmra.mrb[0].mxu1 %vm776_vm2, %v6784_v20 }
  0xf1   : > { %6340 = vmatpush3.bf16.msra.mxu1 %v6339_v19  ;;  %5861 = vmatprep.mubr.msk.f32.mxu1 %vm6610_vm0, %v6611_v4  ;;  %v5397_v19 = vld [vmem:[%s7661_s7 + $0x1] ss:$0 sm:$0xff] }
  0xf2   : > { %6341 = vmatprep.subr.bf16.mxu1 %v6609_v2 }
  0xf5   : > { %6343 = vmatpush3.bf16.msra.mxu1 %v6342_v23 }
  0xf6   : > { %6344 = vmatprep.subr.bf16.mxu1 %v6609_v2 }
  0xf8   : > { %5862 = vmatmul.mubr.msk.f32.vlgmr.msra.gmra.mrb[2].mxu1 %vm776_vm2, %v6784_v20 }
  0xf9   : > { %6346 = vmatpush3.bf16.msra.mxu1 %v6345_v26  ;;  %5872 = vmatprep.mubr.msk.f32.mxu1 %vm6610_vm0, %v6611_v4 }
  0xfa   : > { %6347 = vmatprep.subr.bf16.mxu1 %v6609_v2 }
  0xfd   : > { %6349 = vmatpush3.bf16.msra.mxu1 %v6348_v29 }
  0xfe   : > { %6350 = vmatprep.subr.bf16.mxu1 %v6609_v2 }
 0x100   : > { %5873 = vmatmul.mubr.msk.f32.vlgmr.msra.gmra.mrb[4].mxu1 %vm776_vm2, %v6784_v20 }
 0x101   : > { %6352 = vmatpush3.bf16.msra.mxu1 %v6351_v32  ;;  %5893 = vmatprep.mubr.msk.f32.mxu1 %vm6610_vm0, %v6611_v4 }
 0x102   : > { %6353 = vmatprep.subr.bf16.mxu1 %v6609_v2 }
 0x105   : > { %6355 = vmatpush3.bf16.msra.mxu1 %v6354_v35 }
 0x106   : > { %6362 = vmatprep.subr.bf16.mxu1 %v6609_v2 }
 0x108   : > { %5894 = vmatmul.mubr.msk.f32.vlgmr.msra.gmra.mrb[6].mxu1 %vm776_vm2, %v6784_v20 }
 0x109   : > { %6364 = vmatpush3.bf16.msra.mxu1 %v6363_v38  ;;  %5915 = vmatprep.mubr.msk.f32.mxu1 %vm6610_vm0, %v6611_v4 }
 0x10a   : > { %6365 = vmatprep.subr.bf16.mxu1 %v6609_v2 }
 0x10d   : > { %6367 = vmatpush3.bf16.msra.mxu1 %v6366_v41 }
 0x10e   : > { %5928 = vmatprep.subr.mxu1 %v6611_v4 }
 0x110   : > { %5916 = vmatmul.mubr.msk.f32.vlgmr.msra.gmra.mrb[8].mxu1 %vm776_vm2, %v6784_v20 }
 0x111   : > { %5930 = vmatprep.mubr.msk.f32.mxu1 %vm6610_vm0, %v6611_v4  ;;  %5929 = vmatpush3.msra.mxu1 %v5409_v37 }
 0x112   : > { %6368 = vmatprep.subr.bf16.mxu1 %v6609_v2 }
 0x1c3   : > { %v846_v42 = vpop.f32.mrb[0].mxu1 }
 0x1c4   : > { %v5852_v43 = vpop.f32.mrb[1].mxu1  ;;  %v847_v49 = vadd.f32 %v5376_v46, %v846_v42  ;;  %v5420_v46 = vld [vmem:[%s7694_s30 + $0x48] sm:$0xff] }
 0x1cb   : > { %v927_v45 = vpop.f32.mrb[2].mxu1 }
 0x1cc   : > { %v928_v47 = vadd.f32 %v5378_v44, %v927_v45  ;;  %v5863_v48 = vpop.f32.mrb[3].mxu1  ;;  %v1177_v44 = vld [vmem:[%s7664_s10] sm:$0xff] }
 0x1cd   : > { %v5419_v45 = vld [vmem:[%s7694_s30 + $0x40] sm:$0xff]  ;;  %v5421_v48 = vld [vmem:[%s7694_s30 + $0x50] sm:$0xff] }
 0x1ce   : > { %5876 = vmatpush3.xpose.msk.msra.mxu0 %vm1012_vm3, %v928_v47  ;;  %v6375_v47 = vpack.c.bf16 %v5420_v46, %v5419_v45  ;;  %v5454_v46 = vld [vmem:[%s7662_s8 + $0x70] sm:$0xff] }
 0x1cf   : > { %5880 = vmatprep.subr.mxu0 %v6611_v4 }
 0x1d1   : > { %5878 = vmatmul.mubr.msk.f32.vlgmr.msra.gmra.mrb[2].mxu0 %vm1012_vm3, %v847_v49  ;;  %v5422_v49 = vld [vmem:[%s7694_s30 + $0x58] sm:$0xff] }
 0x1d2   : > { %5882 = vmatprep.mubr.msk.f32.mxu0 %vm6610_vm0, %v6611_v4 }
 0x1d3   : > { %v1008_v51 = vpop.f32.mrb[4].mxu1 }
 0x1d4   : > { %v1009_v52 = vadd.f32 %v5380_v50, %v1008_v51  ;;  %v5874_v53 = vpop.f32.mrb[5].mxu1  ;;  %v6378_v50 = vpack.c.bf16 %v5422_v49, %v5421_v48  ;;  %v5412_v51 = vld [vmem:[%s7691_s24 + $0x40] sm:$0xff] }
 0x1d5   : > { %v5445_v49 = vld [vmem:[%s7694_s30 + $0x60] sm:$0xff] }
 0x1d6   : > { %5881 = vmatpush3.msra.mxu0 %v1009_v52  ;;  %v5413_v52 = vld [vmem:[%s7691_s24 + $0x48] sm:$0xff] }
 0x1d7   : > { %6356 = vmatprep.subr.bf16.mxu0 %v6609_v2  ;;  %v6369_v53 = vpack.c.bf16 %v5413_v52, %v5412_v51  ;;  %v5447_v52 = vld [vmem:[%s7694_s30 + $0x70] sm:$0xff] }
 0x1db   : > { %v1257_v54 = vpop.f32.mrb[6].mxu1 }
 0x1dc   : > { %v5895_v55 = vpop.f32.mrb[7].mxu1  ;;  %v1258_v26 = vadd.f32 %v5390_v22, %v1257_v54  ;;  %v5414_v54 = vld [vmem:[%s7691_s24 + $0x50] sm:$0xff] }
 0x1dd   : > { %v5415_v55 = vld [vmem:[%s7691_s24 + $0x58] sm:$0xff] }
 0x1e3   : > { %v1423_v56 = vpop.f32.mrb[8].mxu1 }
 0x1e4   : > { %v5917_v57 = vpop.f32.mrb[9].mxu1  ;;  %v1424_v27 = vadd.f32 %v5404_v25, %v1423_v56 }
 0x2a4   : > { %v1085_v58 = vpop.f32.mrb[2].mxu0 }
 0x2a5   : > { %v1089_v59 = vmul.f32 0.35355338, %v1085_v58  ;;  %v5879_v60 = vpop.f32.mrb[3].mxu0  ;;  %v6372_v58 = vpack.c.bf16 %v5415_v55, %v5414_v54 }
 0x2a6   : > { %v5427_v60 = vld [vmem:[%s7662_s8 + $0x48] sm:$0xff] }
 0x2a7   : > { %v1090_v61 = vsel %vm1012_vm3, %v1089_v59, -inf }
 0x2a8   : > { %1091 = vmax.xlane.f32.xlu0 %v1090_v61 }
 0x335   : > { %v1092_v62 = vpop.xlane.xlu0 %1091 }
 0x336   : > { %v1093_v63 = vsub.f32 %v1089_v59, %v1092_v62  ;;  %v5426_v59 = vld [vmem:[%s7662_s8 + $0x40] sm:$0xff] }
 0x338   : > { %v1094_v0 = vmul.f32 1.442695, %v1093_v63  ;;  %v6381_v63 = vpack.c.bf16 %v5427_v60, %v5426_v59 }
 0x33a   : > { %6553 = vpow2.f32 %v1094_v0  ;;  %v5428_v0 = vld [vmem:[%s7662_s8 + $0x50] sm:$0xff] }
 0x344   : > { %v6554_v1 = vpop.eup %6553 }
 0x345   : > { %v1096_v3 = vsel %vm1012_vm3, %v6554_v1, 0.0 }
 0x346   : > { %1097 = vadd.xlane.f32.xlu0 %v1096_v3  ;;  %v5424_v3 = vld [vmem:[%s7661_s7 + $0x2] ss:$0 sm:$0xff] }
 0x3d3   : > { %v1098_v5 = vpop.xlane.xlu0 %1097 }
 0x3d4   : > { %6555 = vrcp.f32 %v1098_v5 }
 0x3de   : > { %v6556_v6 = vpop.eup %6555 }
 0x3df   : > { %v1100_v7 = vmul.f32 %v6556_v6, %v1098_v5 }
 0x3e1   : > { %v1101_v8 = vsub.f32 2.0, %v1100_v7 }
 0x3e3   : > { %v1102_v11 = vmul.f32 %v6556_v6, %v1101_v8 }
 0x3e5   : > { %v1103_v13 = vmul.f32 %v6554_v1, %v1102_v11  ;;  %v5429_v1 = vld [vmem:[%s7662_s8 + $0x58] sm:$0xff] }
 0x3e6   : > { %v6384_v5 = vpack.c.bf16 %v5429_v1, %v5428_v0  ;;  %v5450_v0 = vld [vmem:[%s7661_s7 + $0x3] ss:$0 sm:$0xff] }
 0x3e7   : > { %5883 = vmatmul.mubr.msk.f32.vlgmr.msra.gmra.mrb[4].mxu0 %vm1012_vm3, %v1103_v13 }
 0x3e8   : > { %6358 = vmatpush3.bf16.msra.mxu0 %v6357_v12  ;;  %5904 = vmatprep.mubr.msk.f32.mxu0 %vm6610_vm0, %v6611_v4  ;;  %v5417_v12 = vld [vmem:[%s7696_s1 + $0x2] ss:$0 sm:$0xff] }
 0x3e9   : > { %6359 = vmatprep.subr.bf16.mxu0 %v6609_v2 }
 0x3ec   : > { %6361 = vmatpush3.bf16.msra.mxu0 %v6360_v16  ;;  %v5431_v16 = vld [vmem:[%s7663_s9 + $0x2] ss:$0 sm:$0xff] }
 0x3ed   : > { %5918 = vmatprep.subr.mxu0 %v6611_v4 }
 0x3ef   : > { %5905 = vmatmul.mubr.msk.f32.vlgmr.msra.gmra.mrb[6].mxu0 %vm776_vm2, %v6784_v20 }
 0x3f0   : > { %5920 = vmatprep.mubr.msk.f32.mxu0 %vm6610_vm0, %v6611_v4 }
 0x4ba   : > { %v1173_v17 = vpop.f32.mrb[4].mxu0 }
 0x4bb   : > { %v5884_v18 = vpop.f32.mrb[5].mxu0 }
 0x4c2   : > { %v1340_v21 = vpop.f32.mrb[6].mxu0 }
 0x4c3   : > { %v1341_v23 = vadd.f32 %v5397_v19, %v1340_v21  ;;  %v5906_v24 = vpop.f32.mrb[7].mxu0 }
 0x4c5   : > { %5919 = vmatpush3.xpose.msk.msra.mxu0 %vm1012_vm3, %v1341_v23 }
 0x4c6   : > { %5923 = vmatprep.subr.mxu0 %v6611_v4 }
 0x4c8   : > { %5921 = vmatmul.mubr.msk.f32.vlgmr.msra.gmra.mrb[8].mxu0 %vm1012_vm3, %v1258_v26 }
 0x4c9   : > { %5924 = vmatpush3.msra.mxu0 %v1424_v27  ;;  %5925 = vmatprep.mubr.msk.f32.mxu0 %vm6610_vm0, %v6611_v4 }
 0x4ca   : > { %5933 = vmatprep.subr.mxu0 %v6611_v4 }
 0x59b   : > { %v1499_v28 = vpop.f32.mrb[8].mxu0 }
 0x59c   : > { %v1503_v29 = vmul.f32 0.35355338, %v1499_v28  ;;  %v5922_v30 = vpop.f32.mrb[9].mxu0 }
 0x59d   : > { %v5436_v30 = vld [vmem:[%s7664_s10 + $0x10] sm:$0xff] }
 0x59e   : > { %v1504_v31 = vsel %vm1012_vm3, %v1503_v29, -inf }
 0x59f   : > { %1505 = vmax.xlane.f32.xlu1 %v1504_v31 }
 0x62c   : > { %v1506_v32 = vpop.xlane.xlu1 %1505 }
 0x62d   : > { %v1507_v33 = vsub.f32 %v1503_v29, %v1506_v32 }
 0x62f   : > { %v1508_v34 = vmul.f32 1.442695, %v1507_v33 }
 0x631   : > { %6557 = vpow2.f32 %v1508_v34 }
 0x63b   : > { %v6558_v35 = vpop.eup %6557 }
 0x63c   : > { %v1510_v36 = vsel %vm1012_vm3, %v6558_v35, 0.0 }
 0x63d   : > { %1511 = vadd.xlane.f32.xlu1 %v1510_v36  ;;  %v5439_v36 = vld [vmem:[%s7691_s24 + $0x68] sm:$0xff] }
 0x6ca   : > { %v1512_v38 = vpop.xlane.xlu1 %1511 }
 0x6cb   : > { %6559 = vrcp.f32 %v1512_v38 }
 0x6d5   : > { %v6560_v39 = vpop.eup %6559 }
 0x6d6   : > { %v1514_v40 = vmul.f32 %v6560_v39, %v1512_v38 }
 0x6d8   : > { %v1515_v41 = vsub.f32 2.0, %v1514_v40  ;;  %v5440_v40 = vld [vmem:[%s7691_s24 + $0x70] sm:$0xff] }
 0x6da   : > { %v1516_v42 = vmul.f32 %v6560_v39, %v1515_v41  ;;  %v5441_v41 = vld [vmem:[%s7691_s24 + $0x78] sm:$0xff] }
 0x6dc   : > { %v1517_v43 = vmul.f32 %v6558_v35, %v1516_v42  ;;  %v5438_v35 = vld [vmem:[%s7691_s24 + $0x60] sm:$0xff]  ;;  %v6390_v42 = vpack.c.bf16 %v5441_v41, %v5440_v40 }
 0x6dd   : > { %v6387_v38 = vpack.c.bf16 %v5439_v36, %v5438_v35  ;;  %v2756_v41 = vld [vmem:[%s7666_s12] sm:$0xff] }
 0x6de   : > { %5926 = vmatmul.mubr.msk.f32.vlgmr.msra.gmra.mrb[10].mxu0 %vm1012_vm3, %v1517_v43  ;;  %v5452_v43 = vld [vmem:[%s7662_s8 + $0x60] sm:$0xff] }
 0x6df   : > { %5934 = vmatpush3.msra.mxu0 %v1177_v44  ;;  %5935 = vmatprep.mubr.msk.f32.mxu0 %vm6610_vm0, %v6611_v4  ;;  %v5453_v44 = vld [vmem:[%s7662_s8 + $0x68] sm:$0xff] }
 0x6e0   : > { %6374 = vmatprep.subr.bf16.mxu0 %v6609_v2  ;;  %v6399_v45 = vpack.c.bf16 %v5453_v44, %v5452_v43  ;;  %v2759_v44 = vld [vmem:[%s7666_s12 + $0x18] sm:$0xff] }
 0x6e2   : > { %5936 = vmatmul.mubr.msk.f32.vlgmr.msra.gmra.mrb[12].mxu0 %vm1012_vm3, %v1173_v17 }
 0x6e3   : > { %6376 = vmatpush3.bf16.msra.mxu0 %v6375_v47  ;;  %5957 = vmatprep.mubr.msk.f32.mxu0 %vm6610_vm0, %v6611_v4  ;;  %v5455_v47 = vld [vmem:[%s7662_s8 + $0x78] sm:$0xff] }
 0x6e4   : > { %6377 = vmatprep.subr.bf16.mxu0 %v6609_v2  ;;  %v6402_v48 = vpack.c.bf16 %v5455_v47, %v5454_v46 }
 0x6e7   : > { %6379 = vmatpush3.bf16.msra.mxu0 %v6378_v50  ;;  %v5446_v50 = vld [vmem:[%s7694_s30 + $0x68] sm:$0xff] }
 0x6e8   : > { %5971 = vmatprep.subr.mxu0 %v6611_v4  ;;  %v6393_v51 = vpack.c.bf16 %v5446_v50, %v5445_v49  ;;  %v5465_v50 = vld [vmem:[%s7670_s16] ss:$0 sm:$0xff] }
 0x6ea   : > { %5958 = vmatmul.mubr.msk.f32.vlgmr.msra.gmra.mrb[14].mxu0 %vm776_vm2, %v6784_v20 }
 0x6eb   : > { %5973 = vmatprep.mubr.msk.f32.mxu0 %vm6610_vm0, %v6611_v4 }
 0x7b1   : > { %v1587_v56 = vpop.f32.mrb[10].mxu0 }
 0x7b2   : > { %v5927_v57 = vpop.f32.mrb[11].mxu0  ;;  %5931 = vmatmul.mubr.msk.f32.vlgmr.msra.gmra.mrb[10].mxu1 %vm1012_vm3, %v1587_v56 }
 0x7b3   : > { %6370 = vmatpush3.bf16.msra.mxu1 %v6369_v53  ;;  %5946 = vmatprep.mubr.msk.f32.mxu1 %vm6610_vm0, %v6611_v4  ;;  %v5448_v53 = vld [vmem:[%s7694_s30 + $0x78] sm:$0xff] }
 0x7b4   : > { %6371 = vmatprep.subr.bf16.mxu1 %v6609_v2  ;;  %v6396_v56 = vpack.c.bf16 %v5448_v53, %v5447_v52  ;;  %v5466_v52 = vld [vmem:[%s7671_s17] ss:$0 sm:$0xff] }
 0x7b5   : > { %v1735_v61 = vpop.f32.mrb[12].mxu0 }
 0x7b6   : > { %v5937_v62 = vpop.f32.mrb[13].mxu0 }
 0x7b7   : > { %6373 = vmatpush3.bf16.msra.mxu1 %v6372_v58 }
 0x7b8   : > { %6380 = vmatprep.subr.bf16.mxu1 %v6609_v2 }
 0x7ba   : > { %5947 = vmatmul.mubr.msk.f32.vlgmr.msra.gmra.mrb[12].mxu1 %vm776_vm2, %v6784_v20 }
 0x7bb   : > { %6382 = vmatpush3.bf16.msra.mxu1 %v6381_v63  ;;  %5968 = vmatprep.mubr.msk.f32.mxu1 %vm6610_vm0, %v6611_v4 }
 0x7bc   : > { %6383 = vmatprep.subr.bf16.mxu1 %v6609_v2 }
 0x7bd   : > { %v1901_v6 = vpop.f32.mrb[14].mxu0 }
 0x7be   : > { %v1902_v7 = vadd.f32 %v5424_v3, %v1901_v6  ;;  %v5959_v8 = vpop.f32.mrb[15].mxu0  ;;  %v5443_v3 = vld [vmem:[%s7696_s1 + $0x3] ss:$0 sm:$0xff] }
 0x7bf   : > { %6385 = vmatpush3.bf16.msra.mxu1 %v6384_v5 }
 0x7c0   : > { %5972 = vmatpush3.xpose.msk.msra.mxu0 %vm1012_vm3, %v1902_v7  ;;  %5981 = vmatprep.subr.mxu1 %v6611_v4  ;;  %v5457_v7 = vld [vmem:[%s7663_s9 + $0x3] ss:$0 sm:$0xff] }
 0x7c1   : > { %5976 = vmatprep.subr.mxu0 %v6611_v4 }
 0x7c2   : > { %5969 = vmatmul.mubr.msk.f32.vlgmr.msra.gmra.mrb[14].mxu1 %vm776_vm2, %v6784_v20 }
 0x7c3   : > { %5983 = vmatprep.mubr.msk.f32.mxu1 %vm6610_vm0, %v6611_v4  ;;  %5982 = vmatpush3.msra.mxu1 %v5436_v30  ;;  %v5464_v30 = vld [vmem:[%s7665_s11] ss:$0 sm:$0xff] }
 0x7c4   : > { %6392 = vmatprep.subr.bf16.mxu1 %v6609_v2 }
 0x885   : > { %v1662_v9 = vpop.f32.mrb[10].mxu1 }
 0x886   : > { %v6987_v10 = vadd.f32 %v1735_v61, %v1662_v9  ;;  %v5932_v11 = vpop.f32.mrb[11].mxu1 }
 0x88d   : > { %v1818_v13 = vpop.f32.mrb[12].mxu1 }
 0x88e   : > { %v1819_v14 = vadd.f32 %v5417_v12, %v1818_v13  ;;  %v5948_v15 = vpop.f32.mrb[13].mxu1 }
 0x890   : > { %5974 = vmatmul.mubr.msk.f32.vlgmr.msra.gmra.mrb[16].mxu0 %vm1012_vm3, %v1819_v14 }
 0x891   : > { %5978 = vmatprep.mubr.msk.f32.mxu0 %vm6610_vm0, %v6611_v4 }
 0x895   : > { %v1984_v17 = vpop.f32.mrb[14].mxu1 }
 0x896   : > { %v1985_v18 = vadd.f32 %v5431_v16, %v1984_v17  ;;  %v5970_v19 = vpop.f32.mrb[15].mxu1 }
 0x897   : > { %v5462_v19 = vld [vmem:[%s7664_s10 + $0x18] sm:$0xff] }
 0x898   : > { %5977 = vmatpush3.msra.mxu0 %v1985_v18 }
 0x899   : > { %6386 = vmatprep.subr.bf16.mxu0 %v6609_v2 }
 0x963   : > { %v2060_v21 = vpop.f32.mrb[16].mxu0 }
 0x964   : > { %v2064_v22 = vmul.f32 0.35355338, %v2060_v21  ;;  %v5975_v23 = vpop.f32.mrb[17].mxu0 }
 0x966   : > { %v2065_v24 = vsel %vm1012_vm3, %v2064_v22, -inf }
 0x967   : > { %2066 = vmax.xlane.f32.xlu0 %v2065_v24 }
 0x9f4   : > { %v2067_v25 = vpop.xlane.xlu0 %2066 }
 0x9f5   : > { %v2068_v26 = vsub.f32 %v2064_v22, %v2067_v25 }
 0x9f7   : > { %v2069_v27 = vmul.f32 1.442695, %v2068_v26 }
 0x9f9   : > { %6561 = vpow2.f32 %v2069_v27 }
 0xa03   : > { %v6562_v28 = vpop.eup %6561 }
 0xa04   : > { %v2071_v29 = vsel %vm1012_vm3, %v6562_v28, 0.0 }
 0xa05   : > { %2072 = vadd.xlane.f32.xlu1 %v2071_v29 }
 0xa92   : > { %v2073_v31 = vpop.xlane.xlu1 %2072 }
 0xa93   : > { %6563 = vrcp.f32 %v2073_v31 }
 0xa9d   : > { %v6564_v32 = vpop.eup %6563 }
 0xa9e   : > { %v2075_v33 = vmul.f32 %v6564_v32, %v2073_v31 }
 0xaa0   : > { %v2076_v34 = vsub.f32 2.0, %v2075_v33 }
 0xaa2   : > { %v2077_v37 = vmul.f32 %v6564_v32, %v2076_v34 }
 0xaa4   : > { %v2078_v39 = vmul.f32 %v6562_v28, %v2077_v37 }
 0xaa6   : > { %5979 = vmatmul.mubr.msk.f32.vlgmr.msra.gmra.mrb[18].mxu0 %vm1012_vm3, %v2078_v39 }
 0xaa7   : > { %6388 = vmatpush3.bf16.msra.mxu0 %v6387_v38  ;;  %5994 = vmatprep.mubr.msk.f32.mxu0 %vm6610_vm0, %v6611_v4 }
 0xaa8   : > { %6389 = vmatprep.subr.bf16.mxu0 %v6609_v2 }
 0xaab   : > { %6391 = vmatpush3.bf16.msra.mxu0 %v6390_v42  ;;  %v2757_v42 = vld [vmem:[%s7666_s12 + $0x8] sm:$0xff] }
 0xaac   : > { %6398 = vmatprep.subr.bf16.mxu0 %v6609_v2  ;;  %v6405_v43 = vpack.c.bf16 %v2757_v42, %v2756_v41 }
 0xaae   : > { %5995 = vmatmul.mubr.msk.f32.vlgmr.msra.gmra.mrb[20].mxu0 %vm776_vm2, %v6784_v20 }
 0xaaf   : > { %6400 = vmatpush3.bf16.msra.mxu0 %v6399_v45  ;;  %6016 = vmatprep.mubr.msk.f32.mxu0 %vm6610_vm0, %v6611_v4 }
 0xab0   : > { %6401 = vmatprep.subr.bf16.mxu0 %v6609_v2 }
 0xab3   : > { %6403 = vmatpush3.bf16.msra.mxu0 %v6402_v48 }
 0xab4   : > { %6029 = vmatprep.subr.mxu0 %v6611_v4 }
 0xab6   : > { %6017 = vmatmul.mubr.msk.f32.vlgmr.msra.gmra.mrb[22].mxu0 %vm776_vm2, %v6784_v20 }
 0xab7   : > { %6031 = vmatprep.mubr.msk.f32.mxu0 %vm6610_vm0, %v6611_v4  ;;  %6030 = vmatpush3.msra.mxu0 %v5462_v19 }
 0xab8   : > { %6410 = vmatprep.subr.bf16.mxu0 %v6609_v2 }
 0xb79   : > { %v2148_v54 = vpop.f32.mrb[18].mxu0 }
 0xb7a   : > { %v5980_v55 = vpop.f32.mrb[19].mxu0  ;;  %5984 = vmatmul.mubr.msk.f32.vlgmr.msra.gmra.mrb[16].mxu1 %vm1012_vm3, %v2148_v54 }
 0xb7b   : > { %6394 = vmatpush3.bf16.msra.mxu1 %v6393_v51  ;;  %6005 = vmatprep.mubr.msk.f32.mxu1 %vm6610_vm0, %v6611_v4  ;;  %v2867_v55 = vld [vmem:[%s7668_s14] sm:$0xff] }
 0xb7c   : > { %6395 = vmatprep.subr.bf16.mxu1 %v6609_v2 }
 0xb7f   : > { %6397 = vmatpush3.bf16.msra.mxu1 %v6396_v56  ;;  %v2868_v56 = vld [vmem:[%s7668_s14 + $0x8] sm:$0xff] }
 0xb80   : > { %6019 = vmatprep.subr.mxu1 %v6611_v4 }
 0xb81   : > { %v2307_v57 = vpop.f32.mrb[20].mxu0 }
 0xb82   : > { %v5996_v58 = vpop.f32.mrb[21].mxu0  ;;  %6006 = vmatmul.mubr.msk.f32.vlgmr.msra.gmra.mrb[18].mxu1 %vm776_vm2, %v6784_v20  ;;  %v2308_v8 = vadd.f32 %v5443_v3, %v2307_v57  ;;  %v6411_v57 = vpack.c.bf16 %v2868_v56, %v2867_v55 }
 0xb83   : > { %6021 = vmatprep.mubr.msk.f32.mxu1 %vm6610_vm0, %v6611_v4  ;;  %v2869_v58 = vld [vmem:[%s7668_s14 + $0x10] sm:$0xff] }
 0xb89   : > { %v2473_v59 = vpop.f32.mrb[22].mxu0 }
 0xb8a   : > { %v6018_v60 = vpop.f32.mrb[23].mxu0  ;;  %v2474_v9 = vadd.f32 %v5457_v7, %v2473_v59  ;;  %v2870_v59 = vld [vmem:[%s7668_s14 + $0x18] sm:$0xff] }
 0xb8b   : > { %v6414_v60 = vpack.c.bf16 %v2870_v59, %v2869_v58  ;;  %v5472_v58 = vld [vmem:[%s7691_s24 + $0x80] sm:$0xff]  ;;  %v5473_v59 = vld [vmem:[%s7691_s24 + $0x88] sm:$0xff] }
 0xc4d   : > { %v2223_v61 = vpop.f32.mrb[16].mxu1 }
 0xc4e   : > { %v2227_v62 = vadd.f32 %v2223_v61, %v6987_v10  ;;  %v5985_v63 = vpop.f32.mrb[17].mxu1  ;;  %v2871_v61 = vld [vmem:[%s7668_s14 + $0x20] sm:$0xff] }
 0xc55   : > { %v2390_v1 = vpop.f32.mrb[18].mxu1 }
 0xc56   : > { %v2391_v5 = vadd.f32 %v5450_v0, %v2390_v1  ;;  %v6007_v6 = vpop.f32.mrb[19].mxu1  ;;  %v2873_v0 = vld [vmem:[%s7668_s14 + $0x30] sm:$0xff]  ;;  %v2874_v1 = vld [vmem:[%s7668_s14 + $0x38] sm:$0xff] }
 0xc57   : > { %v6420_v3 = vpack.c.bf16 %v2874_v1, %v2873_v0  ;;  %v2876_v6 = vld [vmem:[%s7668_s14 + $0x48] sm:$0xff] }
 0xc58   : > { %6020 = vmatpush3.xpose.msk.msra.mxu1 %vm1012_vm3, %v2391_v5  ;;  %v2875_v5 = vld [vmem:[%s7668_s14 + $0x40] sm:$0xff] }
 0xc59   : > { %6024 = vmatprep.subr.mxu1 %v6611_v4  ;;  %v6423_v7 = vpack.c.bf16 %v2876_v6, %v2875_v5  ;;  %v5470_v5 = vld [vmem:[%s7672_s18] ss:$0 sm:$0xff] }
 0xc5b   : > { %6022 = vmatmul.mubr.msk.f32.vlgmr.msra.gmra.mrb[20].mxu1 %vm1012_vm3, %v2308_v8  ;;  %v2877_v8 = vld [vmem:[%s7668_s14 + $0x50] sm:$0xff] }
 0xc5c   : > { %6025 = vmatpush3.msra.mxu1 %v2474_v9  ;;  %6026 = vmatprep.mubr.msk.f32.mxu1 %vm6610_vm0, %v6611_v4  ;;  %v2878_v9 = vld [vmem:[%s7668_s14 + $0x58] sm:$0xff] }
 0xc5d   : > { %6404 = vmatprep.subr.bf16.mxu1 %v6609_v2 }
 0xd2e   : > { %v2549_v10 = vpop.f32.mrb[20].mxu1 }
 0xd2f   : > { %v2553_v11 = vmul.f32 0.35355338, %v2549_v10  ;;  %v6023_v12 = vpop.f32.mrb[21].mxu1  ;;  %v6426_v10 = vpack.c.bf16 %v2878_v9, %v2877_v8  ;;  %v5480_v8 = vld [vmem:[%s7694_s30 + $0x88] sm:$0xff]  ;;  %v5471_v9 = vld [vmem:[%s7673_s19] ss:$0 sm:$0xff] }
 0xd30   : > { %v2880_v12 = vld [vmem:[%s7668_s14 + $0x68] sm:$0xff] }
 0xd31   : > { %v2554_v13 = vsel %vm1012_vm3, %v2553_v11, -inf }
 0xd32   : > { %2555 = vmax.xlane.f32.xlu0 %v2554_v13 }
 0xdbf   : > { %v2556_v14 = vpop.xlane.xlu0 %2555 }
 0xdc0   : > { %v2557_v15 = vsub.f32 %v2553_v11, %v2556_v14  ;;  %v2879_v11 = vld [vmem:[%s7668_s14 + $0x60] sm:$0xff]  ;;  %v2881_v14 = vld [vmem:[%s7668_s14 + $0x70] sm:$0xff] }
 0xdc1   : > { %v6429_v13 = vpack.c.bf16 %v2880_v12, %v2879_v11 }
 0xdc2   : > { %v2558_v16 = vmul.f32 1.442695, %v2557_v15  ;;  %v2882_v15 = vld [vmem:[%s7668_s14 + $0x78] sm:$0xff] }
 0xdc4   : > { %6565 = vpow2.f32 %v2558_v16  ;;  %v6432_v16 = vpack.c.bf16 %v2882_v15, %v2881_v14  ;;  %v5482_v14 = vld [vmem:[%s7694_s30 + $0x98] sm:$0xff] }
 0xdce   : > { %v6566_v17 = vpop.eup %6565 }
 0xdcf   : > { %v2560_v18 = vsel %vm1012_vm3, %v6566_v17, 0.0 }
 0xdd0   : > { %2561 = vadd.xlane.f32.xlu1 %v2560_v18 }
 0xe5d   : > { %v2562_v21 = vpop.xlane.xlu1 %2561 }
 0xe5e   : > { %6567 = vrcp.f32 %v2562_v21 }
 0xe68   : > { %v6568_v22 = vpop.eup %6567 }
 0xe69   : > { %v2564_v23 = vmul.f32 %v6568_v22, %v2562_v21 }
 0xe6b   : > { %v2565_v24 = vsub.f32 2.0, %v2564_v23 }
 0xe6d   : > { %v2566_v25 = vmul.f32 %v6568_v22, %v2565_v24 }
 0xe6f   : > { %v2567_v26 = vmul.f32 %v6566_v17, %v2566_v25  ;;  %v5467_v17 = vld [vmem:[%s7667_s13] ss:$0 sm:$0xff] }
 0xe71   : > { %6027 = vmatmul.mubr.msk.f32.vlgmr.msra.gmra.mrb[22].mxu1 %vm1012_vm3, %v2567_v26 }
 0xe72   : > { %6042 = vmatprep.mubr.msk.f32.mxu1 %vm6610_vm0, %v6611_v4  ;;  %6406 = vmatpush3.bf16.msra.mxu1 %v6405_v43 }
 0xe73   : > { %6407 = vmatprep.subr.bf16.mxu1 %v6609_v2 }
 0xf44   : > { %v2637_v27 = vpop.f32.mrb[22].mxu1 }
 0xf45   : > { %v6028_v28 = vpop.f32.mrb[23].mxu1  ;;  %6032 = vmatmul.mubr.msk.f32.vlgmr.msra.gmra.mrb[24].mxu0 %vm1012_vm3, %v2637_v27 }
 0xf46   : > { %6077 = vmatprep.mubr.msk.f32.mxu0 %vm6610_vm0, %v6611_v4  ;;  %6412 = vmatpush3.bf16.msra.mxu0 %v6411_v57 }
 0xf47   : > { %6413 = vmatprep.subr.bf16.mxu0 %v6609_v2 }
 0xf4a   : > { %6415 = vmatpush3.bf16.msra.mxu0 %v6414_v60  ;;  %v6435_v60 = vpack.c.bf16 %v5473_v59, %v5472_v58 }
 0xf4b   : > { %6416 = vmatprep.subr.bf16.mxu0 %v6609_v2 }
0x1018   : > { %v2712_v29 = vpop.f32.mrb[24].mxu0 }
0x1019   : > { %v2716_v31 = vadd.f32 %v2712_v29, %v2227_v62  ;;  %v6033_v32 = vpop.f32.mrb[25].mxu0  ;;  %v2872_v62 = vld [vmem:[%s7668_s14 + $0x28] sm:$0xff] }
0x101a   : > { %v6417_v63 = vpack.c.bf16 %v2872_v62, %v2871_v61  ;;  %v5475_v61 = vld [vmem:[%s7691_s24 + $0x98] sm:$0xff] }
0x101b   : > { %v2724_v33 = vadd.f32 %v5464_v30, %v2716_v31 }
0x101c   : > { %6418 = vmatpush3.bf16.msra.mxu0 %v6417_v63 }
0x101d   : > { %v2725_v34 = vadd.f32 %v2724_v33, %v6784_v20  ;;  %v2758_v20 = vld [vmem:[%s7666_s12 + $0x10] sm:$0xff]  ;;  %6419 = vmatprep.subr.bf16.mxu0 %v6609_v2 }
0x101e   : > { %v6408_v45 = vpack.c.bf16 %v2759_v44, %v2758_v20 }
0x101f   : > { %v2728_v35 = vsel %vm776_vm2, %v2725_v34, 0.0 }
0x1020   : > { %2729 = vadd.xlane.f32.xlu0 %v2728_v35  ;;  %6409 = vmatpush3.bf16.msra.mxu1 %v6408_v45 }
0x1021   : > { %6434 = vmatprep.subr.bf16.mxu1 %v6609_v2  ;;  %6421 = vmatpush3.bf16.msra.mxu0 %v6420_v3 }
0x1022   : > { %6422 = vmatprep.subr.bf16.mxu0 %v6609_v2 }
0x1025   : > { %6424 = vmatpush3.bf16.msra.mxu0 %v6423_v7  ;;  %v5479_v7 = vld [vmem:[%s7694_s30 + $0x80] sm:$0xff] }
0x1026   : > { %6425 = vmatprep.subr.bf16.mxu0 %v6609_v2  ;;  %v6441_v11 = vpack.c.bf16 %v5480_v8, %v5479_v7  ;;  %v5507_v7 = vld [vmem:[%s7694_s30 + $0xb8] sm:$0xff] }
0x1029   : > { %6427 = vmatpush3.bf16.msra.mxu0 %v6426_v10 }
0x102a   : > { %6428 = vmatprep.subr.bf16.mxu0 %v6609_v2 }
0x102d   : > { %6430 = vmatpush3.bf16.msra.mxu0 %v6429_v13  ;;  %v5481_v13 = vld [vmem:[%s7694_s30 + $0x90] sm:$0xff] }
0x102e   : > { %6431 = vmatprep.subr.bf16.mxu0 %v6609_v2  ;;  %v6444_v15 = vpack.c.bf16 %v5482_v14, %v5481_v13  ;;  %v5502_v14 = vld [vmem:[%s7696_s1 + $0x5] ss:$0 sm:$0xff] }
0x1031   : > { %6433 = vmatpush3.bf16.msra.mxu0 %v6432_v16  ;;  %v5486_v16 = vld [vmem:[%s7662_s8 + $0x80] sm:$0xff] }
0x1032   : > { %6118 = vmatprep.subr.mxu0 %v6611_v4 }
0x10ad   : > { %v2730_v36 = vpop.xlane.xlu0 %2729 }
0x10ae   : > { %v2732_v37 = vmul.f32 0.03125, %v2730_v36 }
0x10b0   : > { %v2733_v38 = vsub.f32 %v2725_v34, %v2732_v37 }
0x10b2   : > { %v2734_v39 = vmul.f32 %v2733_v38, %v2733_v38 }
0x10b4   : > { %v2735_v40 = vsel %vm776_vm2, %v2734_v39, 0.0 }
0x10b5   : > { %2736 = vadd.xlane.f32.xlu1 %v2735_v40 }
0x1142   : > { %v2737_v46 = vpop.xlane.xlu1 %2736 }
0x1143   : > { %v2738_v47 = vmul.f32 0.03125, %v2737_v46  ;;  %v5469_v46 = vld [vmem:[%s7669_s15] ss:$0 sm:$0xff] }
0x1145   : > { %v2739_v48 = vadd.f32 1e-05, %v2738_v47 }
0x1147   : > { %6569 = vrsqrt.f32 %v2739_v48 }
0x1151   : > { %v6570_v49 = vpop.eup %6569 }
0x1152   : > { %v2741_v51 = vmul.f32 %v6570_v49, %v2733_v38 }
0x1154   : > { %v2748_v53 = vmul.f32 %v5465_v50, %v2741_v51 }
0x1156   : > { %v7119_v54 = vadd.f32 %v5466_v52, %v2748_v53 }
0x1158   : > { %6043 = vmatmul.mubr.msk.f32.vlgmr.msra.gmra.mrb[24].mxu1 %vm776_vm2, %v7119_v54 }
0x1159   : > { %6088 = vmatprep.mubr.msk.f32.mxu1 %vm6610_vm0, %v6611_v4  ;;  %6436 = vmatpush3.bf16.msra.mxu1 %v6435_v60 }
0x115a   : > { %6437 = vmatprep.subr.bf16.mxu1 %v6609_v2 }
0x122b   : > { %v2836_v18 = vpop.f32.mrb[24].mxu1 }
0x122c   : > { %v2837_v19 = vadd.f32 %v5467_v17, %v2836_v18  ;;  %v6044_v21 = vpop.f32.mrb[25].mxu1  ;;  %v5487_v17 = vld [vmem:[%s7662_s8 + $0x88] sm:$0xff] }
0x122d   : > { %v6447_v18 = vpack.c.bf16 %v5487_v17, %v5486_v16  ;;  %v5489_v21 = vld [vmem:[%s7662_s8 + $0x98] sm:$0xff]  ;;  %v5516_v17 = vld [vmem:[%s7663_s9 + $0x5] ss:$0 sm:$0xff] }
0x122e   : > { %v2841_v22 = vmul.f32 0.70710677, %v2837_v19  ;;  %v2840_v20 = vmul.f32 0.5, %v2837_v19  ;;  %v5488_v19 = vld [vmem:[%s7662_s8 + $0x90] sm:$0xff] }
0x1230   : > { %v2842_v23 = vand.u32 2147483647, %v2841_v22  ;;  %vm2862_vm4 = vcmp.ge.f32.partialorder %v2841_v22, 0.0  ;;  %v6450_v22 = vpack.c.bf16 %v5489_v21, %v5488_v19 }
0x1232   : > { %v2843_v24 = vmul.f32 0.3275911, %v2842_v23  ;;  %v2856_v26 = vsub.f32 0.0, %v2842_v23 }
0x1234   : > { %v2844_v25 = vadd.f32 1.0, %v2843_v24  ;;  %v2857_v28 = vmul.f32 %v2856_v26, %v2842_v23 }
0x1236   : > { %6571 = vrcp.f32 %v2844_v25  ;;  %v2858_v31 = vmul.f32 1.442695, %v2857_v28  ;;  %v5484_v25 = vld [vmem:[%s7661_s7 + $0x4] ss:$0 sm:$0xff]  ;;  %v5498_v28 = vld [vmem:[%s7691_s24 + $0xa8] sm:$0xff] }
0x1238   : > { %6573 = vpow2.f32 %v2858_v31 }
0x1240   : > { %v6572_v27 = vpop.eup %6571 }
0x1241   : > { %v2847_v29 = vmul.f32 1.0614054, %v6572_v27 }
0x1242   : > { %v6574_v39 = vpop.eup %6573 }
0x1243   : > { %v2848_v30 = vadd.f32 -1.4531521, %v2847_v29  ;;  %v5477_v29 = vld [vmem:[%s7696_s1 + $0x4] ss:$0 sm:$0xff] }
0x1245   : > { %v2849_v32 = vmul.f32 %v6572_v27, %v2848_v30 }
0x1247   : > { %v2850_v33 = vadd.f32 1.4214138, %v2849_v32 }
0x1249   : > { %v2851_v34 = vmul.f32 %v6572_v27, %v2850_v33 }
0x124b   : > { %v2852_v35 = vadd.f32 -0.28449672, %v2851_v34  ;;  %v5499_v34 = vld [vmem:[%s7691_s24 + $0xb0] sm:$0xff] }
0x124d   : > { %v2853_v36 = vmul.f32 %v6572_v27, %v2852_v35  ;;  %v5500_v35 = vld [vmem:[%s7691_s24 + $0xb8] sm:$0xff] }
0x124f   : > { %v2854_v37 = vadd.f32 0.2548296, %v2853_v36  ;;  %v5491_v36 = vld [vmem:[%s7663_s9 + $0x4] ss:$0 sm:$0xff] }
0x1251   : > { %v2855_v38 = vmul.f32 %v6572_v27, %v2854_v37  ;;  %v5497_v27 = vld [vmem:[%s7691_s24 + $0xa0] sm:$0xff]  ;;  %v6456_v37 = vpack.c.bf16 %v5500_v35, %v5499_v34 }
0x1252   : > { %v6453_v32 = vpack.c.bf16 %v5498_v28, %v5497_v27 }
0x1253   : > { %v2860_v40 = vmul.f32 %v6574_v39, %v2855_v38  ;;  %v5511_v39 = vld [vmem:[%s7662_s8 + $0xa0] sm:$0xff] }
0x1255   : > { %v2861_v41 = vsub.f32 1.0, %v2860_v40  ;;  %v5512_v40 = vld [vmem:[%s7662_s8 + $0xa8] sm:$0xff] }
0x1257   : > { %v2863_v42 = vsub.f32 0.0, %v2861_v41 }
0x1259   : > { %v2864_v43 = vsel %vm2862_vm4, %v2861_v41, %v2863_v42 }
0x125a   : > { %v2865_v44 = vadd.f32 1.0, %v2864_v43  ;;  %v6465_v43 = vpack.c.bf16 %v5512_v40, %v5511_v39  ;;  %v5532_v39 = vld [vmem:[%s7694_s30 + $0xc8] sm:$0xff] }
0x125c   : > { %v2866_v45 = vmul.f32 %v2865_v44, %v2840_v20  ;;  %v5513_v20 = vld [vmem:[%s7662_s8 + $0xb0] sm:$0xff]  ;;  %v5514_v44 = vld [vmem:[%s7662_s8 + $0xb8] sm:$0xff] }
0x125e   : > { %6078 = vmatmul.mubr.f32.vlgmr.msra.gmra.mrb[26].mxu0 %v2866_v45  ;;  %v6468_v45 = vpack.c.bf16 %v5514_v44, %v5513_v20  ;;  %v5524_v20 = vld [vmem:[%s7691_s24 + $0xc0] sm:$0xff]  ;;  %v5525_v44 = vld [vmem:[%s7691_s24 + $0xc8] sm:$0xff] }
0x125f   : > { %6120 = vmatprep.mubr.msk.f32.mxu0 %vm6610_vm0, %v6611_v4 }
0x1331   : > { %v2956_v47 = vpop.f32.mrb[26].mxu0 }
0x1332   : > { %v2957_v48 = vadd.f32 %v5469_v46, %v2956_v47  ;;  %v6079_v49 = vpop.f32.mrb[27].mxu0 }
0x1334   : > { %v2960_v50 = vadd.f32 %v2957_v48, %v7119_v54  ;;  %v5474_v54 = vld [vmem:[%s7691_s24 + $0x90] sm:$0xff] }
0x1335   : > { %v6438_v62 = vpack.c.bf16 %v5475_v61, %v5474_v54 }
0x1336   : > { %v2963_v51 = vsel %vm776_vm2, %v2960_v50, 0.0 }
0x1337   : > { %2964 = vadd.xlane.f32.xlu0 %v2963_v51  ;;  %6439 = vmatpush3.bf16.msra.mxu1 %v6438_v62 }
0x1338   : > { %6440 = vmatprep.subr.bf16.mxu1 %v6609_v2 }
0x13c4   : > { %v2965_v52 = vpop.xlane.xlu0 %2964 }
0x13c5   : > { %v2966_v53 = vmul.f32 0.03125, %v2965_v52 }
0x13c7   : > { %v2967_v55 = vsub.f32 %v2960_v50, %v2966_v53 }
0x13c9   : > { %v2968_v56 = vmul.f32 %v2967_v55, %v2967_v55 }
0x13cb   : > { %v2969_v57 = vsel %vm776_vm2, %v2968_v56, 0.0 }
0x13cc   : > { %2970 = vadd.xlane.f32.xlu1 %v2969_v57 }
0x1459   : > { %v2971_v63 = vpop.xlane.xlu1 %2970 }
0x145a   : > { %v2972_v0 = vmul.f32 0.03125, %v2971_v63  ;;  %v5504_v63 = vld [vmem:[%s7694_s30 + $0xa0] sm:$0xff] }
0x145c   : > { %v2973_v1 = vadd.f32 1e-05, %v2972_v0  ;;  %v5505_v0 = vld [vmem:[%s7694_s30 + $0xa8] sm:$0xff] }
0x145e   : > { %6575 = vrsqrt.f32 %v2973_v1 }
0x1468   : > { %v6576_v3 = vpop.eup %6575 }
0x1469   : > { %v2975_v6 = vmul.f32 %v6576_v3, %v2967_v55  ;;  %v6459_v3 = vpack.c.bf16 %v5505_v0, %v5504_v63 }
0x146b   : > { %v2982_v10 = vmul.f32 %v5470_v5, %v2975_v6  ;;  %v5506_v6 = vld [vmem:[%s7694_s30 + $0xb0] sm:$0xff] }
0x146c   : > { %v6462_v8 = vpack.c.bf16 %v5507_v7, %v5506_v6 }
0x146d   : > { %v7218_v12 = vadd.f32 %v5471_v9, %v2982_v10 }
0x146f   : > { %6089 = vmatmul.mubr.msk.f32.vlgmr.msra.gmra.mrb[26].mxu1 %vm776_vm2, %v7218_v12 }
0x1470   : > { %6442 = vmatpush3.bf16.msra.mxu1 %v6441_v11  ;;  %6099 = vmatprep.mubr.msk.f32.mxu1 %vm6610_vm0, %v6611_v4  ;;  %v5509_v11 = vld [vmem:[%s7661_s7 + $0x5] ss:$0 sm:$0xff] }
0x1471   : > { %6443 = vmatprep.subr.bf16.mxu1 %v6609_v2 }
0x1474   : > { %6445 = vmatpush3.bf16.msra.mxu1 %v6444_v15 }
0x1475   : > { %6446 = vmatprep.subr.bf16.mxu1 %v6609_v2 }
0x1477   : > { %6100 = vmatmul.mubr.msk.f32.vlgmr.msra.gmra.mrb[28].mxu1 %vm776_vm2, %v7218_v12 }
0x1478   : > { %6448 = vmatpush3.bf16.msra.mxu1 %v6447_v18  ;;  %6110 = vmatprep.mubr.msk.f32.mxu1 %vm6610_vm0, %v6611_v4 }
0x1479   : > { %6449 = vmatprep.subr.bf16.mxu1 %v6609_v2 }
0x147c   : > { %6451 = vmatpush3.bf16.msra.mxu1 %v6450_v22 }
0x147d   : > { %6113 = vmatprep.subr.mxu1 %v6611_v4 }
0x147f   : > { %6111 = vmatmul.mubr.msk.f32.vlgmr.msra.gmra.mrb[30].mxu1 %vm776_vm2, %v7218_v12 }
0x1480   : > { %6115 = vmatprep.mubr.msk.f32.mxu1 %vm6610_vm0, %v6611_v4 }
0x1542   : > { %v3072_v23 = vpop.f32.mrb[26].mxu1 }
0x1543   : > { %v6090_v24 = vpop.f32.mrb[27].mxu1  ;;  %v3073_v33 = vadd.f32 %v5477_v29, %v3072_v23 }
0x154a   : > { %v3155_v26 = vpop.f32.mrb[28].mxu1 }
0x154b   : > { %v3156_v30 = vadd.f32 %v5484_v25, %v3155_v26  ;;  %v6101_v31 = vpop.f32.mrb[29].mxu1 }
0x154d   : > { %6114 = vmatpush3.xpose.msk.msra.mxu1 %vm1012_vm3, %v3156_v30  ;;  %v5521_v30 = vld [vmem:[%s7664_s10 + $0x28] sm:$0xff] }
0x154e   : > { %6452 = vmatprep.subr.bf16.mxu1 %v6609_v2 }
0x1550   : > { %6116 = vmatmul.mubr.msk.f32.vlgmr.msra.gmra.mrb[32].mxu1 %vm1012_vm3, %v3073_v33 }
0x1551   : > { %6454 = vmatpush3.bf16.msra.mxu1 %v6453_v32  ;;  %6131 = vmatprep.mubr.msk.f32.mxu1 %vm6610_vm0, %v6611_v4 }
0x1552   : > { %v3238_v38 = vpop.f32.mrb[30].mxu1  ;;  %6455 = vmatprep.subr.bf16.mxu1 %v6609_v2 }
0x1553   : > { %v3239_v41 = vadd.f32 %v5491_v36, %v3238_v38  ;;  %v6112_v42 = vpop.f32.mrb[31].mxu1  ;;  %v5531_v38 = vld [vmem:[%s7694_s30 + $0xc0] sm:$0xff] }
0x1554   : > { %v6477_v40 = vpack.c.bf16 %v5532_v39, %v5531_v38  ;;  %v5534_v42 = vld [vmem:[%s7694_s30 + $0xd8] sm:$0xff]  ;;  %v5566_v39 = vld [vmem:[%s7662_s8 + $0xf0] sm:$0xff] }
0x1555   : > { %6119 = vmatpush3.msra.mxu0 %v3239_v41  ;;  %6457 = vmatpush3.bf16.msra.mxu1 %v6456_v37  ;;  %v5496_v37 = vld [vmem:[%s7664_s10 + $0x20] sm:$0xff]  ;;  %v5533_v41 = vld [vmem:[%s7694_s30 + $0xd0] sm:$0xff] }
0x1556   : > { %6464 = vmatprep.subr.bf16.mxu1 %v6609_v2  ;;  %6458 = vmatprep.subr.bf16.mxu0 %v6609_v2 }
0x1558   : > { %6132 = vmatmul.mubr.msk.f32.vlgmr.msra.gmra.mrb[34].mxu1 %vm776_vm2, %v7218_v12 }
0x1559   : > { %6466 = vmatpush3.bf16.msra.mxu1 %v6465_v43  ;;  %6153 = vmatprep.mubr.msk.f32.mxu1 %vm6610_vm0, %v6611_v4  ;;  %v6480_v43 = vpack.c.bf16 %v5534_v42, %v5533_v41  ;;  %v5557_v42 = vld [vmem:[%s7694_s30 + $0xe0] sm:$0xff] }
0x155a   : > { %6467 = vmatprep.subr.bf16.mxu1 %v6609_v2 }
0x155d   : > { %6469 = vmatpush3.bf16.msra.mxu1 %v6468_v45  ;;  %v6471_v45 = vpack.c.bf16 %v5525_v44, %v5524_v20  ;;  %v5559_v44 = vld [vmem:[%s7694_s30 + $0xf0] sm:$0xff] }
0x155e   : > { %6166 = vmatprep.subr.mxu1 %v6611_v4 }
0x1560   : > { %6154 = vmatmul.mubr.msk.f32.vlgmr.msra.gmra.mrb[36].mxu1 %vm776_vm2, %v7218_v12 }
0x1561   : > { %6168 = vmatprep.mubr.msk.f32.mxu1 %vm6610_vm0, %v6611_v4  ;;  %6167 = vmatpush3.msra.mxu1 %v5521_v30 }
0x1562   : > { %6470 = vmatprep.subr.bf16.mxu1 %v6609_v2 }
0x1623   : > { %v3314_v46 = vpop.f32.mrb[32].mxu1 }
0x1624   : > { %v3318_v47 = vmul.f32 0.35355338, %v3314_v46  ;;  %v6117_v48 = vpop.f32.mrb[33].mxu1  ;;  %v5526_v46 = vld [vmem:[%s7691_s24 + $0xd0] sm:$0xff] }
0x1626   : > { %v3319_v49 = vsel %vm1012_vm3, %v3318_v47, -inf }
0x1627   : > { %3320 = vmax.xlane.f32.xlu0 %v3319_v49 }
0x162b   : > { %v3487_v50 = vpop.f32.mrb[34].mxu1 }
0x162c   : > { %v6133_v51 = vpop.f32.mrb[35].mxu1  ;;  %v3488_v18 = vadd.f32 %v5502_v14, %v3487_v50 }
0x162d   : > { %v5538_v51 = vld [vmem:[%s7662_s8 + $0xc0] sm:$0xff] }
0x1633   : > { %v3653_v52 = vpop.f32.mrb[36].mxu1 }
0x1634   : > { %v6155_v53 = vpop.f32.mrb[37].mxu1  ;;  %v3654_v19 = vadd.f32 %v5516_v17, %v3653_v52  ;;  %v5539_v52 = vld [vmem:[%s7662_s8 + $0xc8] sm:$0xff] }
0x16b4   : > { %v3321_v55 = vpop.xlane.xlu0 %3320 }
0x16b5   : > { %v3322_v56 = vsub.f32 %v3318_v47, %v3321_v55  ;;  %v5527_v47 = vld [vmem:[%s7691_s24 + $0xd8] sm:$0xff] }
0x16b6   : > { %v6474_v50 = vpack.c.bf16 %v5527_v47, %v5526_v46 }
0x16b7   : > { %v3323_v57 = vmul.f32 1.442695, %v3322_v56  ;;  %v6483_v56 = vpack.c.bf16 %v5539_v52, %v5538_v51 }
0x16b9   : > { %6577 = vpow2.f32 %v3323_v57  ;;  %v5540_v57 = vld [vmem:[%s7662_s8 + $0xd0] sm:$0xff] }
0x16c3   : > { %v6578_v58 = vpop.eup %6577 }
0x16c4   : > { %v3325_v59 = vsel %vm1012_vm3, %v6578_v58, 0.0 }
0x16c5   : > { %3326 = vadd.xlane.f32.xlu1 %v3325_v59  ;;  %v5536_v59 = vld [vmem:[%s7661_s7 + $0x6] ss:$0 sm:$0xff] }
0x1752   : > { %v3327_v60 = vpop.xlane.xlu1 %3326 }
0x1753   : > { %6579 = vrcp.f32 %v3327_v60 }
0x175d   : > { %v6580_v54 = vpop.eup %6579 }
0x175e   : > { %v3329_v61 = vmul.f32 %v6580_v54, %v3327_v60 }
0x1760   : > { %v3330_v62 = vsub.f32 2.0, %v3329_v61 }
0x1762   : > { %v3331_v1 = vmul.f32 %v6580_v54, %v3330_v62 }
0x1764   : > { %v3332_v5 = vmul.f32 %v6578_v58, %v3331_v1  ;;  %v5541_v58 = vld [vmem:[%s7662_s8 + $0xd8] sm:$0xff] }
0x1765   : > { %v6486_v60 = vpack.c.bf16 %v5541_v58, %v5540_v57  ;;  %v5562_v57 = vld [vmem:[%s7661_s7 + $0x7] ss:$0 sm:$0xff] }
0x1766   : > { %6121 = vmatmul.mubr.msk.f32.vlgmr.msra.gmra.mrb[28].mxu0 %vm1012_vm3, %v3332_v5 }
0x1767   : > { %6460 = vmatpush3.bf16.msra.mxu0 %v6459_v3  ;;  %6142 = vmatprep.mubr.msk.f32.mxu0 %vm6610_vm0, %v6611_v4  ;;  %v5529_v3 = vld [vmem:[%s7696_s1 + $0x6] ss:$0 sm:$0xff] }
0x1768   : > { %6461 = vmatprep.subr.bf16.mxu0 %v6609_v2 }
0x176b   : > { %6463 = vmatpush3.bf16.msra.mxu0 %v6462_v8  ;;  %v5543_v8 = vld [vmem:[%s7663_s9 + $0x6] ss:$0 sm:$0xff] }
0x176c   : > { %6156 = vmatprep.subr.mxu0 %v6611_v4 }
0x176e   : > { %6143 = vmatmul.mubr.msk.f32.vlgmr.msra.gmra.mrb[30].mxu0 %vm776_vm2, %v7218_v12 }
0x176f   : > { %6158 = vmatprep.mubr.msk.f32.mxu0 %vm6610_vm0, %v6611_v4 }
0x1839   : > { %v3402_v9 = vpop.f32.mrb[28].mxu0 }
0x183a   : > { %v6122_v10 = vpop.f32.mrb[29].mxu0 }
0x1841   : > { %v3570_v13 = vpop.f32.mrb[30].mxu0 }
0x1842   : > { %v3571_v15 = vadd.f32 %v5509_v11, %v3570_v13  ;;  %v6144_v16 = vpop.f32.mrb[31].mxu0 }
0x1844   : > { %6157 = vmatpush3.xpose.msk.msra.mxu0 %vm1012_vm3, %v3571_v15 }
0x1845   : > { %6161 = vmatprep.subr.mxu0 %v6611_v4 }
0x1847   : > { %6159 = vmatmul.mubr.msk.f32.vlgmr.msra.gmra.mrb[32].mxu0 %vm1012_vm3, %v3488_v18 }
0x1848   : > { %6162 = vmatpush3.msra.mxu0 %v3654_v19  ;;  %6163 = vmatprep.mubr.msk.f32.mxu0 %vm6610_vm0, %v6611_v4 }
0x1849   : > { %6171 = vmatprep.subr.mxu0 %v6611_v4 }
0x191a   : > { %v3729_v21 = vpop.f32.mrb[32].mxu0 }
0x191b   : > { %v3733_v22 = vmul.f32 0.35355338, %v3729_v21  ;;  %v6160_v23 = vpop.f32.mrb[33].mxu0 }
0x191c   : > { %v5548_v23 = vld [vmem:[%s7664_s10 + $0x30] sm:$0xff] }
0x191d   : > { %v3734_v24 = vsel %vm1012_vm3, %v3733_v22, -inf }
0x191e   : > { %3735 = vmax.xlane.f32.xlu0 %v3734_v24 }
0x19ab   : > { %v3736_v25 = vpop.xlane.xlu0 %3735 }
0x19ac   : > { %v3737_v26 = vsub.f32 %v3733_v22, %v3736_v25 }
0x19ae   : > { %v3738_v27 = vmul.f32 1.442695, %v3737_v26 }
0x19b0   : > { %6581 = vpow2.f32 %v3738_v27 }
0x19ba   : > { %v6582_v28 = vpop.eup %6581 }
0x19bb   : > { %v3740_v29 = vsel %vm1012_vm3, %v6582_v28, 0.0 }
0x19bc   : > { %3741 = vadd.xlane.f32.xlu1 %v3740_v29  ;;  %v5551_v29 = vld [vmem:[%s7691_s24 + $0xe8] sm:$0xff] }
0x1a49   : > { %v3742_v31 = vpop.xlane.xlu1 %3741 }
0x1a4a   : > { %6583 = vrcp.f32 %v3742_v31 }
0x1a54   : > { %v6584_v32 = vpop.eup %6583 }
0x1a55   : > { %v3744_v33 = vmul.f32 %v6584_v32, %v3742_v31 }
0x1a57   : > { %v3745_v34 = vsub.f32 2.0, %v3744_v33  ;;  %v5552_v33 = vld [vmem:[%s7691_s24 + $0xf0] sm:$0xff] }
0x1a59   : > { %v3746_v35 = vmul.f32 %v6584_v32, %v3745_v34  ;;  %v5553_v34 = vld [vmem:[%s7691_s24 + $0xf8] sm:$0xff] }
0x1a5b   : > { %v3747_v36 = vmul.f32 %v6582_v28, %v3746_v35  ;;  %v5550_v28 = vld [vmem:[%s7691_s24 + $0xe0] sm:$0xff]  ;;  %v6492_v35 = vpack.c.bf16 %v5553_v34, %v5552_v33 }
0x1a5c   : > { %v6489_v31 = vpack.c.bf16 %v5551_v29, %v5550_v28  ;;  %v5582_v34 = vld [vmem:[%s7666_s12 + $0x20] sm:$0xff] }
0x1a5d   : > { %6164 = vmatmul.mubr.msk.f32.vlgmr.msra.gmra.mrb[34].mxu0 %vm1012_vm3, %v3747_v36  ;;  %v5564_v36 = vld [vmem:[%s7662_s8 + $0xe0] sm:$0xff] }
0x1a5e   : > { %6172 = vmatpush3.msra.mxu0 %v5496_v37  ;;  %6173 = vmatprep.mubr.msk.f32.mxu0 %vm6610_vm0, %v6611_v4  ;;  %v5565_v37 = vld [vmem:[%s7662_s8 + $0xe8] sm:$0xff] }
0x1a5f   : > { %6476 = vmatprep.subr.bf16.mxu0 %v6609_v2  ;;  %v6501_v38 = vpack.c.bf16 %v5565_v37, %v5564_v36  ;;  %v5585_v37 = vld [vmem:[%s7666_s12 + $0x38] sm:$0xff] }
0x1a61   : > { %6174 = vmatmul.mubr.msk.f32.vlgmr.msra.gmra.mrb[36].mxu0 %vm1012_vm3, %v3402_v9 }
0x1a62   : > { %6478 = vmatpush3.bf16.msra.mxu0 %v6477_v40  ;;  %6195 = vmatprep.mubr.msk.f32.mxu0 %vm6610_vm0, %v6611_v4  ;;  %v5567_v40 = vld [vmem:[%s7662_s8 + $0xf8] sm:$0xff] }
0x1a63   : > { %6479 = vmatprep.subr.bf16.mxu0 %v6609_v2  ;;  %v6504_v41 = vpack.c.bf16 %v5567_v40, %v5566_v39 }
0x1a66   : > { %6481 = vmatpush3.bf16.msra.mxu0 %v6480_v43  ;;  %v5558_v43 = vld [vmem:[%s7694_s30 + $0xe8] sm:$0xff] }
0x1a67   : > { %6209 = vmatprep.subr.mxu0 %v6611_v4  ;;  %v6495_v20 = vpack.c.bf16 %v5558_v43, %v5557_v42  ;;  %v5580_v43 = vld [vmem:[%s7670_s16 + $0x1] ss:$0 sm:$0xff] }
0x1a69   : > { %6196 = vmatmul.mubr.msk.f32.vlgmr.msra.gmra.mrb[38].mxu0 %vm776_vm2, %v7218_v12 }
0x1a6a   : > { %6211 = vmatprep.mubr.msk.f32.mxu0 %vm6610_vm0, %v6611_v4 }
0x1b30   : > { %v3817_v48 = vpop.f32.mrb[34].mxu0 }
0x1b31   : > { %v6165_v49 = vpop.f32.mrb[35].mxu0  ;;  %6169 = vmatmul.mubr.msk.f32.vlgmr.msra.gmra.mrb[38].mxu1 %vm1012_vm3, %v3817_v48 }
0x1b32   : > { %6472 = vmatpush3.bf16.msra.mxu1 %v6471_v45  ;;  %6184 = vmatprep.mubr.msk.f32.mxu1 %vm6610_vm0, %v6611_v4  ;;  %v5560_v45 = vld [vmem:[%s7694_s30 + $0xf8] sm:$0xff] }
0x1b33   : > { %6473 = vmatprep.subr.bf16.mxu1 %v6609_v2  ;;  %v6498_v48 = vpack.c.bf16 %v5560_v45, %v5559_v44  ;;  %v5581_v44 = vld [vmem:[%s7671_s17 + $0x1] ss:$0 sm:$0xff] }
0x1b34   : > { %v3965_v53 = vpop.f32.mrb[36].mxu0 }
0x1b35   : > { %v6175_v55 = vpop.f32.mrb[37].mxu0 }
0x1b36   : > { %6475 = vmatpush3.bf16.msra.mxu1 %v6474_v50 }
0x1b37   : > { %6482 = vmatprep.subr.bf16.mxu1 %v6609_v2 }
0x1b39   : > { %6185 = vmatmul.mubr.msk.f32.vlgmr.msra.gmra.mrb[40].mxu1 %vm776_vm2, %v7218_v12 }
0x1b3a   : > { %6484 = vmatpush3.bf16.msra.mxu1 %v6483_v56  ;;  %6206 = vmatprep.mubr.msk.f32.mxu1 %vm6610_vm0, %v6611_v4 }
0x1b3b   : > { %6485 = vmatprep.subr.bf16.mxu1 %v6609_v2 }
0x1b3c   : > { %v4131_v54 = vpop.f32.mrb[38].mxu0 }
0x1b3d   : > { %v4132_v61 = vadd.f32 %v5536_v59, %v4131_v54  ;;  %v6197_v62 = vpop.f32.mrb[39].mxu0  ;;  %v5555_v59 = vld [vmem:[%s7696_s1 + $0x7] ss:$0 sm:$0xff] }
0x1b3e   : > { %6487 = vmatpush3.bf16.msra.mxu1 %v6486_v60 }
0x1b3f   : > { %6210 = vmatpush3.xpose.msk.msra.mxu0 %vm1012_vm3, %v4132_v61  ;;  %6219 = vmatprep.subr.mxu1 %v6611_v4  ;;  %v5569_v61 = vld [vmem:[%s7663_s9 + $0x7] ss:$0 sm:$0xff] }
0x1b40   : > { %6214 = vmatprep.subr.mxu0 %v6611_v4 }
0x1b41   : > { %6207 = vmatmul.mubr.msk.f32.vlgmr.msra.gmra.mrb[42].mxu1 %vm776_vm2, %v7218_v12 }
0x1b42   : > { %6221 = vmatprep.mubr.msk.f32.mxu1 %vm6610_vm0, %v6611_v4  ;;  %6220 = vmatpush3.msra.mxu1 %v5548_v23  ;;  %v5577_v23 = vld [vmem:[%s7665_s11 + $0x1] ss:$0 sm:$0xff] }
0x1b43   : > { %6494 = vmatprep.subr.bf16.mxu1 %v6609_v2 }
0x1c04   : > { %v3892_v63 = vpop.f32.mrb[38].mxu1 }
0x1c05   : > { %v7421_v0 = vadd.f32 %v3965_v53, %v3892_v63  ;;  %v6170_v1 = vpop.f32.mrb[39].mxu1 }
0x1c0c   : > { %v4048_v5 = vpop.f32.mrb[40].mxu1 }
0x1c0d   : > { %v4049_v6 = vadd.f32 %v5529_v3, %v4048_v5  ;;  %v6186_v7 = vpop.f32.mrb[41].mxu1 }
0x1c0f   : > { %6212 = vmatmul.mubr.msk.f32.vlgmr.msra.gmra.mrb[40].mxu0 %vm1012_vm3, %v4049_v6 }
0x1c10   : > { %6216 = vmatprep.mubr.msk.f32.mxu0 %vm6610_vm0, %v6611_v4 }
0x1c14   : > { %v4214_v9 = vpop.f32.mrb[42].mxu1 }
0x1c15   : > { %v4215_v10 = vadd.f32 %v5543_v8, %v4214_v9  ;;  %v6208_v11 = vpop.f32.mrb[43].mxu1 }
0x1c16   : > { %v5574_v11 = vld [vmem:[%s7664_s10 + $0x38] sm:$0xff] }
0x1c17   : > { %6215 = vmatpush3.msra.mxu0 %v4215_v10 }
0x1c18   : > { %6488 = vmatprep.subr.bf16.mxu0 %v6609_v2 }
0x1ce2   : > { %v4290_v13 = vpop.f32.mrb[40].mxu0 }
0x1ce3   : > { %v4294_v14 = vmul.f32 0.35355338, %v4290_v13  ;;  %v6213_v15 = vpop.f32.mrb[41].mxu0 }
0x1ce5   : > { %v4295_v16 = vsel %vm1012_vm3, %v4294_v14, -inf }
0x1ce6   : > { %4296 = vmax.xlane.f32.xlu0 %v4295_v16 }
0x1d73   : > { %v4297_v17 = vpop.xlane.xlu0 %4296 }
0x1d74   : > { %v4298_v18 = vsub.f32 %v4294_v14, %v4297_v17 }
0x1d76   : > { %v4299_v19 = vmul.f32 1.442695, %v4298_v18 }
0x1d78   : > { %6585 = vpow2.f32 %v4299_v19 }
0x1d82   : > { %v6586_v21 = vpop.eup %6585 }
0x1d83   : > { %v4301_v22 = vsel %vm1012_vm3, %v6586_v21, 0.0 }
0x1d84   : > { %4302 = vadd.xlane.f32.xlu1 %v4301_v22 }
0x1e11   : > { %v4303_v24 = vpop.xlane.xlu1 %4302 }
0x1e12   : > { %6587 = vrcp.f32 %v4303_v24 }
0x1e1c   : > { %v6588_v25 = vpop.eup %6587 }
0x1e1d   : > { %v4305_v26 = vmul.f32 %v6588_v25, %v4303_v24 }
0x1e1f   : > { %v4306_v27 = vsub.f32 2.0, %v4305_v26 }
0x1e21   : > { %v4307_v30 = vmul.f32 %v6588_v25, %v4306_v27 }
0x1e23   : > { %v4308_v32 = vmul.f32 %v6586_v21, %v4307_v30 }
0x1e25   : > { %6217 = vmatmul.mubr.msk.f32.vlgmr.msra.gmra.mrb[42].mxu0 %vm1012_vm3, %v4308_v32 }
0x1e26   : > { %6490 = vmatpush3.bf16.msra.mxu0 %v6489_v31  ;;  %6232 = vmatprep.mubr.msk.f32.mxu0 %vm6610_vm0, %v6611_v4 }
0x1e27   : > { %6491 = vmatprep.subr.bf16.mxu0 %v6609_v2 }
0x1e2a   : > { %6493 = vmatpush3.bf16.msra.mxu0 %v6492_v35  ;;  %v5583_v35 = vld [vmem:[%s7666_s12 + $0x28] sm:$0xff] }
0x1e2b   : > { %6500 = vmatprep.subr.bf16.mxu0 %v6609_v2  ;;  %v6507_v36 = vpack.c.bf16 %v5583_v35, %v5582_v34 }
0x1e2d   : > { %6233 = vmatmul.mubr.msk.f32.vlgmr.msra.gmra.mrb[44].mxu0 %vm776_vm2, %v7218_v12 }
0x1e2e   : > { %6502 = vmatpush3.bf16.msra.mxu0 %v6501_v38  ;;  %6254 = vmatprep.mubr.msk.f32.mxu0 %vm6610_vm0, %v6611_v4 }
0x1e2f   : > { %6503 = vmatprep.subr.bf16.mxu0 %v6609_v2 }
0x1e32   : > { %6505 = vmatpush3.bf16.msra.mxu0 %v6504_v41 }
0x1e33   : > { %6267 = vmatprep.subr.mxu0 %v6611_v4 }
0x1e35   : > { %6255 = vmatmul.mubr.msk.f32.vlgmr.msra.gmra.mrb[46].mxu0 %vm776_vm2, %v7218_v12 }
0x1e36   : > { %6269 = vmatprep.mubr.msk.f32.mxu0 %vm6610_vm0, %v6611_v4  ;;  %6268 = vmatpush3.msra.mxu0 %v5574_v11 }
0x1e37   : > { %6512 = vmatprep.subr.bf16.mxu0 %v6609_v2 }
0x1ef8   : > { %v4378_v46 = vpop.f32.mrb[42].mxu0 }
0x1ef9   : > { %v6218_v47 = vpop.f32.mrb[43].mxu0  ;;  %6222 = vmatmul.mubr.msk.f32.vlgmr.msra.gmra.mrb[44].mxu1 %vm1012_vm3, %v4378_v46 }
0x1efa   : > { %6496 = vmatpush3.bf16.msra.mxu1 %v6495_v20  ;;  %6243 = vmatprep.mubr.msk.f32.mxu1 %vm6610_vm0, %v6611_v4  ;;  %v5589_v47 = vld [vmem:[%s7668_s14 + $0x80] sm:$0xff] }
0x1efb   : > { %6497 = vmatprep.subr.bf16.mxu1 %v6609_v2 }
0x1efe   : > { %6499 = vmatpush3.bf16.msra.mxu1 %v6498_v48  ;;  %v5590_v48 = vld [vmem:[%s7668_s14 + $0x88] sm:$0xff] }
0x1eff   : > { %6257 = vmatprep.subr.mxu1 %v6611_v4 }
0x1f00   : > { %v4537_v49 = vpop.f32.mrb[44].mxu0 }
0x1f01   : > { %v6234_v50 = vpop.f32.mrb[45].mxu0  ;;  %6244 = vmatmul.mubr.msk.f32.vlgmr.msra.gmra.mrb[46].mxu1 %vm776_vm2, %v7218_v12  ;;  %v4538_v62 = vadd.f32 %v5555_v59, %v4537_v49  ;;  %v6513_v49 = vpack.c.bf16 %v5590_v48, %v5589_v47  ;;  %v5597_v59 = vld [vmem:[%s7668_s14 + $0xc0] sm:$0xff] }
0x1f02   : > { %6259 = vmatprep.mubr.msk.f32.mxu1 %vm6610_vm0, %v6611_v4  ;;  %v5591_v50 = vld [vmem:[%s7668_s14 + $0x90] sm:$0xff] }
0x1f08   : > { %v4703_v51 = vpop.f32.mrb[46].mxu0 }
0x1f09   : > { %v6256_v52 = vpop.f32.mrb[47].mxu0  ;;  %v4704_v63 = vadd.f32 %v5569_v61, %v4703_v51  ;;  %v5599_v61 = vld [vmem:[%s7668_s14 + $0xd0] sm:$0xff] }
0x1f0a   : > { %v5593_v52 = vld [vmem:[%s7668_s14 + $0xa0] sm:$0xff] }
0x1fcc   : > { %v4453_v53 = vpop.f32.mrb[44].mxu1 }
0x1fcd   : > { %v4457_v55 = vadd.f32 %v4453_v53, %v7421_v0  ;;  %v6223_v56 = vpop.f32.mrb[45].mxu1  ;;  %v5594_v53 = vld [vmem:[%s7668_s14 + $0xa8] sm:$0xff] }
0x1fce   : > { %v5595_v56 = vld [vmem:[%s7668_s14 + $0xb0] sm:$0xff] }
0x1fd4   : > { %v4620_v58 = vpop.f32.mrb[46].mxu1 }
0x1fd5   : > { %v4621_v60 = vadd.f32 %v5562_v57, %v4620_v58  ;;  %v6245_v54 = vpop.f32.mrb[47].mxu1  ;;  %v5596_v57 = vld [vmem:[%s7668_s14 + $0xb8] sm:$0xff] }
0x1fd6   : > { %v6522_v58 = vpack.c.bf16 %v5596_v57, %v5595_v56 }
0x1fd7   : > { %6258 = vmatpush3.xpose.msk.msra.mxu1 %vm1012_vm3, %v4621_v60  ;;  %v5598_v60 = vld [vmem:[%s7668_s14 + $0xc8] sm:$0xff] }
0x1fd8   : > { %6262 = vmatprep.subr.mxu1 %v6611_v4  ;;  %v6525_v54 = vpack.c.bf16 %v5598_v60, %v5597_v59  ;;  %v5610_v59 = vld [vmem:[%s7673_s19 + $0x1] ss:$0 sm:$0xff] }
0x1fda   : > { %6260 = vmatmul.mubr.msk.f32.vlgmr.msra.gmra.mrb[48].mxu1 %vm1012_vm3, %v4538_v62  ;;  %v5600_v62 = vld [vmem:[%s7668_s14 + $0xd8] sm:$0xff] }
0x1fdb   : > { %6263 = vmatpush3.msra.mxu1 %v4704_v63  ;;  %6264 = vmatprep.mubr.msk.f32.mxu1 %vm6610_vm0, %v6611_v4  ;;  %v6528_v63 = vpack.c.bf16 %v5600_v62, %v5599_v61  ;;  %v5611_v61 = vld [vmem:[%s7675_s21] ss:$0 sm:$0xff] }
0x1fdc   : > { %6506 = vmatprep.subr.bf16.mxu1 %v6609_v2 }
0x20ad   : > { %v4779_v0 = vpop.f32.mrb[48].mxu1 }
0x20ae   : > { %v4783_v1 = vmul.f32 0.35355338, %v4779_v0  ;;  %v6261_v3 = vpop.f32.mrb[49].mxu1  ;;  %v5601_v0 = vld [vmem:[%s7668_s14 + $0xe0] sm:$0xff] }
0x20b0   : > { %v4784_v5 = vsel %vm1012_vm3, %v4783_v1, -inf }
0x20b1   : > { %4785 = vmax.xlane.f32.xlu0 %v4784_v5  ;;  %v5603_v5 = vld [vmem:[%s7668_s14 + $0xf0] sm:$0xff] }
0x213e   : > { %v4786_v6 = vpop.xlane.xlu0 %4785 }
0x213f   : > { %v4787_v7 = vsub.f32 %v4783_v1, %v4786_v6  ;;  %v5602_v1 = vld [vmem:[%s7668_s14 + $0xe8] sm:$0xff]  ;;  %v5604_v6 = vld [vmem:[%s7668_s14 + $0xf8] sm:$0xff] }
0x2140   : > { %v6531_v3 = vpack.c.bf16 %v5602_v1, %v5601_v0 }
0x2141   : > { %v4788_v8 = vmul.f32 1.442695, %v4787_v7  ;;  %v6534_v7 = vpack.c.bf16 %v5604_v6, %v5603_v5 }
0x2143   : > { %6589 = vpow2.f32 %v4788_v8  ;;  %v5587_v8 = vld [vmem:[%s7667_s13 + $0x1] ss:$0 sm:$0xff] }
0x214d   : > { %v6590_v9 = vpop.eup %6589 }
0x214e   : > { %v4790_v10 = vsel %vm1012_vm3, %v6590_v9, 0.0 }
0x214f   : > { %4791 = vadd.xlane.f32.xlu1 %v4790_v10 }
0x21dc   : > { %v4792_v13 = vpop.xlane.xlu1 %4791 }
0x21dd   : > { %6591 = vrcp.f32 %v4792_v13 }
0x21e7   : > { %v6592_v14 = vpop.eup %6591 }
0x21e8   : > { %v4794_v15 = vmul.f32 %v6592_v14, %v4792_v13 }
0x21ea   : > { %v4795_v16 = vsub.f32 2.0, %v4794_v15 }
0x21ec   : > { %v4796_v17 = vmul.f32 %v6592_v14, %v4795_v16 }
0x21ee   : > { %v4797_v18 = vmul.f32 %v6590_v9, %v4796_v17 }
0x21f0   : > { %6265 = vmatmul.mubr.msk.f32.vlgmr.msra.gmra.mrb[50].mxu1 %vm1012_vm3, %v4797_v18 }
0x21f1   : > { %6280 = vmatprep.mubr.msk.f32.mxu1 %vm6610_vm0, %v6611_v4  ;;  %6508 = vmatpush3.bf16.msra.mxu1 %v6507_v36 }
0x21f2   : > { %6509 = vmatprep.subr.bf16.mxu1 %v6609_v2 }
0x22c3   : > { %v4867_v19 = vpop.f32.mrb[50].mxu1 }
0x22c4   : > { %v6266_v21 = vpop.f32.mrb[51].mxu1  ;;  %6270 = vmatmul.mubr.msk.f32.vlgmr.msra.gmra.mrb[48].mxu0 %vm1012_vm3, %v4867_v19 }
0x22c5   : > { %6315 = vmatprep.mubr.msk.f32.mxu0 %vm6610_vm0, %v6611_v4  ;;  %6514 = vmatpush3.bf16.msra.mxu0 %v6513_v49  ;;  %v5228_v49 = vld [vmem:[%s7674_s20] sm:$0xff] }
0x22c6   : > { %6515 = vmatprep.subr.bf16.mxu0 %v6609_v2 }
0x2397   : > { %v4942_v22 = vpop.f32.mrb[48].mxu0 }
0x2398   : > { %v4946_v24 = vadd.f32 %v4942_v22, %v4457_v55  ;;  %v6271_v25 = vpop.f32.mrb[49].mxu0  ;;  %v6519_v55 = vpack.c.bf16 %v5594_v53, %v5593_v52 }
0x239a   : > { %v4955_v26 = vadd.f32 %v5577_v23, %v4946_v24 }
0x239c   : > { %v4956_v27 = vadd.f32 %v4955_v26, %v7218_v12  ;;  %v5584_v12 = vld [vmem:[%s7666_s12 + $0x30] sm:$0xff] }
0x239d   : > { %v6510_v38 = vpack.c.bf16 %v5585_v37, %v5584_v12 }
0x239e   : > { %v4961_v28 = vsel %vm776_vm2, %v4956_v27, 0.0 }
0x239f   : > { %4962 = vadd.xlane.f32.xlu0 %v4961_v28  ;;  %6511 = vmatpush3.bf16.msra.mxu1 %v6510_v38  ;;  %v5606_v38 = vld [vmem:[%s7669_s15 + $0x1] ss:$0 sm:$0xff] }
0x23a0   : > { %6536 = vmatprep.subr.bf16.mxu1 %v6609_v2 }
0x242c   : > { %v4963_v29 = vpop.xlane.xlu0 %4962 }
0x242d   : > { %v4964_v30 = vmul.f32 0.03125, %v4963_v29 }
0x242f   : > { %v4965_v31 = vsub.f32 %v4956_v27, %v4964_v30 }
0x2431   : > { %v4966_v32 = vmul.f32 %v4965_v31, %v4965_v31 }
0x2433   : > { %v4967_v33 = vsel %vm776_vm2, %v4966_v32, 0.0 }
0x2434   : > { %4968 = vadd.xlane.f32.xlu1 %v4967_v33 }
0x24c1   : > { %v4969_v39 = vpop.xlane.xlu1 %4968 }
0x24c2   : > { %v4970_v40 = vmul.f32 0.03125, %v4969_v39 }
0x24c4   : > { %v4971_v41 = vadd.f32 1e-05, %v4970_v40 }
0x24c6   : > { %6593 = vrsqrt.f32 %v4971_v41 }
0x24d0   : > { %v6594_v42 = vpop.eup %6593 }
0x24d1   : > { %v4973_v20 = vmul.f32 %v6594_v42, %v4965_v31 }
0x24d3   : > { %v4980_v45 = vmul.f32 %v5580_v43, %v4973_v20 }
0x24d5   : > { %v7553_v46 = vadd.f32 %v5581_v44, %v4980_v45 }
0x24d7   : > { %6281 = vmatmul.mubr.msk.f32.vlgmr.msra.gmra.mrb[52].mxu1 %vm776_vm2, %v7553_v46 }
0x24d8   : > { %6326 = vmatprep.mubr.msk.f32.mxu1 %vm6610_vm0, %v6611_v4  ;;  %v5592_v4 = vld [vmem:[%s7668_s14 + $0x98] sm:$0xff] }
0x24d9   : > { %v6516_v51 = vpack.c.bf16 %v5592_v4, %v5591_v50  ;;  %v5229_v50 = vld [vmem:[%s7674_s20 + $0x8] sm:$0xff] }
0x24da   : > { %v6537_v4 = vpack.c.bf16 %v5229_v50, %v5228_v49 }
0x24db   : > { %6517 = vmatpush3.bf16.msra.mxu0 %v6516_v51  ;;  %v5231_v51 = vld [vmem:[%s7674_s20 + $0x18] sm:$0xff] }
0x24dc   : > { %6518 = vmatprep.subr.bf16.mxu0 %v6609_v2  ;;  %6538 = vmatpush3.bf16.msra.mxu1 %v6537_v4 }
0x24dd   : > { %6539 = vmatprep.subr.bf16.mxu1 %v6609_v2 }
0x24df   : > { %6520 = vmatpush3.bf16.msra.mxu0 %v6519_v55 }
0x24e0   : > { %6521 = vmatprep.subr.bf16.mxu0 %v6609_v2 }
0x24e3   : > { %6523 = vmatpush3.bf16.msra.mxu0 %v6522_v58 }
0x24e4   : > { %6524 = vmatprep.subr.bf16.mxu0 %v6609_v2 }
0x24e7   : > { %6526 = vmatpush3.bf16.msra.mxu0 %v6525_v54 }
0x24e8   : > { %6527 = vmatprep.subr.bf16.mxu0 %v6609_v2 }
0x24eb   : > { %6529 = vmatpush3.bf16.msra.mxu0 %v6528_v63 }
0x24ec   : > { %6530 = vmatprep.subr.bf16.mxu0 %v6609_v2 }
0x24ef   : > { %6532 = vmatpush3.bf16.msra.mxu0 %v6531_v3 }
0x24f0   : > { %6533 = vmatprep.subr.bf16.mxu0 %v6609_v2  ;;  %v5609_v2 = vld [vmem:[%s7672_s18 + $0x1] ss:$0 sm:$0xff] }
0x24f3   : > { %6535 = vmatpush3.bf16.msra.mxu0 %v6534_v7 }
0x25aa   : > { %v5070_v9 = vpop.f32.mrb[52].mxu1 }
0x25ab   : > { %v5071_v10 = vadd.f32 %v5587_v8, %v5070_v9  ;;  %v6282_v11 = vpop.f32.mrb[53].mxu1 }
0x25ad   : > { %v5075_v13 = vmul.f32 0.70710677, %v5071_v10  ;;  %v5074_v36 = vmul.f32 0.5, %v5071_v10 }
0x25af   : > { %v5076_v14 = vand.u32 2147483647, %v5075_v13  ;;  %vm5096_vm5 = vcmp.ge.f32.partialorder %v5075_v13, 0.0 }
0x25b1   : > { %v5077_v15 = vmul.f32 0.3275911, %v5076_v14  ;;  %v5090_v17 = vsub.f32 0.0, %v5076_v14 }
0x25b3   : > { %v5078_v16 = vadd.f32 1.0, %v5077_v15  ;;  %v5091_v19 = vmul.f32 %v5090_v17, %v5076_v14 }
0x25b5   : > { %6595 = vrcp.f32 %v5078_v16  ;;  %v5092_v23 = vmul.f32 1.442695, %v5091_v19 }
0x25b7   : > { %6597 = vpow2.f32 %v5092_v23 }
0x25bf   : > { %v6596_v18 = vpop.eup %6595 }
0x25c0   : > { %v5081_v21 = vmul.f32 1.0614054, %v6596_v18 }
0x25c1   : > { %v6598_v31 = vpop.eup %6597 }
0x25c2   : > { %v5082_v22 = vadd.f32 -1.4531521, %v5081_v21 }
0x25c4   : > { %v5083_v24 = vmul.f32 %v6596_v18, %v5082_v22 }
0x25c6   : > { %v5084_v25 = vadd.f32 1.4214138, %v5083_v24 }
0x25c8   : > { %v5085_v26 = vmul.f32 %v6596_v18, %v5084_v25 }
0x25ca   : > { %v5086_v27 = vadd.f32 -0.28449672, %v5085_v26 }
0x25cc   : > { %v5087_v28 = vmul.f32 %v6596_v18, %v5086_v27 }
0x25ce   : > { %v5088_v29 = vadd.f32 0.2548296, %v5087_v28 }
0x25d0   : > { %v5089_v30 = vmul.f32 %v6596_v18, %v5088_v29 }
0x25d2   : > { %v5094_v32 = vmul.f32 %v6598_v31, %v5089_v30 }
0x25d4   : > { %v5095_v33 = vsub.f32 1.0, %v5094_v32 }
0x25d6   : > { %v5097_v34 = vsub.f32 0.0, %v5095_v33 }
0x25d8   : > { %v5098_v35 = vsel %vm5096_vm5, %v5095_v33, %v5097_v34 }
0x25d9   : > { %v5099_v12 = vadd.f32 1.0, %v5098_v35 }
0x25db   : > { %v5100_v37 = vmul.f32 %v5099_v12, %v5074_v36 }
0x25dd   : > { %6316 = vmatmul.mubr.f32.vlgmr.msra.gmra.mrb[50].mxu0 %v5100_v37 }
0x26b0   : > { %v5192_v39 = vpop.f32.mrb[50].mxu0 }
0x26b1   : > { %v5193_v40 = vadd.f32 %v5606_v38, %v5192_v39  ;;  %v6317_v41 = vpop.f32.mrb[51].mxu0 }
0x26b3   : > { %v5196_v42 = vadd.f32 %v5193_v40, %v7553_v46  ;;  %v5230_v46 = vld [vmem:[%s7674_s20 + $0x10] sm:$0xff] }
0x26b4   : > { %v6540_v52 = vpack.c.bf16 %v5231_v51, %v5230_v46 }
0x26b5   : > { %v5201_v43 = vsel %vm776_vm2, %v5196_v42, 0.0 }
0x26b6   : > { %5202 = vadd.xlane.f32.xlu0 %v5201_v43  ;;  %6541 = vmatpush3.bf16.msra.mxu1 %v6540_v52 }
0x2743   : > { %v5203_v20 = vpop.xlane.xlu0 %5202 }
0x2744   : > { %v5204_v44 = vmul.f32 0.03125, %v5203_v20 }
0x2746   : > { %v5205_v45 = vsub.f32 %v5196_v42, %v5204_v44 }
0x2748   : > { %v5206_v47 = vmul.f32 %v5205_v45, %v5205_v45 }
0x274a   : > { %v5207_v48 = vsel %vm776_vm2, %v5206_v47, 0.0 }
0x274b   : > { %5208 = vadd.xlane.f32.xlu1 %v5207_v48 }
0x27d8   : > { %v5209_v53 = vpop.xlane.xlu1 %5208 }
0x27d9   : > { %v5210_v55 = vmul.f32 0.03125, %v5209_v53 }
0x27db   : > { %v5211_v56 = vadd.f32 1e-05, %v5210_v55 }
0x27dd   : > { %6599 = vrsqrt.f32 %v5211_v56 }
0x27e7   : > { %v6600_v57 = vpop.eup %6599 }
0x27e8   : > { %v5213_v58 = vmul.f32 %v6600_v57, %v5205_v45 }
0x27ea   : > { %v5220_v60 = vmul.f32 %v5609_v2, %v5213_v58 }
0x27ec   : > { %v5227_v54 = vadd.f32 %v5610_v59, %v5220_v60 }
0x27ee   : > { %6327 = vmatmul.mubr.msk.f32.vlgmr.msra.gmra.mrb[54].mxu1 %vm776_vm2, %v5227_v54 }
0x28c1   : > { %v5308_v62 = vpop.f32.mrb[54].mxu1 }
0x28c2   : > { %v5309_v63 = vadd.f32 %v5611_v61, %v5308_v62  ;;  %v6328_v0 = vpop.f32.mrb[55].mxu1 }
0x28c4   : > { %5313 = vst.msk [vmem:[%s678_s2] sm:$0xff] %vm5312_vm6, %v5309_v63 }
0x28c5 PF: > { %s32_s3 = sadd.s32 1, %s6607_s3  }
0x28c6   : > { %p29_p4 = scmp.ge.s32.totalorder %s32_s3, 4  }
0x28c8   :  { %31 = sbr.rel (!%p29_p4) target bundleno = 8 (0x8), region = 196 }

</bundles_post_ra>
